<compile_context>
chip_gen: v7x
topology: tpu7x:2x2x1
jax: 0.10.0
libtpu: 0.0.40
codegen_flags: <defaults>
</compile_context>

<pallas_src>
import functools
import math

import jax
import jax.numpy as jnp
from jax.experimental import pallas as pl
from jax.experimental.pallas import tpu as pltpu


def _resnet_block_kernel(num_groups, has_cond, has_skip, *refs):
    it = iter(refs)
    x_ref = next(it)                                    # (1, H, W, Cin)  f32
    cond_ref = next(it) if has_cond else None           # (1, 1, Dc)      f32
    m1_ref = next(it)                                   # (Cin, Cin) group mask f32
    g1_ref = next(it); be1_ref = next(it)                # (1, Cin) gamma / beta
    w1_ref = next(it); cb1_ref = next(it)                # (9, Cin, Cout) bf16, (1, Cout) f32
    if has_cond:
        wc_ref = next(it); bc_ref = next(it)             # (Dc, Cout) f32, (1, Cout) f32
    m2_ref = next(it)                                    # (Cout, Cout)
    g2_ref = next(it); be2_ref = next(it)                # (1, Cout)
    w2_ref = next(it); cb2_ref = next(it)                # (9, Cout, Cout) bf16, (1, Cout)
    if has_skip:
        wsk_ref = next(it); bsk_ref = next(it)           # (Cin, Cout) bf16, (1, Cout)
    o_ref = next(it)                                     # (1, H, W, Cout)
    pad1_ref = next(it)                                  # (H+2, W+2, Cin)  f32 halo scratch
    pad2_ref = next(it)                                  # (H+2, W+2, Cout) f32 halo scratch

    H, W = o_ref.shape[1], o_ref.shape[2]
    Cin, Cout = x_ref.shape[3], o_ref.shape[3]
    HW = H * W
    eps = 1e-5
    inv_sqrt2 = 1.0 / math.sqrt(2.0)
    f32 = jnp.float32
    bf16 = jnp.bfloat16

    def group_norm(v2d, mask_ref, gamma_ref, beta_ref):
        # v2d: (HW, C) f32. Per-group stats via a tiny (1,C)@(C,C) membership matmul.
        C = v2d.shape[1]
        n = float(HW * (C // num_groups))
        mean = jnp.dot(jnp.sum(v2d, axis=0, keepdims=True), mask_ref[...],
                       preferred_element_type=f32) / n
        xm = v2d - mean
        # two-pass variance E[(x-mean)^2]: no catastrophic cancellation.
        var = jnp.dot(jnp.sum(xm * xm, axis=0, keepdims=True), mask_ref[...],
                      preferred_element_type=f32) / n
        scale = jax.lax.rsqrt(var + eps) * gamma_ref[...]
        return xm * scale + beta_ref[...]

    def gelu(v):
        # exact erf GELU (nn.GELU default, approximate='none'); f32 on the EUP/VPU.
        return 0.5 * v * (1.0 + jax.lax.erf(v * inv_sqrt2))

    def conv3x3(pad_ref, a3d, w_ref, cout, bias_row):
        # 'same' 3x3 conv = 9 shifted (HW, Cin) @ (Cin, Cout) bf16 MXU matmuls, f32 accumulation.
        cin = pad_ref.shape[2]
        dt = pad_ref.dtype
        # Re-zero only the 1-pixel halo (interior fully overwritten below).
        pad_ref[0:1, :, :] = jnp.zeros((1, W + 2, cin), dt)
        pad_ref[H + 1:H + 2, :, :] = jnp.zeros((1, W + 2, cin), dt)
        pad_ref[1:H + 1, 0:1, :] = jnp.zeros((H, 1, cin), dt)
        pad_ref[1:H + 1, W + 1:W + 2, :] = jnp.zeros((H, 1, cin), dt)
        pad_ref[1:H + 1, 1:W + 1, :] = a3d.astype(dt)
        acc = jnp.broadcast_to(bias_row.astype(f32), (HW, cout))
        for ky in range(3):
            for kx in range(3):
                patch = pad_ref[ky:ky + H, kx:kx + W, :].reshape(HW, cin)
                acc = acc + jnp.dot(patch.astype(bf16), w_ref[ky * 3 + kx],
                                    preferred_element_type=f32)
        return acc

    xs = x_ref[0].astype(f32).reshape(HW, Cin)

    # Fuse conv1 bias and the (optional) conditioning projection into one (1, Cout) row.
    bias1 = cb1_ref[...]
    if has_cond:
        cond_add = jnp.dot(cond_ref[0].astype(f32), wc_ref[...],
                           preferred_element_type=f32) + bc_ref[...]
        bias1 = bias1 + cond_add

    # --- net1: GroupNorm -> GELU -> Conv3x3 (+ bias + conditioning) ---
    a1 = gelu(group_norm(xs, m1_ref, g1_ref, be1_ref))
    h1 = conv3x3(pad1_ref, a1.reshape(H, W, Cin), w1_ref, Cout, bias1)

    # --- net2: GroupNorm -> GELU -> Dropout(p=0) -> Conv3x3 ---
    a2 = gelu(group_norm(h1, m2_ref, g2_ref, be2_ref))
    h2 = conv3x3(pad2_ref, a2.reshape(H, W, Cout), w2_ref, Cout, cb2_ref[...])

    # --- skip path: identity when ch_in == ch_out, else 1x1 conv (single bf16 MXU matmul) ---
    if has_skip:
        skip = jnp.dot(xs.astype(bf16), wsk_ref[...],
                       preferred_element_type=f32) + bsk_ref[...]
    else:
        skip = xs

    o_ref[0] = (skip + h2).reshape(H, W, Cout).astype(o_ref.dtype)


def _group_mask(C, G, dtype=jnp.float32):
    g = jnp.arange(C) // (C // G)
    return (g[:, None] == g[None, :]).astype(dtype)


def resnet_block(x_nchw, cond,
                 gn1_w, gn1_b, conv1_w, conv1_b,
                 gn2_w, gn2_b, conv2_w, conv2_b,
                 cond_w=None, cond_b=None,
                 skip_w=None, skip_b=None,
                 *, num_groups, out_dtype=jnp.float32):
    """ResNetBlock forward (dim=2, eval mode / dropout=0).

    x_nchw:  (B, Cin, H, W)              PyTorch layout (transposed to NHWC internally)
    conv*_w: (3, 3, Cin_or_Cout, Cout)   HWIO (= torch weight.permute(2,3,1,0))
    cond:    (B, Dc) or None;  cond_w: (Dc, Cout) (= torch Linear weight.T)
    skip_w:  (Cin, Cout) 1x1 skip conv, or None when ch_in == ch_out (identity skip).
    """
    B, Cin, H, W = x_nchw.shape
    Cout = conv1_w.shape[-1]
    assert Cin % num_groups == 0 and Cout % num_groups == 0, \
        "GroupNorm needs channel counts divisible by num_groups"
    f32, bf16 = jnp.float32, jnp.bfloat16
    has_cond = cond is not None
    has_skip = skip_w is not None
    if not has_skip:
        assert Cin == Cout, "skip_w is required when ch_in != ch_out"

    x_nhwc = jnp.transpose(x_nchw, (0, 2, 3, 1)).astype(f32)

    row = lambda v: jnp.asarray(v).reshape(1, -1).astype(f32)
    const2 = lambda b: (0, 0)
    const3 = lambda b: (0, 0, 0)

    # Weights feeding the MXU stored/passed as bf16 (halves resident VMEM); accumulation stays f32.
    w1r = jnp.asarray(conv1_w).reshape(9, Cin, Cout).astype(bf16)
    w2r = jnp.asarray(conv2_w).reshape(9, Cout, Cout).astype(bf16)

    operands = [x_nhwc]
    in_specs = [pl.BlockSpec((1, H, W, Cin), lambda b: (b, 0, 0, 0))]
    Dc = 0
    if has_cond:
        Dc = cond.shape[-1]
        operands.append(jnp.asarray(cond).reshape(B, 1, Dc).astype(f32))
        in_specs.append(pl.BlockSpec((1, 1, Dc), lambda b: (b, 0, 0)))

    operands += [_group_mask(Cin, num_groups), row(gn1_w), row(gn1_b), w1r, row(conv1_b)]
    in_specs += [pl.BlockSpec((Cin, Cin), const2),
                 pl.BlockSpec((1, Cin), const2),
                 pl.BlockSpec((1, Cin), const2),
                 pl.BlockSpec((9, Cin, Cout), const3),
                 pl.BlockSpec((1, Cout), const2)]
    if has_cond:
        operands += [jnp.asarray(cond_w).astype(f32), row(cond_b)]
        in_specs += [pl.BlockSpec((Dc, Cout), const2),
                     pl.BlockSpec((1, Cout), const2)]
    operands += [_group_mask(Cout, num_groups), row(gn2_w), row(gn2_b), w2r, row(conv2_b)]
    in_specs += [pl.BlockSpec((Cout, Cout), const2),
                 pl.BlockSpec((1, Cout), const2),
                 pl.BlockSpec((1, Cout), const2),
                 pl.BlockSpec((9, Cout, Cout), const3),
                 pl.BlockSpec((1, Cout), const2)]
    if has_skip:
        operands += [jnp.asarray(skip_w).astype(bf16), row(skip_b)]
        in_specs += [pl.BlockSpec((Cin, Cout), const2),
                     pl.BlockSpec((1, Cout), const2)]

    HW = H * W
    flops = B * (2 * HW * 9 * (Cin * Cout + Cout * Cout)
                 + (2 * HW * Cin * Cout if has_skip else 0)
                 + (2 * Dc * Cout if has_cond else 0)
                 + 2 * HW * (Cin + Cout))
    transcendentals = B * HW * (Cin + Cout)                       # erf
    bytes_accessed = (4 * B * HW * (Cin + Cout)
                      + 2 * (9 * Cin * Cout + 9 * Cout * Cout + Cin * Cout)
                      + 4 * (Cin * Cin + Cout * Cout + Dc * Cout)
                      + 4 * (2 * Cin + 6 * Cout + B * Dc))

    # Explicit scoped-VMEM budget sized from residency (blocks double-buffered + scratch + temps).
    est = (2 * 4 * HW * (Cin + Cout)                                  # x / out blocks
           + 2 * 2 * (9 * Cin * Cout + 9 * Cout * Cout + Cin * Cout)  # bf16 weights
           + 4 * (H + 2) * (W + 2) * (Cin + Cout)                     # halo scratch
           + 8 * 4 * HW * max(Cin, Cout)                              # live f32 temporaries
           + (1 << 20))
    vmem_limit = int(max(32 * 1024 * 1024, min(100 * 1024 * 1024, 2 * est)))

    kernel = functools.partial(_resnet_block_kernel, num_groups, has_cond, has_skip)

    out_nhwc = pl.pallas_call(
        kernel,
        out_shape=jax.ShapeDtypeStruct((B, H, W, Cout), out_dtype),
        grid_spec=pltpu.PrefetchScalarGridSpec(
            num_scalar_prefetch=0,
            grid=(B,),
            in_specs=in_specs,
            out_specs=pl.BlockSpec((1, H, W, Cout), lambda b: (b, 0, 0, 0)),
            scratch_shapes=[
                pltpu.VMEM((H + 2, W + 2, Cin), jnp.float32),
                pltpu.VMEM((H + 2, W + 2, Cout), jnp.float32),
            ],
        ),
        compiler_params=pltpu.CompilerParams(
            dimension_semantics=("parallel",),
            vmem_limit_bytes=vmem_limit),
        cost_estimate=pl.CostEstimate(
            flops=int(flops), transcendentals=int(transcendentals),
            bytes_accessed=int(bytes_accessed)),
    )(*operands)

    return jnp.transpose(out_nhwc, (0, 3, 1, 2))


# ----------------------------- pure-JAX reference -----------------------------

def resnet_block_ref(x_nchw, cond,
                     gn1_w, gn1_b, conv1_w, conv1_b,
                     gn2_w, gn2_b, conv2_w, conv2_b,
                     cond_w=None, cond_b=None,
                     skip_w=None, skip_b=None,
                     *, num_groups):
    eps = 1e-5
    x = jnp.transpose(x_nchw, (0, 2, 3, 1))          # NHWC
    B, H, W, Cin = x.shape

    def gn(v, gamma, beta):
        C = v.shape[-1]
        g = v.reshape(B, H, W, num_groups, C // num_groups)
        mean = g.mean(axis=(1, 2, 4), keepdims=True)
        var = g.var(axis=(1, 2, 4), keepdims=True)
        g = (g - mean) * jax.lax.rsqrt(var + eps)
        return g.reshape(B, H, W, C) * gamma + beta

    def gelu(v):
        return 0.5 * v * (1.0 + jax.lax.erf(v * (1.0 / math.sqrt(2.0))))

    def conv3x3(v, w, b):  # 'same' padding, NHWC / HWIO
        vp = jnp.pad(v, ((0, 0), (1, 1), (1, 1), (0, 0)))
        y = jnp.zeros(v.shape[:3] + (w.shape[-1],), v.dtype)
        for ky in range(3):
            for kx in range(3):
                y = y + jnp.einsum('bhwc,co->bhwo',
                                   vp[:, ky:ky + H, kx:kx + W, :], w[ky, kx])
        return y + b

    h = conv3x3(gelu(gn(x, gn1_w, gn1_b)), conv1_w, conv1_b)
    if cond is not None:
        h = h + (cond @ cond_w + cond_b)[:, None, None, :]
    h = conv3x3(gelu(gn(h, gn2_w, gn2_b)), conv2_w, conv2_b)
    skip = (jnp.einsum('bhwc,co->bhwo', x, skip_w) + skip_b) if skip_w is not None else x
    return jnp.transpose(skip + h, (0, 3, 1, 2))


if __name__ == "__main__":

    def run_case(key, B, Cin, Cout, H, W, G, Dc, use_cond, use_skip):
        ks = jax.random.split(key, 14)
        x = jax.random.normal(ks[0], (B, Cin, H, W), jnp.float32)
        cond = jax.random.normal(ks[1], (B, Dc), jnp.float32) if use_cond else None
        gn1_w = 1.0 + 0.1 * jax.random.normal(ks[2], (Cin,), jnp.float32)
        gn1_b = 0.1 * jax.random.normal(ks[3], (Cin,), jnp.float32)
        conv1_w = jax.random.normal(ks[4], (3, 3, Cin, Cout), jnp.float32) / math.sqrt(9 * Cin)
        conv1_b = 0.02 * jax.random.normal(ks[5], (Cout,), jnp.float32)
        # NOTE: module zero-inits cond_projs ('zerolinear') and the net2 conv; random weights
        # are used so those paths are actually exercised (init choice != forward semantics).
        cond_w = (jax.random.normal(ks[6], (Dc, Cout), jnp.float32) / math.sqrt(Dc)
                  if use_cond else None)
        cond_b = 0.02 * jax.random.normal(ks[7], (Cout,), jnp.float32) if use_cond else None
        gn2_w = 1.0 + 0.1 * jax.random.normal(ks[8], (Cout,), jnp.float32)
        gn2_b = 0.1 * jax.random.normal(ks[9], (Cout,), jnp.float32)
        conv2_w = jax.random.normal(ks[10], (3, 3, Cout, Cout), jnp.float32) / math.sqrt(9 * Cout)
        conv2_b = 0.02 * jax.random.normal(ks[11], (Cout,), jnp.float32)
        skip_w = (jax.random.normal(ks[12], (Cin, Cout), jnp.float32) / math.sqrt(Cin)
                  if use_skip else None)
        skip_b = 0.02 * jax.random.normal(ks[13], (Cout,), jnp.float32) if use_skip else None

        args = (x, cond, gn1_w, gn1_b, conv1_w, conv1_b, gn2_w, gn2_b, conv2_w, conv2_b)
        kw = dict(cond_w=cond_w, cond_b=cond_b, skip_w=skip_w, skip_b=skip_b, num_groups=G)
        out = jax.block_until_ready(resnet_block(*args, **kw))
        ref = jax.block_until_ready(resnet_block_ref(*args, **kw))
        assert out.shape == (B, Cout, H, W)
        # bf16 MXU operands (f32 accumulation) -> looser tolerance than a pure-f32 pipeline.
        max_err = float(jnp.max(jnp.abs(out - ref)))
        assert jnp.allclose(out, ref, atol=3e-2, rtol=3e-2), \
            f"mismatch vs reference (max abs err {max_err})"

    k1, k2 = jax.random.split(jax.random.PRNGKey(0))
    # ch_in != ch_out (1x1 skip conv) with one conditioning vector
    run_case(k1, B=2, Cin=4, Cout=8, H=16, W=16, G=2, Dc=6, use_cond=True, use_skip=True)
    # ch_in == ch_out (identity skip), no conditioning
    run_case(k2, B=2, Cin=8, Cout=8, H=16, W=16, G=4, Dc=0, use_cond=False, use_skip=False)
    print("KERNEL_OK")
</pallas_src>

<mosaic_0001>
module attributes {stable_mosaic.version = 11 : i64} {
  func.func @_resnet_block_kernel(%arg0: i32, %arg1: memref<1x16x16x4xf32, #tpu.memory_space<vmem>>, %arg2: memref<1x1x6xf32, #tpu.memory_space<vmem>>, %arg3: memref<4x4xf32, #tpu.memory_space<vmem>>, %arg4: memref<1x4xf32, #tpu.memory_space<vmem>>, %arg5: memref<1x4xf32, #tpu.memory_space<vmem>>, %arg6: memref<9x4x8xbf16, #tpu.memory_space<vmem>>, %arg7: memref<1x8xf32, #tpu.memory_space<vmem>>, %arg8: memref<6x8xf32, #tpu.memory_space<vmem>>, %arg9: memref<1x8xf32, #tpu.memory_space<vmem>>, %arg10: memref<8x8xf32, #tpu.memory_space<vmem>>, %arg11: memref<1x8xf32, #tpu.memory_space<vmem>>, %arg12: memref<1x8xf32, #tpu.memory_space<vmem>>, %arg13: memref<9x8x8xbf16, #tpu.memory_space<vmem>>, %arg14: memref<1x8xf32, #tpu.memory_space<vmem>>, %arg15: memref<4x8xbf16, #tpu.memory_space<vmem>>, %arg16: memref<1x8xf32, #tpu.memory_space<vmem>>, %arg17: memref<1x16x16x8xf32, #tpu.memory_space<vmem>>, %arg18: memref<18x18x4xf32, #tpu.memory_space<vmem>>, %arg19: memref<18x18x8xf32, #tpu.memory_space<vmem>>) attributes {dimension_semantics = [#tpu.dimension_semantics<parallel>], iteration_bounds = array<i64: 2>, scalar_prefetch = 0 : i64, scratch_operands = 2 : i64, tpu.core_type = #tpu.core_type<tc>, window_params = [{transform_indices = @transform_0, window_bounds = array<i64: 1, 16, 16, 4>}, {transform_indices = @transform_1, window_bounds = array<i64: 1, 1, 6>}, {pipeline_mode = #tpu.pipeline_mode<synchronous>, transform_indices = @transform_2, window_bounds = array<i64: 4, 4>}, {pipeline_mode = #tpu.pipeline_mode<synchronous>, transform_indices = @transform_3, window_bounds = array<i64: 1, 4>}, {pipeline_mode = #tpu.pipeline_mode<synchronous>, transform_indices = @transform_4, window_bounds = array<i64: 1, 4>}, {pipeline_mode = #tpu.pipeline_mode<synchronous>, transform_indices = @transform_5, window_bounds = array<i64: 9, 4, 8>}, {pipeline_mode = #tpu.pipeline_mode<synchronous>, transform_indices = @transform_6, window_bounds = array<i64: 1, 8>}, {pipeline_mode = #tpu.pipeline_mode<synchronous>, transform_indices = @transform_7, window_bounds = array<i64: 6, 8>}, {pipeline_mode = #tpu.pipeline_mode<synchronous>, transform_indices = @transform_8, window_bounds = array<i64: 1, 8>}, {pipeline_mode = #tpu.pipeline_mode<synchronous>, transform_indices = @transform_9, window_bounds = array<i64: 8, 8>}, {pipeline_mode = #tpu.pipeline_mode<synchronous>, transform_indices = @transform_10, window_bounds = array<i64: 1, 8>}, {pipeline_mode = #tpu.pipeline_mode<synchronous>, transform_indices = @transform_11, window_bounds = array<i64: 1, 8>}, {pipeline_mode = #tpu.pipeline_mode<synchronous>, transform_indices = @transform_12, window_bounds = array<i64: 9, 8, 8>}, {pipeline_mode = #tpu.pipeline_mode<synchronous>, transform_indices = @transform_13, window_bounds = array<i64: 1, 8>}, {pipeline_mode = #tpu.pipeline_mode<synchronous>, transform_indices = @transform_14, window_bounds = array<i64: 4, 8>}, {pipeline_mode = #tpu.pipeline_mode<synchronous>, transform_indices = @transform_15, window_bounds = array<i64: 1, 8>}, {transform_indices = @transform_16, window_bounds = array<i64: 1, 16, 16, 8>}]} {
    %c0 = arith.constant 0 : index
    %c0_0 = arith.constant 0 : index
    %c0_1 = arith.constant 0 : index
    %c0_2 = arith.constant 0 : index
    %0 = vector.load %arg1[%c0, %c0_0, %c0_1, %c0_2] : memref<1x16x16x4xf32, #tpu.memory_space<vmem>>, vector<1x16x16x4xf32>
    %1 = vector.shape_cast %0 : vector<1x16x16x4xf32> to vector<16x16x4xf32>
    %2 = vector.shape_cast %1 : vector<16x16x4xf32> to vector<256x4xf32>
    %c0_3 = arith.constant 0 : index
    %c0_4 = arith.constant 0 : index
    %3 = vector.load %arg7[%c0_3, %c0_4] : memref<1x8xf32, #tpu.memory_space<vmem>>, vector<1x8xf32>
    %c0_5 = arith.constant 0 : index
    %c0_6 = arith.constant 0 : index
    %c0_7 = arith.constant 0 : index
    %4 = vector.load %arg2[%c0_5, %c0_6, %c0_7] : memref<1x1x6xf32, #tpu.memory_space<vmem>>, vector<1x1x6xf32>
    %5 = vector.shape_cast %4 : vector<1x1x6xf32> to vector<1x6xf32>
    %c0_8 = arith.constant 0 : index
    %c0_9 = arith.constant 0 : index
    %6 = vector.load %arg8[%c0_8, %c0_9] : memref<6x8xf32, #tpu.memory_space<vmem>>, vector<6x8xf32>
    %cst = arith.constant dense<0.000000e+00> : vector<1x8xf32>
    %7 = tpu.matmul %5, %6, %cst {dimension_numbers = #tpu.dot_dimension_numbers<[1], [0], [0], [1], [0, 0, 1, 1], [], []>} : vector<1x6xf32>, vector<6x8xf32>, vector<1x8xf32> -> vector<1x8xf32>
    %c0_10 = arith.constant 0 : index
    %c0_11 = arith.constant 0 : index
    %8 = vector.load %arg9[%c0_10, %c0_11] : memref<1x8xf32, #tpu.memory_space<vmem>>, vector<1x8xf32>
    %9 = arith.addf %7, %8 : vector<1x8xf32>
    %10 = arith.addf %3, %9 : vector<1x8xf32>
    %cst_12 = arith.constant dense<0.000000e+00> : vector<4xf32>
    %11 = vector.multi_reduction <add>, %2, %cst_12 [0] : vector<256x4xf32> to vector<4xf32>
    %12 = vector.shape_cast %11 : vector<4xf32> to vector<1x4xf32>
    %c0_13 = arith.constant 0 : index
    %c0_14 = arith.constant 0 : index
    %13 = vector.load %arg3[%c0_13, %c0_14] : memref<4x4xf32, #tpu.memory_space<vmem>>, vector<4x4xf32>
    %cst_15 = arith.constant dense<0.000000e+00> : vector<1x4xf32>
    %14 = tpu.matmul %12, %13, %cst_15 {dimension_numbers = #tpu.dot_dimension_numbers<[1], [0], [0], [1], [0, 0, 1, 1], [], []>} : vector<1x4xf32>, vector<4x4xf32>, vector<1x4xf32> -> vector<1x4xf32>
    %cst_16 = arith.constant 5.120000e+02 : f32
    %15 = vector.broadcast %cst_16 : f32 to vector<1x4xf32>
    %16 = arith.divf %14, %15 : vector<1x4xf32>
    %17 = vector.broadcast %16 : vector<1x4xf32> to vector<256x4xf32>
    %18 = arith.subf %2, %17 : vector<256x4xf32>
    %19 = arith.mulf %18, %18 : vector<256x4xf32>
    %cst_17 = arith.constant dense<0.000000e+00> : vector<4xf32>
    %20 = vector.multi_reduction <add>, %19, %cst_17 [0] : vector<256x4xf32> to vector<4xf32>
    %21 = vector.shape_cast %20 : vector<4xf32> to vector<1x4xf32>
    %c0_18 = arith.constant 0 : index
    %c0_19 = arith.constant 0 : index
    %22 = vector.load %arg3[%c0_18, %c0_19] : memref<4x4xf32, #tpu.memory_space<vmem>>, vector<4x4xf32>
    %cst_20 = arith.constant dense<0.000000e+00> : vector<1x4xf32>
    %23 = tpu.matmul %21, %22, %cst_20 {dimension_numbers = #tpu.dot_dimension_numbers<[1], [0], [0], [1], [0, 0, 1, 1], [], []>} : vector<1x4xf32>, vector<4x4xf32>, vector<1x4xf32> -> vector<1x4xf32>
    %cst_21 = arith.constant 5.120000e+02 : f32
    %24 = vector.broadcast %cst_21 : f32 to vector<1x4xf32>
    %25 = arith.divf %23, %24 : vector<1x4xf32>
    %cst_22 = arith.constant 9.99999974E-6 : f32
    %26 = vector.broadcast %cst_22 : f32 to vector<1x4xf32>
    %27 = arith.addf %25, %26 : vector<1x4xf32>
    %28 = math.rsqrt %27 : vector<1x4xf32>
    %c0_23 = arith.constant 0 : index
    %c0_24 = arith.constant 0 : index
    %29 = vector.load %arg4[%c0_23, %c0_24] : memref<1x4xf32, #tpu.memory_space<vmem>>, vector<1x4xf32>
    %30 = arith.mulf %28, %29 : vector<1x4xf32>
    %31 = vector.broadcast %30 : vector<1x4xf32> to vector<256x4xf32>
    %32 = arith.mulf %18, %31 : vector<256x4xf32>
    %c0_25 = arith.constant 0 : index
    %c0_26 = arith.constant 0 : index
    %33 = vector.load %arg5[%c0_25, %c0_26] : memref<1x4xf32, #tpu.memory_space<vmem>>, vector<1x4xf32>
    %34 = vector.broadcast %33 : vector<1x4xf32> to vector<256x4xf32>
    %35 = arith.addf %32, %34 : vector<256x4xf32>
    %cst_27 = arith.constant 5.000000e-01 : f32
    %36 = vector.broadcast %cst_27 : f32 to vector<256x4xf32>
    %37 = arith.mulf %36, %35 : vector<256x4xf32>
    %cst_28 = arith.constant 0.707106769 : f32
    %38 = vector.broadcast %cst_28 : f32 to vector<256x4xf32>
    %39 = arith.mulf %35, %38 : vector<256x4xf32>
    %40 = math.erf %39 : vector<256x4xf32>
    %cst_29 = arith.constant 1.000000e+00 : f32
    %41 = vector.broadcast %cst_29 : f32 to vector<256x4xf32>
    %42 = arith.addf %41, %40 : vector<256x4xf32>
    %43 = arith.mulf %37, %42 : vector<256x4xf32>
    %44 = vector.shape_cast %43 : vector<256x4xf32> to vector<16x16x4xf32>
    %cst_30 = arith.constant 0.000000e+00 : f32
    %45 = vector.broadcast %cst_30 : f32 to vector<1x18x4xf32>
    %c0_31 = arith.constant 0 : index
    %c0_32 = arith.constant 0 : index
    %c0_33 = arith.constant 0 : index
    %46 = vector.load %arg18[%c0_31, %c0_32, %c0_33] : memref<18x18x4xf32, #tpu.memory_space<vmem>>, vector<1x18x4xf32>
    tpu.vector_store %arg18[%c0_31, %c0_32, %c0_33], %45 {strides = array<i32>} : memref<18x18x4xf32, #tpu.memory_space<vmem>>, vector<1x18x4xf32>,
    %cst_34 = arith.constant 0.000000e+00 : f32
    %47 = vector.broadcast %cst_34 : f32 to vector<1x18x4xf32>
    %c17 = arith.constant 17 : index
    %c0_35 = arith.constant 0 : index
    %c0_36 = arith.constant 0 : index
    %48 = vector.load %arg18[%c17, %c0_35, %c0_36] : memref<18x18x4xf32, #tpu.memory_space<vmem>>, vector<1x18x4xf32>
    tpu.vector_store %arg18[%c17, %c0_35, %c0_36], %47 {strides = array<i32>} : memref<18x18x4xf32, #tpu.memory_space<vmem>>, vector<1x18x4xf32>,
    %cst_37 = arith.constant 0.000000e+00 : f32
    %49 = vector.broadcast %cst_37 : f32 to vector<16x1x4xf32>
    %c1 = arith.constant 1 : index
    %c0_38 = arith.constant 0 : index
    %c0_39 = arith.constant 0 : index
    %50 = vector.load %arg18[%c1, %c0_38, %c0_39] : memref<18x18x4xf32, #tpu.memory_space<vmem>>, vector<16x1x4xf32>
    tpu.vector_store %arg18[%c1, %c0_38, %c0_39], %49 {strides = array<i32>} : memref<18x18x4xf32, #tpu.memory_space<vmem>>, vector<16x1x4xf32>,
    %cst_40 = arith.constant 0.000000e+00 : f32
    %51 = vector.broadcast %cst_40 : f32 to vector<16x1x4xf32>
    %c1_41 = arith.constant 1 : index
    %c17_42 = arith.constant 17 : index
    %c0_43 = arith.constant 0 : index
    %52 = vector.load %arg18[%c1_41, %c17_42, %c0_43] : memref<18x18x4xf32, #tpu.memory_space<vmem>>, vector<16x1x4xf32>
    tpu.vector_store %arg18[%c1_41, %c17_42, %c0_43], %51 {strides = array<i32>} : memref<18x18x4xf32, #tpu.memory_space<vmem>>, vector<16x1x4xf32>,
    %c1_44 = arith.constant 1 : index
    %c1_45 = arith.constant 1 : index
    %c0_46 = arith.constant 0 : index
    %53 = vector.load %arg18[%c1_44, %c1_45, %c0_46] : memref<18x18x4xf32, #tpu.memory_space<vmem>>, vector<16x16x4xf32>
    tpu.vector_store %arg18[%c1_44, %c1_45, %c0_46], %44 {strides = array<i32>} : memref<18x18x4xf32, #tpu.memory_space<vmem>>, vector<16x16x4xf32>,
    %54 = vector.shape_cast %10 : vector<1x8xf32> to vector<1x8xf32>
    %55 = vector.broadcast %54 : vector<1x8xf32> to vector<256x8xf32>
    %c0_47 = arith.constant 0 : index
    %c0_48 = arith.constant 0 : index
    %c0_49 = arith.constant 0 : index
    %56 = vector.load %arg18[%c0_47, %c0_48, %c0_49] : memref<18x18x4xf32, #tpu.memory_space<vmem>>, vector<16x16x4xf32>
    %57 = vector.shape_cast %56 : vector<16x16x4xf32> to vector<256x4xf32>
    %58 = arith.truncf %57 : vector<256x4xf32> to vector<256x4xbf16>
    %c0_50 = arith.constant 0 : index
    %c0_51 = arith.constant 0 : index
    %c0_52 = arith.constant 0 : index
    %59 = vector.load %arg6[%c0_50, %c0_51, %c0_52] : memref<9x4x8xbf16, #tpu.memory_space<vmem>>, vector<1x4x8xbf16>
    %60 = vector.shape_cast %59 : vector<1x4x8xbf16> to vector<4x8xbf16>
    %cst_53 = arith.constant dense<0.000000e+00> : vector<256x8xf32>
    %61 = tpu.matmul %58, %60, %cst_53 {dimension_numbers = #tpu.dot_dimension_numbers<[1], [0], [0], [1], [0, 0, 1, 1], [], []>} : vector<256x4xbf16>, vector<4x8xbf16>, vector<256x8xf32> -> vector<256x8xf32>
    %62 = arith.addf %55, %61 : vector<256x8xf32>
    %c0_54 = arith.constant 0 : index
    %c1_55 = arith.constant 1 : index
    %c0_56 = arith.constant 0 : index
    %63 = vector.load %arg18[%c0_54, %c1_55, %c0_56] : memref<18x18x4xf32, #tpu.memory_space<vmem>>, vector<16x16x4xf32>
    %64 = vector.shape_cast %63 : vector<16x16x4xf32> to vector<256x4xf32>
    %65 = arith.truncf %64 : vector<256x4xf32> to vector<256x4xbf16>
    %c1_57 = arith.constant 1 : index
    %c0_58 = arith.constant 0 : index
    %c0_59 = arith.constant 0 : index
    %66 = vector.load %arg6[%c1_57, %c0_58, %c0_59] : memref<9x4x8xbf16, #tpu.memory_space<vmem>>, vector<1x4x8xbf16>
    %67 = vector.shape_cast %66 : vector<1x4x8xbf16> to vector<4x8xbf16>
    %cst_60 = arith.constant dense<0.000000e+00> : vector<256x8xf32>
    %68 = tpu.matmul %65, %67, %cst_60 {dimension_numbers = #tpu.dot_dimension_numbers<[1], [0], [0], [1], [0, 0, 1, 1], [], []>} : vector<256x4xbf16>, vector<4x8xbf16>, vector<256x8xf32> -> vector<256x8xf32>
    %69 = arith.addf %62, %68 : vector<256x8xf32>
    %c0_61 = arith.constant 0 : index
    %c2 = arith.constant 2 : index
    %c0_62 = arith.constant 0 : index
    %70 = vector.load %arg18[%c0_61, %c2, %c0_62] : memref<18x18x4xf32, #tpu.memory_space<vmem>>, vector<16x16x4xf32>
    %71 = vector.shape_cast %70 : vector<16x16x4xf32> to vector<256x4xf32>
    %72 = arith.truncf %71 : vector<256x4xf32> to vector<256x4xbf16>
    %c2_63 = arith.constant 2 : index
    %c0_64 = arith.constant 0 : index
    %c0_65 = arith.constant 0 : index
    %73 = vector.load %arg6[%c2_63, %c0_64, %c0_65] : memref<9x4x8xbf16, #tpu.memory_space<vmem>>, vector<1x4x8xbf16>
    %74 = vector.shape_cast %73 : vector<1x4x8xbf16> to vector<4x8xbf16>
    %cst_66 = arith.constant dense<0.000000e+00> : vector<256x8xf32>
    %75 = tpu.matmul %72, %74, %cst_66 {dimension_numbers = #tpu.dot_dimension_numbers<[1], [0], [0], [1], [0, 0, 1, 1], [], []>} : vector<256x4xbf16>, vector<4x8xbf16>, vector<256x8xf32> -> vector<256x8xf32>
    %76 = arith.addf %69, %75 : vector<256x8xf32>
    %c1_67 = arith.constant 1 : index
    %c0_68 = arith.constant 0 : index
    %c0_69 = arith.constant 0 : index
    %77 = vector.load %arg18[%c1_67, %c0_68, %c0_69] : memref<18x18x4xf32, #tpu.memory_space<vmem>>, vector<16x16x4xf32>
    %78 = vector.shape_cast %77 : vector<16x16x4xf32> to vector<256x4xf32>
    %79 = arith.truncf %78 : vector<256x4xf32> to vector<256x4xbf16>
    %c3 = arith.constant 3 : index
    %c0_70 = arith.constant 0 : index
    %c0_71 = arith.constant 0 : index
    %80 = vector.load %arg6[%c3, %c0_70, %c0_71] : memref<9x4x8xbf16, #tpu.memory_space<vmem>>, vector<1x4x8xbf16>
    %81 = vector.shape_cast %80 : vector<1x4x8xbf16> to vector<4x8xbf16>
    %cst_72 = arith.constant dense<0.000000e+00> : vector<256x8xf32>
    %82 = tpu.matmul %79, %81, %cst_72 {dimension_numbers = #tpu.dot_dimension_numbers<[1], [0], [0], [1], [0, 0, 1, 1], [], []>} : vector<256x4xbf16>, vector<4x8xbf16>, vector<256x8xf32> -> vector<256x8xf32>
    %83 = arith.addf %76, %82 : vector<256x8xf32>
    %c1_73 = arith.constant 1 : index
    %c1_74 = arith.constant 1 : index
    %c0_75 = arith.constant 0 : index
    %84 = vector.load %arg18[%c1_73, %c1_74, %c0_75] : memref<18x18x4xf32, #tpu.memory_space<vmem>>, vector<16x16x4xf32>
    %85 = vector.shape_cast %84 : vector<16x16x4xf32> to vector<256x4xf32>
    %86 = arith.truncf %85 : vector<256x4xf32> to vector<256x4xbf16>
    %c4 = arith.constant 4 : index
    %c0_76 = arith.constant 0 : index
    %c0_77 = arith.constant 0 : index
    %87 = vector.load %arg6[%c4, %c0_76, %c0_77] : memref<9x4x8xbf16, #tpu.memory_space<vmem>>, vector<1x4x8xbf16>
    %88 = vector.shape_cast %87 : vector<1x4x8xbf16> to vector<4x8xbf16>
    %cst_78 = arith.constant dense<0.000000e+00> : vector<256x8xf32>
    %89 = tpu.matmul %86, %88, %cst_78 {dimension_numbers = #tpu.dot_dimension_numbers<[1], [0], [0], [1], [0, 0, 1, 1], [], []>} : vector<256x4xbf16>, vector<4x8xbf16>, vector<256x8xf32> -> vector<256x8xf32>
    %90 = arith.addf %83, %89 : vector<256x8xf32>
    %c1_79 = arith.constant 1 : index
    %c2_80 = arith.constant 2 : index
    %c0_81 = arith.constant 0 : index
    %91 = vector.load %arg18[%c1_79, %c2_80, %c0_81] : memref<18x18x4xf32, #tpu.memory_space<vmem>>, vector<16x16x4xf32>
    %92 = vector.shape_cast %91 : vector<16x16x4xf32> to vector<256x4xf32>
    %93 = arith.truncf %92 : vector<256x4xf32> to vector<256x4xbf16>
    %c5 = arith.constant 5 : index
    %c0_82 = arith.constant 0 : index
    %c0_83 = arith.constant 0 : index
    %94 = vector.load %arg6[%c5, %c0_82, %c0_83] : memref<9x4x8xbf16, #tpu.memory_space<vmem>>, vector<1x4x8xbf16>
    %95 = vector.shape_cast %94 : vector<1x4x8xbf16> to vector<4x8xbf16>
    %cst_84 = arith.constant dense<0.000000e+00> : vector<256x8xf32>
    %96 = tpu.matmul %93, %95, %cst_84 {dimension_numbers = #tpu.dot_dimension_numbers<[1], [0], [0], [1], [0, 0, 1, 1], [], []>} : vector<256x4xbf16>, vector<4x8xbf16>, vector<256x8xf32> -> vector<256x8xf32>
    %97 = arith.addf %90, %96 : vector<256x8xf32>
    %c2_85 = arith.constant 2 : index
    %c0_86 = arith.constant 0 : index
    %c0_87 = arith.constant 0 : index
    %98 = vector.load %arg18[%c2_85, %c0_86, %c0_87] : memref<18x18x4xf32, #tpu.memory_space<vmem>>, vector<16x16x4xf32>
    %99 = vector.shape_cast %98 : vector<16x16x4xf32> to vector<256x4xf32>
    %100 = arith.truncf %99 : vector<256x4xf32> to vector<256x4xbf16>
    %c6 = arith.constant 6 : index
    %c0_88 = arith.constant 0 : index
    %c0_89 = arith.constant 0 : index
    %101 = vector.load %arg6[%c6, %c0_88, %c0_89] : memref<9x4x8xbf16, #tpu.memory_space<vmem>>, vector<1x4x8xbf16>
    %102 = vector.shape_cast %101 : vector<1x4x8xbf16> to vector<4x8xbf16>
    %cst_90 = arith.constant dense<0.000000e+00> : vector<256x8xf32>
    %103 = tpu.matmul %100, %102, %cst_90 {dimension_numbers = #tpu.dot_dimension_numbers<[1], [0], [0], [1], [0, 0, 1, 1], [], []>} : vector<256x4xbf16>, vector<4x8xbf16>, vector<256x8xf32> -> vector<256x8xf32>
    %104 = arith.addf %97, %103 : vector<256x8xf32>
    %c2_91 = arith.constant 2 : index
    %c1_92 = arith.constant 1 : index
    %c0_93 = arith.constant 0 : index
    %105 = vector.load %arg18[%c2_91, %c1_92, %c0_93] : memref<18x18x4xf32, #tpu.memory_space<vmem>>, vector<16x16x4xf32>
    %106 = vector.shape_cast %105 : vector<16x16x4xf32> to vector<256x4xf32>
    %107 = arith.truncf %106 : vector<256x4xf32> to vector<256x4xbf16>
    %c7 = arith.constant 7 : index
    %c0_94 = arith.constant 0 : index
    %c0_95 = arith.constant 0 : index
    %108 = vector.load %arg6[%c7, %c0_94, %c0_95] : memref<9x4x8xbf16, #tpu.memory_space<vmem>>, vector<1x4x8xbf16>
    %109 = vector.shape_cast %108 : vector<1x4x8xbf16> to vector<4x8xbf16>
    %cst_96 = arith.constant dense<0.000000e+00> : vector<256x8xf32>
    %110 = tpu.matmul %107, %109, %cst_96 {dimension_numbers = #tpu.dot_dimension_numbers<[1], [0], [0], [1], [0, 0, 1, 1], [], []>} : vector<256x4xbf16>, vector<4x8xbf16>, vector<256x8xf32> -> vector<256x8xf32>
    %111 = arith.addf %104, %110 : vector<256x8xf32>
    %c2_97 = arith.constant 2 : index
    %c2_98 = arith.constant 2 : index
    %c0_99 = arith.constant 0 : index
    %112 = vector.load %arg18[%c2_97, %c2_98, %c0_99] : memref<18x18x4xf32, #tpu.memory_space<vmem>>, vector<16x16x4xf32>
    %113 = vector.shape_cast %112 : vector<16x16x4xf32> to vector<256x4xf32>
    %114 = arith.truncf %113 : vector<256x4xf32> to vector<256x4xbf16>
    %c8 = arith.constant 8 : index
    %c0_100 = arith.constant 0 : index
    %c0_101 = arith.constant 0 : index
    %115 = vector.load %arg6[%c8, %c0_100, %c0_101] : memref<9x4x8xbf16, #tpu.memory_space<vmem>>, vector<1x4x8xbf16>
    %116 = vector.shape_cast %115 : vector<1x4x8xbf16> to vector<4x8xbf16>
    %cst_102 = arith.constant dense<0.000000e+00> : vector<256x8xf32>
    %117 = tpu.matmul %114, %116, %cst_102 {dimension_numbers = #tpu.dot_dimension_numbers<[1], [0], [0], [1], [0, 0, 1, 1], [], []>} : vector<256x4xbf16>, vector<4x8xbf16>, vector<256x8xf32> -> vector<256x8xf32>
    %118 = arith.addf %111, %117 : vector<256x8xf32>
    %cst_103 = arith.constant dense<0.000000e+00> : vector<8xf32>
    %119 = vector.multi_reduction <add>, %118, %cst_103 [0] : vector<256x8xf32> to vector<8xf32>
    %120 = vector.shape_cast %119 : vector<8xf32> to vector<1x8xf32>
    %c0_104 = arith.constant 0 : index
    %c0_105 = arith.constant 0 : index
    %121 = vector.load %arg10[%c0_104, %c0_105] : memref<8x8xf32, #tpu.memory_space<vmem>>, vector<8x8xf32>
    %cst_106 = arith.constant dense<0.000000e+00> : vector<1x8xf32>
    %122 = tpu.matmul %120, %121, %cst_106 {dimension_numbers = #tpu.dot_dimension_numbers<[1], [0], [0], [1], [0, 0, 1, 1], [], []>} : vector<1x8xf32>, vector<8x8xf32>, vector<1x8xf32> -> vector<1x8xf32>
    %cst_107 = arith.constant 1.024000e+03 : f32
    %123 = vector.broadcast %cst_107 : f32 to vector<1x8xf32>
    %124 = arith.divf %122, %123 : vector<1x8xf32>
    %125 = vector.broadcast %124 : vector<1x8xf32> to vector<256x8xf32>
    %126 = arith.subf %118, %125 : vector<256x8xf32>
    %127 = arith.mulf %126, %126 : vector<256x8xf32>
    %cst_108 = arith.constant dense<0.000000e+00> : vector<8xf32>
    %128 = vector.multi_reduction <add>, %127, %cst_108 [0] : vector<256x8xf32> to vector<8xf32>
    %129 = vector.shape_cast %128 : vector<8xf32> to vector<1x8xf32>
    %c0_109 = arith.constant 0 : index
    %c0_110 = arith.constant 0 : index
    %130 = vector.load %arg10[%c0_109, %c0_110] : memref<8x8xf32, #tpu.memory_space<vmem>>, vector<8x8xf32>
    %cst_111 = arith.constant dense<0.000000e+00> : vector<1x8xf32>
    %131 = tpu.matmul %129, %130, %cst_111 {dimension_numbers = #tpu.dot_dimension_numbers<[1], [0], [0], [1], [0, 0, 1, 1], [], []>} : vector<1x8xf32>, vector<8x8xf32>, vector<1x8xf32> -> vector<1x8xf32>
    %cst_112 = arith.constant 1.024000e+03 : f32
    %132 = vector.broadcast %cst_112 : f32 to vector<1x8xf32>
    %133 = arith.divf %131, %132 : vector<1x8xf32>
    %cst_113 = arith.constant 9.99999974E-6 : f32
    %134 = vector.broadcast %cst_113 : f32 to vector<1x8xf32>
    %135 = arith.addf %133, %134 : vector<1x8xf32>
    %136 = math.rsqrt %135 : vector<1x8xf32>
    %c0_114 = arith.constant 0 : index
    %c0_115 = arith.constant 0 : index
    %137 = vector.load %arg11[%c0_114, %c0_115] : memref<1x8xf32, #tpu.memory_space<vmem>>, vector<1x8xf32>
    %138 = arith.mulf %136, %137 : vector<1x8xf32>
    %139 = vector.broadcast %138 : vector<1x8xf32> to vector<256x8xf32>
    %140 = arith.mulf %126, %139 : vector<256x8xf32>
    %c0_116 = arith.constant 0 : index
    %c0_117 = arith.constant 0 : index
    %141 = vector.load %arg12[%c0_116, %c0_117] : memref<1x8xf32, #tpu.memory_space<vmem>>, vector<1x8xf32>
    %142 = vector.broadcast %141 : vector<1x8xf32> to vector<256x8xf32>
    %143 = arith.addf %140, %142 : vector<256x8xf32>
    %cst_118 = arith.constant 5.000000e-01 : f32
    %144 = vector.broadcast %cst_118 : f32 to vector<256x8xf32>
    %145 = arith.mulf %144, %143 : vector<256x8xf32>
    %cst_119 = arith.constant 0.707106769 : f32
    %146 = vector.broadcast %cst_119 : f32 to vector<256x8xf32>
    %147 = arith.mulf %143, %146 : vector<256x8xf32>
    %148 = math.erf %147 : vector<256x8xf32>
    %cst_120 = arith.constant 1.000000e+00 : f32
    %149 = vector.broadcast %cst_120 : f32 to vector<256x8xf32>
    %150 = arith.addf %149, %148 : vector<256x8xf32>
    %151 = arith.mulf %145, %150 : vector<256x8xf32>
    %152 = vector.shape_cast %151 : vector<256x8xf32> to vector<16x16x8xf32>
    %c0_121 = arith.constant 0 : index
    %c0_122 = arith.constant 0 : index
    %153 = vector.load %arg14[%c0_121, %c0_122] : memref<1x8xf32, #tpu.memory_space<vmem>>, vector<1x8xf32>
    %cst_123 = arith.constant 0.000000e+00 : f32
    %154 = vector.broadcast %cst_123 : f32 to vector<1x18x8xf32>
    %c0_124 = arith.constant 0 : index
    %c0_125 = arith.constant 0 : index
    %c0_126 = arith.constant 0 : index
    %155 = vector.load %arg19[%c0_124, %c0_125, %c0_126] : memref<18x18x8xf32, #tpu.memory_space<vmem>>, vector<1x18x8xf32>
    tpu.vector_store %arg19[%c0_124, %c0_125, %c0_126], %154 {strides = array<i32>} : memref<18x18x8xf32, #tpu.memory_space<vmem>>, vector<1x18x8xf32>,
    %cst_127 = arith.constant 0.000000e+00 : f32
    %156 = vector.broadcast %cst_127 : f32 to vector<1x18x8xf32>
    %c17_128 = arith.constant 17 : index
    %c0_129 = arith.constant 0 : index
    %c0_130 = arith.constant 0 : index
    %157 = vector.load %arg19[%c17_128, %c0_129, %c0_130] : memref<18x18x8xf32, #tpu.memory_space<vmem>>, vector<1x18x8xf32>
    tpu.vector_store %arg19[%c17_128, %c0_129, %c0_130], %156 {strides = array<i32>} : memref<18x18x8xf32, #tpu.memory_space<vmem>>, vector<1x18x8xf32>,
    %cst_131 = arith.constant 0.000000e+00 : f32
    %158 = vector.broadcast %cst_131 : f32 to vector<16x1x8xf32>
    %c1_132 = arith.constant 1 : index
    %c0_133 = arith.constant 0 : index
    %c0_134 = arith.constant 0 : index
    %159 = vector.load %arg19[%c1_132, %c0_133, %c0_134] : memref<18x18x8xf32, #tpu.memory_space<vmem>>, vector<16x1x8xf32>
    tpu.vector_store %arg19[%c1_132, %c0_133, %c0_134], %158 {strides = array<i32>} : memref<18x18x8xf32, #tpu.memory_space<vmem>>, vector<16x1x8xf32>,
    %cst_135 = arith.constant 0.000000e+00 : f32
    %160 = vector.broadcast %cst_135 : f32 to vector<16x1x8xf32>
    %c1_136 = arith.constant 1 : index
    %c17_137 = arith.constant 17 : index
    %c0_138 = arith.constant 0 : index
    %161 = vector.load %arg19[%c1_136, %c17_137, %c0_138] : memref<18x18x8xf32, #tpu.memory_space<vmem>>, vector<16x1x8xf32>
    tpu.vector_store %arg19[%c1_136, %c17_137, %c0_138], %160 {strides = array<i32>} : memref<18x18x8xf32, #tpu.memory_space<vmem>>, vector<16x1x8xf32>,
    %c1_139 = arith.constant 1 : index
    %c1_140 = arith.constant 1 : index
    %c0_141 = arith.constant 0 : index
    %162 = vector.load %arg19[%c1_139, %c1_140, %c0_141] : memref<18x18x8xf32, #tpu.memory_space<vmem>>, vector<16x16x8xf32>
    tpu.vector_store %arg19[%c1_139, %c1_140, %c0_141], %152 {strides = array<i32>} : memref<18x18x8xf32, #tpu.memory_space<vmem>>, vector<16x16x8xf32>,
    %163 = vector.shape_cast %153 : vector<1x8xf32> to vector<1x8xf32>
    %164 = vector.broadcast %163 : vector<1x8xf32> to vector<256x8xf32>
    %c0_142 = arith.constant 0 : index
    %c0_143 = arith.constant 0 : index
    %c0_144 = arith.constant 0 : index
    %165 = vector.load %arg19[%c0_142, %c0_143, %c0_144] : memref<18x18x8xf32, #tpu.memory_space<vmem>>, vector<16x16x8xf32>
    %166 = vector.shape_cast %165 : vector<16x16x8xf32> to vector<256x8xf32>
    %167 = arith.truncf %166 : vector<256x8xf32> to vector<256x8xbf16>
    %c0_145 = arith.constant 0 : index
    %c0_146 = arith.constant 0 : index
    %c0_147 = arith.constant 0 : index
    %168 = vector.load %arg13[%c0_145, %c0_146, %c0_147] : memref<9x8x8xbf16, #tpu.memory_space<vmem>>, vector<1x8x8xbf16>
    %169 = vector.shape_cast %168 : vector<1x8x8xbf16> to vector<8x8xbf16>
    %cst_148 = arith.constant dense<0.000000e+00> : vector<256x8xf32>
    %170 = tpu.matmul %167, %169, %cst_148 {dimension_numbers = #tpu.dot_dimension_numbers<[1], [0], [0], [1], [0, 0, 1, 1], [], []>} : vector<256x8xbf16>, vector<8x8xbf16>, vector<256x8xf32> -> vector<256x8xf32>
    %171 = arith.addf %164, %170 : vector<256x8xf32>
    %c0_149 = arith.constant 0 : index
    %c1_150 = arith.constant 1 : index
    %c0_151 = arith.constant 0 : index
    %172 = vector.load %arg19[%c0_149, %c1_150, %c0_151] : memref<18x18x8xf32, #tpu.memory_space<vmem>>, vector<16x16x8xf32>
    %173 = vector.shape_cast %172 : vector<16x16x8xf32> to vector<256x8xf32>
    %174 = arith.truncf %173 : vector<256x8xf32> to vector<256x8xbf16>
    %c1_152 = arith.constant 1 : index
    %c0_153 = arith.constant 0 : index
    %c0_154 = arith.constant 0 : index
    %175 = vector.load %arg13[%c1_152, %c0_153, %c0_154] : memref<9x8x8xbf16, #tpu.memory_space<vmem>>, vector<1x8x8xbf16>
    %176 = vector.shape_cast %175 : vector<1x8x8xbf16> to vector<8x8xbf16>
    %cst_155 = arith.constant dense<0.000000e+00> : vector<256x8xf32>
    %177 = tpu.matmul %174, %176, %cst_155 {dimension_numbers = #tpu.dot_dimension_numbers<[1], [0], [0], [1], [0, 0, 1, 1], [], []>} : vector<256x8xbf16>, vector<8x8xbf16>, vector<256x8xf32> -> vector<256x8xf32>
    %178 = arith.addf %171, %177 : vector<256x8xf32>
    %c0_156 = arith.constant 0 : index
    %c2_157 = arith.constant 2 : index
    %c0_158 = arith.constant 0 : index
    %179 = vector.load %arg19[%c0_156, %c2_157, %c0_158] : memref<18x18x8xf32, #tpu.memory_space<vmem>>, vector<16x16x8xf32>
    %180 = vector.shape_cast %179 : vector<16x16x8xf32> to vector<256x8xf32>
    %181 = arith.truncf %180 : vector<256x8xf32> to vector<256x8xbf16>
    %c2_159 = arith.constant 2 : index
    %c0_160 = arith.constant 0 : index
    %c0_161 = arith.constant 0 : index
    %182 = vector.load %arg13[%c2_159, %c0_160, %c0_161] : memref<9x8x8xbf16, #tpu.memory_space<vmem>>, vector<1x8x8xbf16>
    %183 = vector.shape_cast %182 : vector<1x8x8xbf16> to vector<8x8xbf16>
    %cst_162 = arith.constant dense<0.000000e+00> : vector<256x8xf32>
    %184 = tpu.matmul %181, %183, %cst_162 {dimension_numbers = #tpu.dot_dimension_numbers<[1], [0], [0], [1], [0, 0, 1, 1], [], []>} : vector<256x8xbf16>, vector<8x8xbf16>, vector<256x8xf32> -> vector<256x8xf32>
    %185 = arith.addf %178, %184 : vector<256x8xf32>
    %c1_163 = arith.constant 1 : index
    %c0_164 = arith.constant 0 : index
    %c0_165 = arith.constant 0 : index
    %186 = vector.load %arg19[%c1_163, %c0_164, %c0_165] : memref<18x18x8xf32, #tpu.memory_space<vmem>>, vector<16x16x8xf32>
    %187 = vector.shape_cast %186 : vector<16x16x8xf32> to vector<256x8xf32>
    %188 = arith.truncf %187 : vector<256x8xf32> to vector<256x8xbf16>
    %c3_166 = arith.constant 3 : index
    %c0_167 = arith.constant 0 : index
    %c0_168 = arith.constant 0 : index
    %189 = vector.load %arg13[%c3_166, %c0_167, %c0_168] : memref<9x8x8xbf16, #tpu.memory_space<vmem>>, vector<1x8x8xbf16>
    %190 = vector.shape_cast %189 : vector<1x8x8xbf16> to vector<8x8xbf16>
    %cst_169 = arith.constant dense<0.000000e+00> : vector<256x8xf32>
    %191 = tpu.matmul %188, %190, %cst_169 {dimension_numbers = #tpu.dot_dimension_numbers<[1], [0], [0], [1], [0, 0, 1, 1], [], []>} : vector<256x8xbf16>, vector<8x8xbf16>, vector<256x8xf32> -> vector<256x8xf32>
    %192 = arith.addf %185, %191 : vector<256x8xf32>
    %c1_170 = arith.constant 1 : index
    %c1_171 = arith.constant 1 : index
    %c0_172 = arith.constant 0 : index
    %193 = vector.load %arg19[%c1_170, %c1_171, %c0_172] : memref<18x18x8xf32, #tpu.memory_space<vmem>>, vector<16x16x8xf32>
    %194 = vector.shape_cast %193 : vector<16x16x8xf32> to vector<256x8xf32>
    %195 = arith.truncf %194 : vector<256x8xf32> to vector<256x8xbf16>
    %c4_173 = arith.constant 4 : index
    %c0_174 = arith.constant 0 : index
    %c0_175 = arith.constant 0 : index
    %196 = vector.load %arg13[%c4_173, %c0_174, %c0_175] : memref<9x8x8xbf16, #tpu.memory_space<vmem>>, vector<1x8x8xbf16>
    %197 = vector.shape_cast %196 : vector<1x8x8xbf16> to vector<8x8xbf16>
    %cst_176 = arith.constant dense<0.000000e+00> : vector<256x8xf32>
    %198 = tpu.matmul %195, %197, %cst_176 {dimension_numbers = #tpu.dot_dimension_numbers<[1], [0], [0], [1], [0, 0, 1, 1], [], []>} : vector<256x8xbf16>, vector<8x8xbf16>, vector<256x8xf32> -> vector<256x8xf32>
    %199 = arith.addf %192, %198 : vector<256x8xf32>
    %c1_177 = arith.constant 1 : index
    %c2_178 = arith.constant 2 : index
    %c0_179 = arith.constant 0 : index
    %200 = vector.load %arg19[%c1_177, %c2_178, %c0_179] : memref<18x18x8xf32, #tpu.memory_space<vmem>>, vector<16x16x8xf32>
    %201 = vector.shape_cast %200 : vector<16x16x8xf32> to vector<256x8xf32>
    %202 = arith.truncf %201 : vector<256x8xf32> to vector<256x8xbf16>
    %c5_180 = arith.constant 5 : index
    %c0_181 = arith.constant 0 : index
    %c0_182 = arith.constant 0 : index
    %203 = vector.load %arg13[%c5_180, %c0_181, %c0_182] : memref<9x8x8xbf16, #tpu.memory_space<vmem>>, vector<1x8x8xbf16>
    %204 = vector.shape_cast %203 : vector<1x8x8xbf16> to vector<8x8xbf16>
    %cst_183 = arith.constant dense<0.000000e+00> : vector<256x8xf32>
    %205 = tpu.matmul %202, %204, %cst_183 {dimension_numbers = #tpu.dot_dimension_numbers<[1], [0], [0], [1], [0, 0, 1, 1], [], []>} : vector<256x8xbf16>, vector<8x8xbf16>, vector<256x8xf32> -> vector<256x8xf32>
    %206 = arith.addf %199, %205 : vector<256x8xf32>
    %c2_184 = arith.constant 2 : index
    %c0_185 = arith.constant 0 : index
    %c0_186 = arith.constant 0 : index
    %207 = vector.load %arg19[%c2_184, %c0_185, %c0_186] : memref<18x18x8xf32, #tpu.memory_space<vmem>>, vector<16x16x8xf32>
    %208 = vector.shape_cast %207 : vector<16x16x8xf32> to vector<256x8xf32>
    %209 = arith.truncf %208 : vector<256x8xf32> to vector<256x8xbf16>
    %c6_187 = arith.constant 6 : index
    %c0_188 = arith.constant 0 : index
    %c0_189 = arith.constant 0 : index
    %210 = vector.load %arg13[%c6_187, %c0_188, %c0_189] : memref<9x8x8xbf16, #tpu.memory_space<vmem>>, vector<1x8x8xbf16>
    %211 = vector.shape_cast %210 : vector<1x8x8xbf16> to vector<8x8xbf16>
    %cst_190 = arith.constant dense<0.000000e+00> : vector<256x8xf32>
    %212 = tpu.matmul %209, %211, %cst_190 {dimension_numbers = #tpu.dot_dimension_numbers<[1], [0], [0], [1], [0, 0, 1, 1], [], []>} : vector<256x8xbf16>, vector<8x8xbf16>, vector<256x8xf32> -> vector<256x8xf32>
    %213 = arith.addf %206, %212 : vector<256x8xf32>
    %c2_191 = arith.constant 2 : index
    %c1_192 = arith.constant 1 : index
    %c0_193 = arith.constant 0 : index
    %214 = vector.load %arg19[%c2_191, %c1_192, %c0_193] : memref<18x18x8xf32, #tpu.memory_space<vmem>>, vector<16x16x8xf32>
    %215 = vector.shape_cast %214 : vector<16x16x8xf32> to vector<256x8xf32>
    %216 = arith.truncf %215 : vector<256x8xf32> to vector<256x8xbf16>
    %c7_194 = arith.constant 7 : index
    %c0_195 = arith.constant 0 : index
    %c0_196 = arith.constant 0 : index
    %217 = vector.load %arg13[%c7_194, %c0_195, %c0_196] : memref<9x8x8xbf16, #tpu.memory_space<vmem>>, vector<1x8x8xbf16>
    %218 = vector.shape_cast %217 : vector<1x8x8xbf16> to vector<8x8xbf16>
    %cst_197 = arith.constant dense<0.000000e+00> : vector<256x8xf32>
    %219 = tpu.matmul %216, %218, %cst_197 {dimension_numbers = #tpu.dot_dimension_numbers<[1], [0], [0], [1], [0, 0, 1, 1], [], []>} : vector<256x8xbf16>, vector<8x8xbf16>, vector<256x8xf32> -> vector<256x8xf32>
    %220 = arith.addf %213, %219 : vector<256x8xf32>
    %c2_198 = arith.constant 2 : index
    %c2_199 = arith.constant 2 : index
    %c0_200 = arith.constant 0 : index
    %221 = vector.load %arg19[%c2_198, %c2_199, %c0_200] : memref<18x18x8xf32, #tpu.memory_space<vmem>>, vector<16x16x8xf32>
    %222 = vector.shape_cast %221 : vector<16x16x8xf32> to vector<256x8xf32>
    %223 = arith.truncf %222 : vector<256x8xf32> to vector<256x8xbf16>
    %c8_201 = arith.constant 8 : index
    %c0_202 = arith.constant 0 : index
    %c0_203 = arith.constant 0 : index
    %224 = vector.load %arg13[%c8_201, %c0_202, %c0_203] : memref<9x8x8xbf16, #tpu.memory_space<vmem>>, vector<1x8x8xbf16>
    %225 = vector.shape_cast %224 : vector<1x8x8xbf16> to vector<8x8xbf16>
    %cst_204 = arith.constant dense<0.000000e+00> : vector<256x8xf32>
    %226 = tpu.matmul %223, %225, %cst_204 {dimension_numbers = #tpu.dot_dimension_numbers<[1], [0], [0], [1], [0, 0, 1, 1], [], []>} : vector<256x8xbf16>, vector<8x8xbf16>, vector<256x8xf32> -> vector<256x8xf32>
    %227 = arith.addf %220, %226 : vector<256x8xf32>
    %228 = arith.truncf %2 : vector<256x4xf32> to vector<256x4xbf16>
    %c0_205 = arith.constant 0 : index
    %c0_206 = arith.constant 0 : index
    %229 = vector.load %arg15[%c0_205, %c0_206] : memref<4x8xbf16, #tpu.memory_space<vmem>>, vector<4x8xbf16>
    %cst_207 = arith.constant dense<0.000000e+00> : vector<256x8xf32>
    %230 = tpu.matmul %228, %229, %cst_207 {dimension_numbers = #tpu.dot_dimension_numbers<[1], [0], [0], [1], [0, 0, 1, 1], [], []>} : vector<256x4xbf16>, vector<4x8xbf16>, vector<256x8xf32> -> vector<256x8xf32>
    %c0_208 = arith.constant 0 : index
    %c0_209 = arith.constant 0 : index
    %231 = vector.load %arg16[%c0_208, %c0_209] : memref<1x8xf32, #tpu.memory_space<vmem>>, vector<1x8xf32>
    %232 = vector.broadcast %231 : vector<1x8xf32> to vector<256x8xf32>
    %233 = arith.addf %230, %232 : vector<256x8xf32>
    %234 = arith.addf %233, %227 : vector<256x8xf32>
    %235 = vector.shape_cast %234 : vector<256x8xf32> to vector<16x16x8xf32>
    %c0_210 = arith.constant 0 : index
    %c0_211 = arith.constant 0 : index
    %c0_212 = arith.constant 0 : index
    %c0_213 = arith.constant 0 : index
    %236 = vector.load %arg17[%c0_210, %c0_211, %c0_212, %c0_213] : memref<1x16x16x8xf32, #tpu.memory_space<vmem>>, vector<1x16x16x8xf32>
    %237 = vector.shape_cast %236 : vector<1x16x16x8xf32> to vector<16x16x8xf32>
    %238 = vector.shape_cast %235 : vector<16x16x8xf32> to vector<1x16x16x8xf32>
    tpu.vector_store %arg17[%c0_210, %c0_211, %c0_212, %c0_213], %238 {strides = array<i32>} : memref<1x16x16x8xf32, #tpu.memory_space<vmem>>, vector<1x16x16x8xf32>,
    return
  }
  func.func @transform_0(%arg0: i32) -> (i32, i32, i32, i32) {
    %c0_i32 = arith.constant 0 : i32
    %c0_i32_0 = arith.constant 0 : i32
    %c0_i32_1 = arith.constant 0 : i32
    %c0_i32_2 = arith.constant 0 : i32
    return %arg0, %c0_i32, %c0_i32_0, %c0_i32_1 : i32, i32, i32, i32
  }
  func.func @transform_1(%arg0: i32) -> (i32, i32, i32) {
    %c0_i32 = arith.constant 0 : i32
    %c0_i32_0 = arith.constant 0 : i32
    %c0_i32_1 = arith.constant 0 : i32
    return %arg0, %c0_i32, %c0_i32_0 : i32, i32, i32
  }
  func.func @transform_2(%arg0: i32) -> (i32, i32) {
    %c0_i32 = arith.constant 0 : i32
    %c0_i32_0 = arith.constant 0 : i32
    %c0_i32_1 = arith.constant 0 : i32
    return %c0_i32, %c0_i32_0 : i32, i32
  }
  func.func @transform_3(%arg0: i32) -> (i32, i32) {
    %c0_i32 = arith.constant 0 : i32
    %c0_i32_0 = arith.constant 0 : i32
    %c0_i32_1 = arith.constant 0 : i32
    return %c0_i32, %c0_i32_0 : i32, i32
  }
  func.func @transform_4(%arg0: i32) -> (i32, i32) {
    %c0_i32 = arith.constant 0 : i32
    %c0_i32_0 = arith.constant 0 : i32
    %c0_i32_1 = arith.constant 0 : i32
    return %c0_i32, %c0_i32_0 : i32, i32
  }
  func.func @transform_5(%arg0: i32) -> (i32, i32, i32) {
    %c0_i32 = arith.constant 0 : i32
    %c0_i32_0 = arith.constant 0 : i32
    %c0_i32_1 = arith.constant 0 : i32
    %c0_i32_2 = arith.constant 0 : i32
    return %c0_i32, %c0_i32_0, %c0_i32_1 : i32, i32, i32
  }
  func.func @transform_6(%arg0: i32) -> (i32, i32) {
    %c0_i32 = arith.constant 0 : i32
    %c0_i32_0 = arith.constant 0 : i32
    %c0_i32_1 = arith.constant 0 : i32
    return %c0_i32, %c0_i32_0 : i32, i32
  }
  func.func @transform_7(%arg0: i32) -> (i32, i32) {
    %c0_i32 = arith.constant 0 : i32
    %c0_i32_0 = arith.constant 0 : i32
    %c0_i32_1 = arith.constant 0 : i32
    return %c0_i32, %c0_i32_0 : i32, i32
  }
  func.func @transform_8(%arg0: i32) -> (i32, i32) {
    %c0_i32 = arith.constant 0 : i32
    %c0_i32_0 = arith.constant 0 : i32
    %c0_i32_1 = arith.constant 0 : i32
    return %c0_i32, %c0_i32_0 : i32, i32
  }
  func.func @transform_9(%arg0: i32) -> (i32, i32) {
    %c0_i32 = arith.constant 0 : i32
    %c0_i32_0 = arith.constant 0 : i32
    %c0_i32_1 = arith.constant 0 : i32
    return %c0_i32, %c0_i32_0 : i32, i32
  }
  func.func @transform_10(%arg0: i32) -> (i32, i32) {
    %c0_i32 = arith.constant 0 : i32
    %c0_i32_0 = arith.constant 0 : i32
    %c0_i32_1 = arith.constant 0 : i32
    return %c0_i32, %c0_i32_0 : i32, i32
  }
  func.func @transform_11(%arg0: i32) -> (i32, i32) {
    %c0_i32 = arith.constant 0 : i32
    %c0_i32_0 = arith.constant 0 : i32
    %c0_i32_1 = arith.constant 0 : i32
    return %c0_i32, %c0_i32_0 : i32, i32
  }
  func.func @transform_12(%arg0: i32) -> (i32, i32, i32) {
    %c0_i32 = arith.constant 0 : i32
    %c0_i32_0 = arith.constant 0 : i32
    %c0_i32_1 = arith.constant 0 : i32
    %c0_i32_2 = arith.constant 0 : i32
    return %c0_i32, %c0_i32_0, %c0_i32_1 : i32, i32, i32
  }
  func.func @transform_13(%arg0: i32) -> (i32, i32) {
    %c0_i32 = arith.constant 0 : i32
    %c0_i32_0 = arith.constant 0 : i32
    %c0_i32_1 = arith.constant 0 : i32
    return %c0_i32, %c0_i32_0 : i32, i32
  }
  func.func @transform_14(%arg0: i32) -> (i32, i32) {
    %c0_i32 = arith.constant 0 : i32
    %c0_i32_0 = arith.constant 0 : i32
    %c0_i32_1 = arith.constant 0 : i32
    return %c0_i32, %c0_i32_0 : i32, i32
  }
  func.func @transform_15(%arg0: i32) -> (i32, i32) {
    %c0_i32 = arith.constant 0 : i32
    %c0_i32_0 = arith.constant 0 : i32
    %c0_i32_1 = arith.constant 0 : i32
    return %c0_i32, %c0_i32_0 : i32, i32
  }
  func.func @transform_16(%arg0: i32) -> (i32, i32, i32, i32) {
    %c0_i32 = arith.constant 0 : i32
    %c0_i32_0 = arith.constant 0 : i32
    %c0_i32_1 = arith.constant 0 : i32
    %c0_i32_2 = arith.constant 0 : i32
    return %arg0, %c0_i32, %c0_i32_0, %c0_i32_1 : i32, i32, i32, i32
  }
}

</mosaic_0001>

<bundles_post_ra>
// kernel: tpu_custom_call.1
= control target key start
LH: loop header
LB: loop body
LE: loop exit
PB: predicated region body
PF: predicated region fallthrough
CT: control target
= control target key end

     0   :  { %s9946_s21 = smov 0   ;;  %s12471_s0 = inlined_call_operand.vmem [shape: f32[2,16,16,4], index: 0, kind: input, shape index: {}]   ;;  %s12472_s1 = inlined_call_operand.vmem [shape: f32[2,1,6], index: 1, kind: input, shape index: {}]   ;;  %s12473_s2 = inlined_call_operand.vmem [shape: f32[4,4], index: 2, kind: input, shape index: {}]   ;;  %s12474_s3 = inlined_call_operand.vmem [shape: f32[1,4], index: 3, kind: input, shape index: {}]   ;;  %s12475_s4 = inlined_call_operand.vmem [shape: f32[1,4], index: 4, kind: input, shape index: {}]   ;;  %s12476_s5 = inlined_call_operand.vmem [shape: bf16[9,4,8], index: 5, kind: input, shape index: {}]   ;;  %s12477_s6 = inlined_call_operand.vmem [shape: f32[1,8], index: 6, kind: input, shape index: {}]   ;;  %s12478_s7 = inlined_call_operand.vmem [shape: f32[6,8], index: 7, kind: input, shape index: {}]   ;;  %s12479_s8 = inlined_call_operand.vmem [shape: f32[1,8], index: 8, kind: input, shape index: {}]   ;;  %s12480_s9 = inlined_call_operand.vmem [shape: f32[8,8], index: 9, kind: input, shape index: {}]   ;;  %s12481_s10 = inlined_call_operand.vmem [shape: f32[1,8], index: 10, kind: input, shape index: {}]   ;;  %s12482_s11 = inlined_call_operand.vmem [shape: f32[1,8], index: 11, kind: input, shape index: {}]   ;;  %s12483_s12 = inlined_call_operand.vmem [shape: bf16[9,8,8], index: 12, kind: input, shape index: {}]   ;;  %s12484_s13 = inlined_call_operand.vmem [shape: f32[1,8], index: 13, kind: input, shape index: {}]   ;;  %s12485_s14 = inlined_call_operand.vmem [shape: bf16[4,8], index: 14, kind: input, shape index: {}]   ;;  %s12486_s15 = inlined_call_operand.vmem [shape: f32[1,8], index: 15, kind: input, shape index: {}]   ;;  %s12487_s16 = inlined_call_operand.vmem [shape: f32[2,16,16,8], index: 16, kind: output, shape index: {}]  }
   0x1   :  { %12488 = sst [smem:[#allocation6_spill]] %s12471_s0 }
   0x2 LB: > { %s7666_s22 = sadd.s32 4294967295, %s9857_s21   ;;  %p7670_p0 = scmp.ge.s32.totalorder %s9857_s21, 1  ;;  %s9857_s21 = sphi %s9946_s21, %s26_s21  }
   0x3   : > { %p470_p1 = scmp.lt.s32.totalorder %s9857_s21, 3 }
   0x5   : > { %p471_p2 = pnand %p7670_p0, %p470_p1 }
   0x7   : > { %474 = sbr.rel (%p471_p2) target bundleno = 2862 (0xb2e), region = 84 }
   0xe   : > { %v571_v0 = vld [vmem:[%s12478_s7] sm:$0x3f]  ;;  %vm577_vm0 = vcmask 1045504   ;;  %p523_p3 = scmp.lt.s32.totalorder %s7666_s22, 1  ;;  %v9859_v1 = vmov 0.0   ;;  %vm9860_vm1 = vmmov 0  }
   0xf   : > { %8344 = vmatprep.subr.mxu1 %v9859_v1  ;;  %8346 = vmatprep.mubr.msk.f32.mxu1 %vm9860_vm1, %v9859_v1  ;;  %vm652_vm2 = vcmask 31744   ;;  %v722_v2 = vld [vmem:[%s12473_s2] sm:$0xf]  ;;  %vm726_vm3 = vcmask 1043456   ;;  %vm573_vm4 = vcmask 48128   ;;  %s12489_s18 = sld [smem:[#allocation6_spill]] }
  0x10   : > { %8345 = vmatpush3.msk.msra.mxu1 %vm577_vm0, %v571_v0  ;;  %s12495_s22 = smov (!%p523_p3, %s7666_s22), 1  ;;  %1252 = vst.msk [vmem:[#allocation2] sm:$0xff] %vm652_vm2, %v9859_v1  ;;  %1253 = vst.msk [vmem:[#allocation2 + $0x8] sm:$0xff] %vm652_vm2, %v9859_v1  ;;  %8354 = vmatprep.subr.mxu0 %v9859_v1  ;;  %vm1429_vm5 = vcmask 1041408   ;;  %vm1261_vm6 = vcmask 24576   ;;  %vm1254_vm7 = vcmask 25600  }
  0x11   : > { %1257 = vst.msk [vmem:[#allocation2 + $0x198] sm:$0xff] %vm652_vm2, %v9859_v1  ;;  %1258 = vst.msk [vmem:[#allocation2 + $0x1a0] sm:$0xff] %vm652_vm2, %v9859_v1  ;;  %8349 = vmatprep.subr.mxu1 %v9859_v1  ;;  %8355 = vmatpush3.msk.msra.mxu0 %vm726_vm3, %v722_v2  ;;  %s8009_s27 = sshll.u32 %s12495_s22, 8  ;;  %s530_s30 = scalar_lea.vmem %s12472_s1, %s12495_s22  ;;  %vm3979_vm8 = vcmask 64512   ;;  %vm4585_vm9 = vcmask 57344   ;;  %vm4578_vm10 = vcmask 58368  }
  0x12   : > { %8356 = vmatprep.mubr.msk.f32.mxu0 %vm9860_vm1, %v9859_v1  ;;  %8665 = vmatprep.subr.mxu0 %v9859_v1  ;;  %v570_v3 = vld [vmem:[%s530_s30] sm:$0x1]  ;;  %1262 = vst.msk [vmem:[#allocation2 + $0x18] sm:$0x1] %vm1261_vm6, %v9859_v1  ;;  %1263 = vst.msk [vmem:[#allocation2 + $0x30] sm:$0x1] %vm1261_vm6, %v9859_v1  ;;  %s12351_s24 = scalar_lea.vmem %s12487_s16, %s8009_s27 }
  0x13   : > { %8347 = vmatmul.mubr.msk.f32.vlgmr.msra.gmra.mrb[0].mxu1 %vm573_vm4, %v570_v3  ;;  %1264 = vst.msk [vmem:[#allocation2 + $0x48] sm:$0x1] %vm1261_vm6, %v9859_v1  ;;  %1265 = vst.msk [vmem:[#allocation2 + $0x60] sm:$0x1] %vm1261_vm6, %v9859_v1 }
  0x14   : > { %8350 = vmatpush3.msk.msra.mxu1 %vm726_vm3, %v722_v2  ;;  %8351 = vmatprep.mubr.msk.f32.mxu1 %vm9860_vm1, %v9859_v1  ;;  %1266 = vst.msk [vmem:[#allocation2 + $0x78] sm:$0x1] %vm1261_vm6, %v9859_v1  ;;  %1267 = vst.msk [vmem:[#allocation2 + $0x90] sm:$0x1] %vm1261_vm6, %v9859_v1 }
  0x15   : > { %s9989_s19 = scalar_lea.vmem %s12489_s18, %s8009_s27  ;;  %1268 = vst.msk [vmem:[#allocation2 + $0xa8] sm:$0x1] %vm1261_vm6, %v9859_v1  ;;  %1269 = vst.msk [vmem:[#allocation2 + $0xc0] sm:$0x1] %vm1261_vm6, %v9859_v1 }
  0x16   : > { %v9992_v4 = vld [vmem:[%s9989_s19] sm:$0xff]  ;;  %v9995_v5 = vld [vmem:[%s9989_s19 + $0x8] sm:$0xff]  ;;  %v9998_v6 = vld [vmem:[%s9989_s19 + $0x10] sm:$0xff]  ;;  %1270 = vst.msk [vmem:[#allocation2 + $0xd8] sm:$0x1] %vm1261_vm6, %v9859_v1 }
  0x17   : > { %v10004_v7 = vld [vmem:[%s9989_s19 + $0x18] sm:$0xff]  ;;  %v653_v8 = vsel %vm652_vm2, %v9992_v4, 0.0  ;;  %v654_v9 = vsel %vm652_vm2, %v9995_v5, 0.0  ;;  %v656_v10 = vsel %vm652_vm2, %v9998_v6, 0.0  ;;  %v10013_v11 = vld [vmem:[%s9989_s19 + $0x20] sm:$0xff]  ;;  %v10018_v14 = vld [vmem:[%s9989_s19 + $0x28] sm:$0xff] }
  0x18   : > { %v655_v12 = vadd.f32 %v654_v9, %v653_v8  ;;  %v658_v13 = vsel %vm652_vm2, %v10004_v7, 0.0  ;;  %v660_v16 = vsel %vm652_vm2, %v10013_v11, 0.0  ;;  %v10023_v17 = vld [vmem:[%s9989_s19 + $0x30] sm:$0xff]  ;;  %v662_v19 = vsel %vm652_vm2, %v10018_v14, 0.0  ;;  %v10028_v20 = vld [vmem:[%s9989_s19 + $0x38] sm:$0xff]  ;;  %v10033_v23 = vld [vmem:[%s9989_s19 + $0x40] sm:$0xff] }
  0x19   : > { %v664_v22 = vsel %vm652_vm2, %v10023_v17, 0.0  ;;  %v666_v25 = vsel %vm652_vm2, %v10028_v20, 0.0  ;;  %v10038_v26 = vld [vmem:[%s9989_s19 + $0x48] sm:$0xff]  ;;  %v668_v28 = vsel %vm652_vm2, %v10033_v23, 0.0  ;;  %v10043_v29 = vld [vmem:[%s9989_s19 + $0x50] sm:$0xff]  ;;  %v10048_v32 = vld [vmem:[%s9989_s19 + $0x58] sm:$0xff] }
  0x1a   : > { %v657_v15 = vadd.f32 %v656_v10, %v655_v12  ;;  %v670_v31 = vsel %vm652_vm2, %v10038_v26, 0.0  ;;  %v672_v34 = vsel %vm652_vm2, %v10043_v29, 0.0  ;;  %v10053_v35 = vld [vmem:[%s9989_s19 + $0x60] sm:$0xff]  ;;  %v674_v37 = vsel %vm652_vm2, %v10048_v32, 0.0  ;;  %v10058_v38 = vld [vmem:[%s9989_s19 + $0x68] sm:$0xff]  ;;  %v10063_v41 = vld [vmem:[%s9989_s19 + $0x70] sm:$0xff] }
  0x1b   : > { %v676_v40 = vsel %vm652_vm2, %v10053_v35, 0.0  ;;  %v678_v43 = vsel %vm652_vm2, %v10058_v38, 0.0  ;;  %v10068_v44 = vld [vmem:[%s9989_s19 + $0x78] sm:$0xff]  ;;  %v680_v46 = vsel %vm652_vm2, %v10063_v41, 0.0  ;;  %v10073_v47 = vld [vmem:[%s9989_s19 + $0x80] sm:$0xff]  ;;  %v10078_v50 = vld [vmem:[%s9989_s19 + $0x88] sm:$0xff] }
  0x1c   : > { %v659_v18 = vadd.f32 %v658_v13, %v657_v15  ;;  %v682_v49 = vsel %vm652_vm2, %v10068_v44, 0.0  ;;  %v684_v52 = vsel %vm652_vm2, %v10073_v47, 0.0  ;;  %v10083_v53 = vld [vmem:[%s9989_s19 + $0x90] sm:$0xff]  ;;  %v686_v55 = vsel %vm652_vm2, %v10078_v50, 0.0  ;;  %v10088_v56 = vld [vmem:[%s9989_s19 + $0x98] sm:$0xff]  ;;  %v10093_v59 = vld [vmem:[%s9989_s19 + $0xa0] sm:$0xff] }
  0x1d   : > { %v688_v58 = vsel %vm652_vm2, %v10083_v53, 0.0  ;;  %v690_v61 = vsel %vm652_vm2, %v10088_v56, 0.0  ;;  %v10098_v62 = vld [vmem:[%s9989_s19 + $0xa8] sm:$0xff]  ;;  %v692_v0 = vsel %vm652_vm2, %v10093_v59, 0.0  ;;  %v10103_v2 = vld [vmem:[%s9989_s19 + $0xb0] sm:$0xff]  ;;  %v10108_v9 = vld [vmem:[%s9989_s19 + $0xb8] sm:$0xff] }
  0x1e   : > { %v661_v21 = vadd.f32 %v660_v16, %v659_v18  ;;  %v694_v8 = vsel %vm652_vm2, %v10098_v62, 0.0  ;;  %v696_v12 = vsel %vm652_vm2, %v10103_v2, 0.0  ;;  %v10113_v13 = vld [vmem:[%s9989_s19 + $0xc0] sm:$0xff]  ;;  %v698_v16 = vsel %vm652_vm2, %v10108_v9, 0.0  ;;  %v10118_v18 = vld [vmem:[%s9989_s19 + $0xc8] sm:$0xff]  ;;  %4576 = vst.msk [vmem:[#allocation3] sm:$0xff] %vm3979_vm8, %v9859_v1 }
  0x1f   : > { %1271 = vst.msk [vmem:[#allocation2 + $0xf0] sm:$0x1] %vm1261_vm6, %v9859_v1  ;;  %1272 = vst.msk [vmem:[#allocation2 + $0x108] sm:$0x1] %vm1261_vm6, %v9859_v1 }
  0x20   : > { %v663_v24 = vadd.f32 %v662_v19, %v661_v21  ;;  %v700_v21 = vsel %vm652_vm2, %v10113_v13, 0.0  ;;  %1273 = vst.msk [vmem:[#allocation2 + $0x120] sm:$0x1] %vm1261_vm6, %v9859_v1  ;;  %1274 = vst.msk [vmem:[#allocation2 + $0x138] sm:$0x1] %vm1261_vm6, %v9859_v1 }
  0x21   : > { %1275 = vst.msk [vmem:[#allocation2 + $0x150] sm:$0x1] %vm1261_vm6, %v9859_v1  ;;  %1276 = vst.msk [vmem:[#allocation2 + $0x168] sm:$0x1] %vm1261_vm6, %v9859_v1 }
  0x22   : > { %v665_v27 = vadd.f32 %v664_v22, %v663_v24  ;;  %v10123_v22 = vld [vmem:[%s9989_s19 + $0xd0] sm:$0xff]  ;;  %1277 = vst.msk [vmem:[#allocation2 + $0x180] sm:$0x1] %vm1261_vm6, %v9859_v1  ;;  %1278 = vst.msk [vmem:[#allocation2 + $0x29] sm:$0x1] %vm1261_vm6, %v9859_v1 }
  0x23   : > { %1279 = vst.msk [vmem:[#allocation2 + $0x41] sm:$0x1] %vm1261_vm6, %v9859_v1  ;;  %1280 = vst.msk [vmem:[#allocation2 + $0x59] sm:$0x1] %vm1261_vm6, %v9859_v1 }
  0x24   : > { %v667_v30 = vadd.f32 %v666_v25, %v665_v27  ;;  %v702_v25 = vsel %vm652_vm2, %v10118_v18, 0.0  ;;  %v10128_v27 = vld [vmem:[%s9989_s19 + $0xd8] sm:$0xff]  ;;  %1281 = vst.msk [vmem:[#allocation2 + $0x71] sm:$0x1] %vm1261_vm6, %v9859_v1  ;;  %1282 = vst.msk [vmem:[#allocation2 + $0x89] sm:$0x1] %vm1261_vm6, %v9859_v1 }
  0x25   : > { %1283 = vst.msk [vmem:[#allocation2 + $0xa1] sm:$0x1] %vm1261_vm6, %v9859_v1  ;;  %1284 = vst.msk [vmem:[#allocation2 + $0xb9] sm:$0x1] %vm1261_vm6, %v9859_v1 }
  0x26   : > { %v669_v33 = vadd.f32 %v668_v28, %v667_v30  ;;  %v704_v30 = vsel %vm652_vm2, %v10123_v22, 0.0  ;;  %1285 = vst.msk [vmem:[#allocation2 + $0xd1] sm:$0x1] %vm1261_vm6, %v9859_v1  ;;  %1286 = vst.msk [vmem:[#allocation2 + $0xe9] sm:$0x1] %vm1261_vm6, %v9859_v1 }
  0x27   : > { %1287 = vst.msk [vmem:[#allocation2 + $0x101] sm:$0x1] %vm1261_vm6, %v9859_v1  ;;  %1288 = vst.msk [vmem:[#allocation2 + $0x119] sm:$0x1] %vm1261_vm6, %v9859_v1 }
  0x28   : > { %v671_v36 = vadd.f32 %v670_v31, %v669_v33  ;;  %v10133_v31 = vld [vmem:[%s9989_s19 + $0xe0] sm:$0xff]  ;;  %1289 = vst.msk [vmem:[#allocation2 + $0x131] sm:$0x1] %vm1261_vm6, %v9859_v1  ;;  %1290 = vst.msk [vmem:[#allocation2 + $0x149] sm:$0x1] %vm1261_vm6, %v9859_v1 }
  0x29   : > { %1291 = vst.msk [vmem:[#allocation2 + $0x161] sm:$0x1] %vm1261_vm6, %v9859_v1  ;;  %1292 = vst.msk [vmem:[#allocation2 + $0x179] sm:$0x1] %vm1261_vm6, %v9859_v1 }
  0x2a   : > { %v673_v39 = vadd.f32 %v672_v34, %v671_v36  ;;  %v706_v34 = vsel %vm652_vm2, %v10128_v27, 0.0  ;;  %v10138_v36 = vld [vmem:[%s9989_s19 + $0xe8] sm:$0xff]  ;;  %1293 = vst.msk [vmem:[#allocation2 + $0x191] sm:$0x1] %vm1261_vm6, %v9859_v1 }
  0x2b   : > { %1255 = vst.msk [vmem:[#allocation2 + $0x10] sm:$0x3] %vm1254_vm7, %v9859_v1  ;;  %1259 = vst.msk [vmem:[#allocation2 + $0x1a8] sm:$0x3] %vm1254_vm7, %v9859_v1 }
  0x2c   : > { %v675_v42 = vadd.f32 %v674_v37, %v673_v39  ;;  %v708_v39 = vsel %vm652_vm2, %v10133_v31, 0.0  ;;  %4577 = vst.msk [vmem:[#allocation3 + $0x8] sm:$0xff] %vm3979_vm8, %v9859_v1  ;;  %4581 = vst.msk [vmem:[#allocation3 + $0x198] sm:$0xff] %vm3979_vm8, %v9859_v1 }
  0x2d   : > { %4582 = vst.msk [vmem:[#allocation3 + $0x1a0] sm:$0xff] %vm3979_vm8, %v9859_v1 }
  0x2e   : > { %v677_v45 = vadd.f32 %v676_v40, %v675_v42  ;;  %v10143_v40 = vld [vmem:[%s9989_s19 + $0xf0] sm:$0xff]  ;;  %4586 = vst.msk [vmem:[#allocation3 + $0x18] sm:$0x1] %vm4585_vm9, %v9859_v1  ;;  %4587 = vst.msk [vmem:[#allocation3 + $0x30] sm:$0x1] %vm4585_vm9, %v9859_v1 }
  0x2f   : > { %4588 = vst.msk [vmem:[#allocation3 + $0x48] sm:$0x1] %vm4585_vm9, %v9859_v1  ;;  %4589 = vst.msk [vmem:[#allocation3 + $0x60] sm:$0x1] %vm4585_vm9, %v9859_v1 }
  0x30   : > { %v679_v48 = vadd.f32 %v678_v43, %v677_v45  ;;  %v710_v43 = vsel %vm652_vm2, %v10138_v36, 0.0  ;;  %v10148_v45 = vld [vmem:[%s9989_s19 + $0xf8] sm:$0xff]  ;;  %4590 = vst.msk [vmem:[#allocation3 + $0x78] sm:$0x1] %vm4585_vm9, %v9859_v1  ;;  %4591 = vst.msk [vmem:[#allocation3 + $0x90] sm:$0x1] %vm4585_vm9, %v9859_v1 }
  0x31   : > { %4592 = vst.msk [vmem:[#allocation3 + $0xa8] sm:$0x1] %vm4585_vm9, %v9859_v1  ;;  %4593 = vst.msk [vmem:[#allocation3 + $0xc0] sm:$0x1] %vm4585_vm9, %v9859_v1 }
  0x32   : > { %v681_v51 = vadd.f32 %v680_v46, %v679_v48  ;;  %v712_v48 = vsel %vm652_vm2, %v10143_v40, 0.0  ;;  %4594 = vst.msk [vmem:[#allocation3 + $0xd8] sm:$0x1] %vm4585_vm9, %v9859_v1  ;;  %4595 = vst.msk [vmem:[#allocation3 + $0xf0] sm:$0x1] %vm4585_vm9, %v9859_v1 }
  0x33   : > { %4596 = vst.msk [vmem:[#allocation3 + $0x108] sm:$0x1] %vm4585_vm9, %v9859_v1  ;;  %4597 = vst.msk [vmem:[#allocation3 + $0x120] sm:$0x1] %vm4585_vm9, %v9859_v1 }
  0x34   : > { %v683_v54 = vadd.f32 %v682_v49, %v681_v51  ;;  %v714_v51 = vsel %vm652_vm2, %v10148_v45, 0.0  ;;  %4598 = vst.msk [vmem:[#allocation3 + $0x138] sm:$0x1] %vm4585_vm9, %v9859_v1  ;;  %4599 = vst.msk [vmem:[#allocation3 + $0x150] sm:$0x1] %vm4585_vm9, %v9859_v1 }
  0x35   : > { %4600 = vst.msk [vmem:[#allocation3 + $0x168] sm:$0x1] %vm4585_vm9, %v9859_v1  ;;  %4601 = vst.msk [vmem:[#allocation3 + $0x180] sm:$0x1] %vm4585_vm9, %v9859_v1 }
  0x36   : > { %v685_v57 = vadd.f32 %v684_v52, %v683_v54  ;;  %4602 = vst.msk [vmem:[#allocation3 + $0x29] sm:$0x1] %vm4585_vm9, %v9859_v1  ;;  %4603 = vst.msk [vmem:[#allocation3 + $0x41] sm:$0x1] %vm4585_vm9, %v9859_v1 }
  0x37   : > { %4604 = vst.msk [vmem:[#allocation3 + $0x59] sm:$0x1] %vm4585_vm9, %v9859_v1  ;;  %4605 = vst.msk [vmem:[#allocation3 + $0x71] sm:$0x1] %vm4585_vm9, %v9859_v1 }
  0x38   : > { %v687_v60 = vadd.f32 %v686_v55, %v685_v57  ;;  %4606 = vst.msk [vmem:[#allocation3 + $0x89] sm:$0x1] %vm4585_vm9, %v9859_v1  ;;  %4607 = vst.msk [vmem:[#allocation3 + $0xa1] sm:$0x1] %vm4585_vm9, %v9859_v1 }
  0x39   : > { %4608 = vst.msk [vmem:[#allocation3 + $0xb9] sm:$0x1] %vm4585_vm9, %v9859_v1  ;;  %4609 = vst.msk [vmem:[#allocation3 + $0xd1] sm:$0x1] %vm4585_vm9, %v9859_v1 }
  0x3a   : > { %v689_v63 = vadd.f32 %v688_v58, %v687_v60  ;;  %4610 = vst.msk [vmem:[#allocation3 + $0xe9] sm:$0x1] %vm4585_vm9, %v9859_v1  ;;  %4611 = vst.msk [vmem:[#allocation3 + $0x101] sm:$0x1] %vm4585_vm9, %v9859_v1 }
  0x3b   : > { %4612 = vst.msk [vmem:[#allocation3 + $0x119] sm:$0x1] %vm4585_vm9, %v9859_v1  ;;  %4613 = vst.msk [vmem:[#allocation3 + $0x131] sm:$0x1] %vm4585_vm9, %v9859_v1 }
  0x3c   : > { %v691_v3 = vadd.f32 %v690_v61, %v689_v63  ;;  %4614 = vst.msk [vmem:[#allocation3 + $0x149] sm:$0x1] %vm4585_vm9, %v9859_v1  ;;  %4615 = vst.msk [vmem:[#allocation3 + $0x161] sm:$0x1] %vm4585_vm9, %v9859_v1 }
  0x3d   : > { %4616 = vst.msk [vmem:[#allocation3 + $0x179] sm:$0x1] %vm4585_vm9, %v9859_v1  ;;  %4617 = vst.msk [vmem:[#allocation3 + $0x191] sm:$0x1] %vm4585_vm9, %v9859_v1 }
  0x3e   : > { %v693_v10 = vadd.f32 %v692_v0, %v691_v3  ;;  %4579 = vst.msk [vmem:[#allocation3 + $0x10] sm:$0x3] %vm4578_vm10, %v9859_v1  ;;  %4583 = vst.msk [vmem:[#allocation3 + $0x1a8] sm:$0x3] %vm4578_vm10, %v9859_v1 }
  0x40   : > { %v695_v15 = vadd.f32 %v694_v8, %v693_v10  ;;  %v802_v8 = vlaneseq }
  0x42   : > { %v697_v19 = vadd.f32 %v696_v12, %v695_v15  ;;  %v803_v15 = vshrl.u32 %v802_v8, 7 }
  0x44   : > { %v699_v24 = vadd.f32 %v698_v16, %v697_v19  ;;  %v10157_v19 = vsub.s32 0, %v803_v15 }
  0x46   : > { %v701_v28 = vadd.f32 %v700_v21, %v699_v24 }
  0x48   : > { %v703_v33 = vadd.f32 %v702_v25, %v701_v28 }
  0x4a   : > { %v705_v37 = vadd.f32 %v704_v30, %v703_v33 }
  0x4c   : > { %v707_v42 = vadd.f32 %v706_v34, %v705_v37 }
  0x4e   : > { %v709_v46 = vadd.f32 %v708_v39, %v707_v42 }
  0x50   : > { %v711_v49 = vadd.f32 %v710_v43, %v709_v46 }
  0x52   : > { %v713_v52 = vadd.f32 %v712_v48, %v711_v49 }
  0x54   : > { %v715_v54 = vadd.f32 %v714_v51, %v713_v52 }
  0x56   : > { %v716_v55 = vrot.slane %v715_v54, 4 }
  0x58   : > { %v717_v57 = vadd.f32 %v716_v55, %v715_v54 }
  0x5a   : > { %v718_v58 = vrot.slane %v717_v57, 2 }
  0x5c   : > { %v719_v60 = vadd.f32 %v718_v58, %v717_v57 }
  0x5e   : > { %v720_v61 = vrot.slane %v719_v60, 1 }
  0x60   : > { %v721_v63 = vadd.f32 %v720_v61, %v719_v60 }
  0x62   : > { %8352 = vmatmul.mubr.msk.f32.vlgmr.msra.gmra.mrb[2].mxu1 %vm652_vm2, %v721_v63 }
  0xe6   : > { %v10155_v0 = vpop.f32.mrb[0].mxu1 }
  0xe7   : > { %v8348_v3 = vpop.f32.mrb[1].mxu1 }
 0x135   : > { %v796_v10 = vpop.f32.mrb[2].mxu1 }
 0x136   : > { %v8353_v12 = vpop.f32.mrb[3].mxu1  ;;  %v801_v16 = vmul.f32 0.001953125, %v796_v10 }
 0x138   : > { %v10160_v21 = vrot.slane %v801_v16, %v10157_v19 }
 0x13a   : > { %v10164_v24 = vsub.f32 %v9992_v4, %v10160_v21  ;;  %v10168_v25 = vsub.f32 %v9995_v5, %v10160_v21  ;;  %v10172_v28 = vsub.f32 %v9998_v6, %v10160_v21  ;;  %v10176_v30 = vsub.f32 %v10004_v7, %v10160_v21 }
 0x13b   : > { %v10184_v4 = vsub.f32 %v10013_v11, %v10160_v21  ;;  %v10190_v6 = vsub.f32 %v10018_v14, %v10160_v21  ;;  %v10198_v43 = vsub.f32 %v10023_v17, %v10160_v21  ;;  %v10205_v14 = vsub.f32 %v10028_v20, %v10160_v21 }
 0x13c   : > { %v838_v33 = vmul.f32 %v10164_v24, %v10164_v24  ;;  %v839_v34 = vmul.f32 %v10168_v25, %v10168_v25  ;;  %v840_v5 = vmul.f32 %v10172_v28, %v10172_v28  ;;  %v841_v7 = vmul.f32 %v10176_v30, %v10176_v30 }
 0x13d   : > { %v842_v11 = vmul.f32 %v10184_v4, %v10184_v4  ;;  %v843_v49 = vmul.f32 %v10190_v6, %v10190_v6  ;;  %v10212_v17 = vsub.f32 %v10033_v23, %v10160_v21  ;;  %v844_v54 = vmul.f32 %v10198_v43, %v10198_v43 }
 0x13e   : > { %v870_v37 = vsel %vm652_vm2, %v838_v33, 0.0  ;;  %v871_v39 = vsel %vm652_vm2, %v839_v34, 0.0  ;;  %v873_v46 = vsel %vm652_vm2, %v840_v5, 0.0  ;;  %v875_v51 = vsel %vm652_vm2, %v841_v7, 0.0 }
 0x13f   : > { %v872_v42 = vadd.f32 %v871_v39, %v870_v37  ;;  %v877_v55 = vsel %vm652_vm2, %v842_v11, 0.0  ;;  %v10219_v20 = vsub.f32 %v10038_v26, %v10160_v21  ;;  %v845_v58 = vmul.f32 %v10205_v14, %v10205_v14 }
 0x140   : > { %v879_v60 = vsel %vm652_vm2, %v843_v49, 0.0  ;;  %v10226_v23 = vsub.f32 %v10043_v29, %v10160_v21  ;;  %v846_v63 = vmul.f32 %v10212_v17, %v10212_v17  ;;  %v881_v3 = vsel %vm652_vm2, %v844_v54, 0.0 }
 0x141   : > { %v874_v48 = vadd.f32 %v873_v46, %v872_v42  ;;  %v10233_v26 = vsub.f32 %v10048_v32, %v10160_v21  ;;  %v847_v10 = vmul.f32 %v10219_v20, %v10219_v20  ;;  %v883_v12 = vsel %vm652_vm2, %v845_v58, 0.0 }
 0x142   : > { %v10240_v29 = vsub.f32 %v10053_v35, %v10160_v21  ;;  %v848_v16 = vmul.f32 %v10226_v23, %v10226_v23  ;;  %v885_v33 = vsel %vm652_vm2, %v846_v63, 0.0  ;;  %v10247_v32 = vsub.f32 %v10058_v38, %v10160_v21 }
 0x143   : > { %v876_v52 = vadd.f32 %v875_v51, %v874_v48  ;;  %v849_v5 = vmul.f32 %v10233_v26, %v10233_v26  ;;  %v887_v7 = vsel %vm652_vm2, %v847_v10, 0.0  ;;  %v10254_v35 = vsub.f32 %v10063_v41, %v10160_v21 }
 0x144   : > { %v850_v39 = vmul.f32 %v10240_v29, %v10240_v29  ;;  %v889_v42 = vsel %vm652_vm2, %v848_v16, 0.0  ;;  %v10261_v38 = vsub.f32 %v10068_v44, %v10160_v21  ;;  %v851_v46 = vmul.f32 %v10247_v32, %v10247_v32 }
 0x145   : > { %v878_v57 = vadd.f32 %v877_v55, %v876_v52  ;;  %v891_v48 = vsel %vm652_vm2, %v849_v5, 0.0  ;;  %v10268_v41 = vsub.f32 %v10073_v47, %v10160_v21  ;;  %v852_v51 = vmul.f32 %v10254_v35, %v10254_v35 }
 0x146   : > { %v893_v52 = vsel %vm652_vm2, %v850_v39, 0.0  ;;  %v10275_v44 = vsub.f32 %v10078_v50, %v10160_v21  ;;  %v853_v55 = vmul.f32 %v10261_v38, %v10261_v38  ;;  %v10282_v47 = vsub.f32 %v10083_v53, %v10160_v21 }
 0x147   : > { %v880_v61 = vadd.f32 %v879_v60, %v878_v57  ;;  %v895_v57 = vsel %vm652_vm2, %v851_v46, 0.0  ;;  %v854_v60 = vmul.f32 %v10268_v41, %v10268_v41  ;;  %v10289_v50 = vsub.f32 %v10088_v56, %v10160_v21 }
 0x148   : > { %v10296_v53 = vsub.f32 %v10093_v59, %v10160_v21  ;;  %v10303_v56 = vsub.f32 %v10098_v62, %v10160_v21  ;;  %v10310_v59 = vsub.f32 %v10103_v2, %v10160_v21  ;;  %v10317_v62 = vsub.f32 %v10108_v9, %v10160_v21 }
 0x149   : > { %v882_v8 = vadd.f32 %v881_v3, %v880_v61  ;;  %v897_v61 = vsel %vm652_vm2, %v852_v51, 0.0  ;;  %v855_v3 = vmul.f32 %v10275_v44, %v10275_v44  ;;  %v10324_v2 = vsub.f32 %v10113_v13, %v10160_v21 }
 0x14a   : > { %v10331_v9 = vsub.f32 %v10118_v18, %v10160_v21  ;;  %v10338_v13 = vsub.f32 %v10123_v22, %v10160_v21  ;;  %v10345_v18 = vsub.f32 %v10128_v27, %v10160_v21  ;;  %v10352_v22 = vsub.f32 %v10133_v31, %v10160_v21 }
 0x14b   : > { %v884_v15 = vadd.f32 %v883_v12, %v882_v8  ;;  %v899_v8 = vsel %vm652_vm2, %v853_v55, 0.0  ;;  %v856_v12 = vmul.f32 %v10282_v47, %v10282_v47  ;;  %v10359_v27 = vsub.f32 %v10138_v36, %v10160_v21 }
 0x14c   : > { %v10366_v31 = vsub.f32 %v10143_v40, %v10160_v21  ;;  %v10373_v36 = vsub.f32 %v10148_v45, %v10160_v21 }
 0x14d   : > { %v886_v34 = vadd.f32 %v885_v33, %v884_v15  ;;  %v901_v15 = vsel %vm652_vm2, %v854_v60, 0.0  ;;  %v857_v33 = vmul.f32 %v10289_v50, %v10289_v50 }
 0x14e   : > { %v868_v40 = vmul.f32 %v10366_v31, %v10366_v31 }
 0x14f   : > { %v888_v37 = vadd.f32 %v887_v7, %v886_v34  ;;  %v903_v34 = vsel %vm652_vm2, %v855_v3, 0.0  ;;  %v858_v7 = vmul.f32 %v10296_v53, %v10296_v53 }
 0x150   : > { %v929_v45 = vsel %vm652_vm2, %v868_v40, 0.0 }
 0x151   : > { %v890_v11 = vadd.f32 %v889_v42, %v888_v37  ;;  %v905_v37 = vsel %vm652_vm2, %v856_v12, 0.0  ;;  %v859_v42 = vmul.f32 %v10303_v56, %v10303_v56 }
 0x153   : > { %v892_v49 = vadd.f32 %v891_v48, %v890_v11  ;;  %v907_v11 = vsel %vm652_vm2, %v857_v33, 0.0  ;;  %v860_v48 = vmul.f32 %v10310_v59, %v10310_v59 }
 0x155   : > { %v894_v54 = vadd.f32 %v893_v52, %v892_v49  ;;  %v909_v49 = vsel %vm652_vm2, %v858_v7, 0.0  ;;  %v861_v52 = vmul.f32 %v10317_v62, %v10317_v62 }
 0x157   : > { %v896_v58 = vadd.f32 %v895_v57, %v894_v54  ;;  %v911_v54 = vsel %vm652_vm2, %v859_v42, 0.0  ;;  %v862_v57 = vmul.f32 %v10324_v2, %v10324_v2 }
 0x159   : > { %v898_v63 = vadd.f32 %v897_v61, %v896_v58  ;;  %v913_v58 = vsel %vm652_vm2, %v860_v48, 0.0  ;;  %v863_v61 = vmul.f32 %v10331_v9, %v10331_v9  ;;  %v869_v48 = vmul.f32 %v10373_v36, %v10373_v36 }
 0x15b   : > { %v900_v10 = vadd.f32 %v899_v8, %v898_v63  ;;  %v915_v63 = vsel %vm652_vm2, %v861_v52, 0.0  ;;  %v864_v8 = vmul.f32 %v10338_v13, %v10338_v13  ;;  %v931_v52 = vsel %vm652_vm2, %v869_v48, 0.0 }
 0x15d   : > { %v902_v16 = vadd.f32 %v901_v15, %v900_v10  ;;  %v917_v10 = vsel %vm652_vm2, %v862_v57, 0.0  ;;  %v865_v15 = vmul.f32 %v10345_v18, %v10345_v18 }
 0x15f   : > { %v904_v5 = vadd.f32 %v903_v34, %v902_v16  ;;  %v919_v16 = vsel %vm652_vm2, %v863_v61, 0.0  ;;  %v866_v34 = vmul.f32 %v10352_v22, %v10352_v22 }
 0x161   : > { %v906_v39 = vadd.f32 %v905_v37, %v904_v5  ;;  %v921_v5 = vsel %vm652_vm2, %v864_v8, 0.0  ;;  %v867_v37 = vmul.f32 %v10359_v27, %v10359_v27  ;;  %v1332_v8 = vld [vmem:[#allocation2] sm:$0xff] }
 0x163   : > { %v908_v46 = vadd.f32 %v907_v11, %v906_v39  ;;  %v923_v39 = vsel %vm652_vm2, %v865_v15, 0.0  ;;  %v925_v11 = vsel %vm652_vm2, %v866_v34, 0.0 }
 0x165   : > { %v910_v51 = vadd.f32 %v909_v49, %v908_v46  ;;  %v927_v49 = vsel %vm652_vm2, %v867_v37, 0.0  ;;  %v1015_v37 = vld [vmem:[%s12474_s3] sm:$0x1] }
 0x167   : > { %v912_v55 = vadd.f32 %v911_v54, %v910_v51 }
 0x169   : > { %v914_v60 = vadd.f32 %v913_v58, %v912_v55 }
 0x16b   : > { %v916_v3 = vadd.f32 %v915_v63, %v914_v60 }
 0x16d   : > { %v918_v12 = vadd.f32 %v917_v10, %v916_v3  ;;  %v1380_v3 = vld [vmem:[%s12476_s5] sm:$0x3]  ;;  %v1333_v10 = vld [vmem:[#allocation2 + $0x8] sm:$0xff] }
 0x16e   : > { %9657 = vmatprep.subr.msk.bf16.mxu1 %vm1429_vm5, %v1380_v3  ;;  %v1364_v15 = vpack.c.bf16 %v1333_v10, %v1332_v8 }
 0x16f   : > { %v920_v33 = vadd.f32 %v919_v16, %v918_v12  ;;  %v1431_v12 = vsel %vm1429_vm5, %v1380_v3, 0  ;;  %v10397_v16 = vld [vmem:[%s12476_s5 + $0x2] sm:$0x3] }
 0x170   : > { %8360 = vmatpush3.bf16.msra.mxu1 %v1431_v12  ;;  %8361 = vmatprep.mubr.msk.bf16.mxu1 %vm652_vm2, %v1364_v15 }
 0x171   : > { %v922_v7 = vadd.f32 %v921_v5, %v920_v33  ;;  %9658 = vmatprep.subr.msk.bf16.mxu1 %vm1429_vm5, %v10397_v16 }
 0x173   : > { %v924_v42 = vadd.f32 %v923_v39, %v922_v7 }
 0x175   : > { %v926_v46 = vadd.f32 %v925_v11, %v924_v42 }
 0x177   : > { %v928_v51 = vadd.f32 %v927_v49, %v926_v46  ;;  %v10479_v46 = vld [vmem:[%s12475_s4] ss:$0 sm:$0xff] }
 0x179   : > { %v930_v21 = vadd.f32 %v929_v45, %v928_v51 }
 0x17b   : > { %v932_v54 = vadd.f32 %v931_v52, %v930_v21 }
 0x17d   : > { %v933_v55 = vrot.slane %v932_v54, 4 }
 0x17f   : > { %v934_v57 = vadd.f32 %v933_v55, %v932_v54 }
 0x181   : > { %v935_v58 = vrot.slane %v934_v57, 2 }
 0x183   : > { %v936_v60 = vadd.f32 %v935_v58, %v934_v57  ;;  %v10522_v57 = vsel %vm1429_vm5, %v10397_v16, 0 }
 0x185   : > { %v937_v61 = vrot.slane %v936_v60, 1 }
 0x187   : > { %v938_v63 = vadd.f32 %v937_v61, %v936_v60 }
 0x189   : > { %8357 = vmatmul.mubr.msk.f32.vlgmr.msra.gmra.mrb[0].mxu0 %vm652_vm2, %v938_v63 }
 0x18a   : > { %8667 = vmatprep.mubr.msk.f32.mxu0 %vm9860_vm1, %v9859_v1 }
 0x25c   : > { %v1008_v33 = vpop.f32.mrb[0].mxu0 }
 0x25d   : > { %v1012_v34 = vmul.f32 0.001953125, %v1008_v33  ;;  %v8358_v5 = vpop.f32.mrb[1].mxu0 }
 0x25f   : > { %v1013_v7 = vadd.f32 1e-05, %v1012_v34 }
 0x261   : > { %9687 = vrsqrt.f32 %v1013_v7 }
 0x26b   : > { %v9688_v39 = vpop.eup %9687 }
 0x26c   : > { %v1016_v42 = vmul.f32 %v9688_v39, %v1015_v37 }
 0x26e   : > { %v10472_v40 = vrot.slane %v1016_v42, %v10157_v19 }
 0x270   : > { %v1041_v11 = vmul.f32 %v10472_v40, %v10296_v53  ;;  %v1042_v48 = vmul.f32 %v10472_v40, %v10303_v56  ;;  %v1043_v49 = vmul.f32 %v10472_v40, %v10310_v59  ;;  %v1045_v51 = vmul.f32 %v10472_v40, %v10324_v2 }
 0x271   : > { %v1046_v45 = vmul.f32 %v10472_v40, %v10331_v9  ;;  %v1044_v53 = vmul.f32 %v10472_v40, %v10317_v62  ;;  %v1047_v21 = vmul.f32 %v10472_v40, %v10338_v13  ;;  %v1048_v52 = vmul.f32 %v10472_v40, %v10345_v18 }
 0x272   : > { %v1049_v56 = vmul.f32 %v10472_v40, %v10352_v22  ;;  %v1050_v59 = vmul.f32 %v10472_v40, %v10359_v27  ;;  %v1051_v2 = vmul.f32 %v10472_v40, %v10366_v31  ;;  %v1052_v9 = vmul.f32 %v10472_v40, %v10373_v36 }
 0x273   : > { %v1084_v62 = vadd.f32 %v10479_v46, %v1045_v51  ;;  %v1085_v54 = vadd.f32 %v10479_v46, %v1046_v45  ;;  %v10506_v13 = vadd.f32 %v10479_v46, %v1041_v11  ;;  %v10509_v18 = vadd.f32 %v10479_v46, %v1042_v48 }
 0x274   : > { %v10512_v22 = vadd.f32 %v10479_v46, %v1043_v49  ;;  %v1086_v27 = vadd.f32 %v10479_v46, %v1047_v21  ;;  %v10516_v31 = vadd.f32 %v10479_v46, %v1044_v53  ;;  %v1087_v36 = vadd.f32 %v10479_v46, %v1048_v52 }
 0x275   : > { %v1088_v55 = vadd.f32 %v10479_v46, %v1049_v56  ;;  %v10526_v58 = vmul.f32 %v10472_v40, %v10282_v47  ;;  %v10530_v60 = vmul.f32 %v10472_v40, %v10289_v50  ;;  %v1089_v61 = vadd.f32 %v10479_v46, %v1050_v59 }
 0x276   : > { %v1090_v63 = vadd.f32 %v10479_v46, %v1051_v2  ;;  %v1091_v3 = vadd.f32 %v10479_v46, %v1052_v9  ;;  %v10535_v8 = vmul.f32 0.5, %v1084_v62  ;;  %v10537_v10 = vmul.f32 0.5, %v1085_v54 }
 0x277   : > { %v10539_v12 = vmul.f32 0.5, %v1086_v27  ;;  %v1144_v15 = vmul.f32 0.70710677, %v10506_v13  ;;  %v1145_v47 = vmul.f32 0.70710677, %v10509_v18  ;;  %v1021_v50 = vmul.f32 %v10472_v40, %v10164_v24 }
 0x278   : > { %v1146_v16 = vmul.f32 0.70710677, %v10512_v22  ;;  %v10546_v33 = vmul.f32 0.5, %v1087_v36  ;;  %v10548_v34 = vmul.f32 0.5, %v1088_v55  ;;  %v1147_v5 = vmul.f32 0.70710677, %v10516_v31 }
 0x279   : > { %v1022_v7 = vmul.f32 %v10472_v40, %v10168_v25  ;;  %v10553_v37 = vmul.f32 0.5, %v1089_v61  ;;  %v10555_v39 = vmul.f32 0.5, %v1090_v63  ;;  %v1148_v42 = vmul.f32 0.70710677, %v1084_v62 }
 0x27a   : > { %9689 = verf.f32 %v1144_v15  ;;  %v10557_v11 = vmul.f32 0.5, %v1091_v3  ;;  %v1149_v48 = vmul.f32 0.70710677, %v1085_v54  ;;  %v1150_v49 = vmul.f32 0.70710677, %v1086_v27 }
 0x27b   : > { %9691 = verf.f32 %v1145_v47  ;;  %v1151_v24 = vmul.f32 0.70710677, %v1087_v36  ;;  %v1060_v51 = vadd.f32 %v10479_v46, %v1021_v50  ;;  %v1023_v45 = vmul.f32 %v10472_v40, %v10172_v28 }
 0x27c   : > { %9693 = verf.f32 %v1146_v16  ;;  %v1061_v25 = vadd.f32 %v10479_v46, %v1022_v7  ;;  %v1024_v53 = vmul.f32 %v10472_v40, %v10176_v30  ;;  %v1025_v21 = vmul.f32 %v10472_v40, %v10184_v4 }
 0x27d   : > { %9695 = verf.f32 %v1147_v5  ;;  %v1152_v52 = vmul.f32 0.70710677, %v1088_v55  ;;  %v1153_v56 = vmul.f32 0.70710677, %v1089_v61  ;;  %v1026_v59 = vmul.f32 %v10472_v40, %v10190_v6 }
 0x27e   : > { %9697 = verf.f32 %v1148_v42  ;;  %v1154_v2 = vmul.f32 0.70710677, %v1090_v63  ;;  %v1062_v9 = vadd.f32 %v10479_v46, %v1023_v45  ;;  %v1063_v28 = vadd.f32 %v10479_v46, %v1024_v53 }
 0x27f   : > { %9699 = verf.f32 %v1149_v48  ;;  %v1155_v62 = vmul.f32 0.70710677, %v1091_v3  ;;  %v10571_v54 = vmul.f32 0.5, %v1060_v51  ;;  %v1027_v30 = vmul.f32 %v10472_v40, %v10198_v43 }
 0x280   : > { %9701 = verf.f32 %v1150_v49  ;;  %v10575_v4 = vmul.f32 0.5, %v1061_v25  ;;  %v1124_v27 = vmul.f32 0.70710677, %v1060_v51  ;;  %v1064_v36 = vadd.f32 %v10479_v46, %v1025_v21 }
 0x281   : > { %9703 = verf.f32 %v1151_v24  ;;  %v1125_v6 = vmul.f32 0.70710677, %v1061_v25  ;;  %v10578_v55 = vmul.f32 0.5, %v1062_v9  ;;  %v1065_v61 = vadd.f32 %v10479_v46, %v1026_v59 }
 0x282   : > { %9705 = verf.f32 %v1152_v52  ;;  %v10581_v63 = vmul.f32 0.5, %v1063_v28  ;;  %v1126_v3 = vmul.f32 0.70710677, %v1062_v9  ;;  %v1028_v15 = vmul.f32 %v10472_v40, %v10205_v14 }
 0x283   : > { %9707 = verf.f32 %v1153_v56  ;;  %v1066_v47 = vadd.f32 %v10479_v46, %v1027_v30  ;;  %v1029_v16 = vmul.f32 %v10472_v40, %v10212_v17  ;;  %v1030_v50 = vmul.f32 %v10472_v40, %v10219_v20 }
 0x284   : > { %v10585_v43 = vpop.eup %9689  ;;  %9709 = verf.f32 %v1154_v2  ;;  %v1127_v7 = vmul.f32 0.70710677, %v1063_v28  ;;  %v10594_v42 = vmul.f32 0.5, %v1064_v36  ;;  %v1067_v48 = vadd.f32 %v10479_v46, %v1028_v15 }
 0x285   : > { %v10592_v5 = vpop.eup %9691  ;;  %9711 = verf.f32 %v1155_v62  ;;  %v1128_v49 = vmul.f32 0.70710677, %v1064_v36  ;;  %v10600_v24 = vadd.f32 %v10479_v46, %v1029_v16  ;;  %v1031_v17 = vmul.f32 %v10472_v40, %v10226_v23 }
 0x286   : > { %v10597_v14 = vpop.eup %9693  ;;  %9713 = verf.f32 %v1124_v27  ;;  %v1129_v20 = vmul.f32 0.70710677, %v1065_v61  ;;  %v10607_v45 = vadd.f32 %v10479_v46, %v1030_v50  ;;  %v1032_v25 = vmul.f32 %v10472_v40, %v10233_v26 }
 0x287   : > { %v10604_v51 = vpop.eup %9695  ;;  %9715 = verf.f32 %v1125_v6  ;;  %v10611_v21 = vmul.f32 0.5, %v1065_v61  ;;  %v10613_v52 = vmul.f32 0.5, %v1066_v47  ;;  %v1130_v56 = vmul.f32 0.70710677, %v1066_v47 }
 0x288   : > { %v9698_v53 = vpop.eup %9697  ;;  %9717 = verf.f32 %v1126_v3  ;;  %v1131_v23 = vmul.f32 0.70710677, %v1067_v48  ;;  %v1132_v9 = vmul.f32 0.70710677, %v10600_v24  ;;  %v1133_v30 = vmul.f32 0.70710677, %v10607_v45 }
 0x289   : > { %v9700_v59 = vpop.eup %9699  ;;  %v1212_v2 = vadd.f32 1.0, %v9698_v53  ;;  %9719 = verf.f32 %v1127_v7  ;;  %v10618_v26 = vadd.f32 %v10479_v46, %v1031_v17  ;;  %v10622_v61 = vadd.f32 %v10479_v46, %v1032_v25 }
 0x28a   : > { %v9702_v28 = vpop.eup %9701  ;;  %v1213_v62 = vadd.f32 1.0, %v9700_v59  ;;  %9721 = verf.f32 %v1128_v49  ;;  %v10625_v16 = vmul.f32 0.5, %v1067_v48 }
 0x28b   : > { %v9704_v27 = vpop.eup %9703  ;;  %v1214_v36 = vadd.f32 1.0, %v9702_v28  ;;  %v1244_v6 = vmul.f32 %v1212_v2, %v10535_v8  ;;  %9723 = verf.f32 %v1129_v20  ;;  %v1033_v8 = vmul.f32 %v10472_v40, %v10240_v29 }
 0x28c   : > { %v9706_v3 = vpop.eup %9705  ;;  %v1215_v15 = vadd.f32 1.0, %v9704_v27  ;;  %v1245_v47 = vmul.f32 %v1213_v62, %v10537_v10  ;;  %9725 = verf.f32 %v1130_v56  ;;  %v1134_v10 = vmul.f32 0.70710677, %v10618_v26 }
 0x28d   : > { %v9708_v50 = vpop.eup %9707  ;;  %v1216_v7 = vadd.f32 1.0, %v9706_v3  ;;  %v1246_v49 = vmul.f32 %v1214_v36, %v10539_v12  ;;  %1318 = vst.msk [vmem:[#allocation2 + $0x139] sm:$0xff] %vm652_vm2, %v1244_v6  ;;  %9727 = verf.f32 %v1131_v23  ;;  %v1135_v12 = vmul.f32 0.70710677, %v10622_v61 }
 0x28e   : > { %v9710_v17 = vpop.eup %9709  ;;  %v1217_v20 = vadd.f32 1.0, %v9708_v50  ;;  %v1247_v25 = vmul.f32 %v1215_v15, %v10546_v33  ;;  %1319 = vst.msk [vmem:[#allocation2 + $0x141] sm:$0xff] %vm652_vm2, %v1245_v47  ;;  %9729 = verf.f32 %v1132_v9  ;;  %v1034_v33 = vmul.f32 %v10472_v40, %v10247_v32 }
 0x28f   : > { %v9712_v48 = vpop.eup %9711  ;;  %v1218_v53 = vadd.f32 1.0, %v9710_v17  ;;  %v1248_v56 = vmul.f32 %v1216_v7, %v10548_v34  ;;  %1320 = vst.msk [vmem:[#allocation2 + $0x151] sm:$0xff] %vm652_vm2, %v1246_v49  ;;  %9731 = verf.f32 %v1133_v30  ;;  %v10644_v28 = vadd.f32 %v10479_v46, %v1033_v8 }
 0x290   : > { %v9714_v59 = vpop.eup %9713  ;;  %v1219_v29 = vadd.f32 1.0, %v9712_v48  ;;  %v1249_v2 = vmul.f32 %v1217_v20, %v10553_v37  ;;  %1321 = vst.msk [vmem:[#allocation2 + $0x159] sm:$0xff] %vm652_vm2, %v1247_v25  ;;  %9733 = verf.f32 %v1134_v10  ;;  %v10649_v27 = vadd.f32 %v10479_v46, %v1034_v33 }
 0x291   : > { %v9716_v23 = vpop.eup %9715  ;;  %v1250_v9 = vmul.f32 %v1218_v53, %v10555_v39  ;;  %1322 = vst.msk [vmem:[#allocation2 + $0x169] sm:$0xff] %vm652_vm2, %v1248_v56  ;;  %v1188_v34 = vadd.f32 1.0, %v9714_v59  ;;  %9735 = verf.f32 %v1135_v12  ;;  %v1035_v32 = vmul.f32 %v10472_v40, %v10254_v35 }
 0x292   : > { %v9718_v62 = vpop.eup %9717  ;;  %v1251_v30 = vmul.f32 %v1219_v29, %v10557_v11  ;;  %1323 = vst.msk [vmem:[#allocation2 + $0x171] sm:$0xff] %vm652_vm2, %v1249_v2  ;;  %v1189_v37 = vadd.f32 1.0, %v9716_v23  ;;  %v1100_v3 = vmul.f32 0.5, %v10600_v24  ;;  %v1136_v15 = vmul.f32 0.70710677, %v10644_v28 }
 0x293   : > { %v9720_v39 = vpop.eup %9719  ;;  %1324 = vst.msk [vmem:[#allocation2 + $0x181] sm:$0xff] %vm652_vm2, %v1250_v9  ;;  %v1220_v36 = vmul.f32 %v1188_v34, %v10571_v54  ;;  %v1190_v6 = vadd.f32 1.0, %v9718_v62  ;;  %v1101_v7 = vmul.f32 0.5, %v10607_v45  ;;  %v1137_v35 = vmul.f32 0.70710677, %v10649_v27 }
 0x294   : > { %v9722_v11 = vpop.eup %9721  ;;  %1325 = vst.msk [vmem:[#allocation2 + $0x189] sm:$0xff] %vm652_vm2, %v1251_v30  ;;  %v1221_v47 = vmul.f32 %v1189_v37, %v10575_v4  ;;  %v1191_v50 = vadd.f32 1.0, %v9720_v39  ;;  %9737 = verf.f32 %v1136_v15  ;;  %v1036_v24 = vmul.f32 %v10472_v40, %v10261_v38 }
 0x295   : > { %v9724_v49 = vpop.eup %9723  ;;  %1294 = vst.msk [vmem:[#allocation2 + $0x19] sm:$0xff] %vm652_vm2, %v1220_v36  ;;  %v1222_v54 = vmul.f32 %v1190_v6, %v10578_v55  ;;  %v1192_v8 = vadd.f32 1.0, %v9722_v11  ;;  %9739 = verf.f32 %v1137_v35  ;;  %v10668_v45 = vadd.f32 %v10479_v46, %v1035_v32 }
 0x296   : > { %v9726_v17 = vpop.eup %9725  ;;  %1295 = vst.msk [vmem:[#allocation2 + $0x21] sm:$0xff] %vm652_vm2, %v1221_v47  ;;  %v1223_v4 = vmul.f32 %v1191_v50, %v10581_v63  ;;  %v1193_v20 = vadd.f32 1.0, %v9724_v49  ;;  %v10673_v48 = vadd.f32 %v10479_v46, %v1036_v24  ;;  %v1037_v38 = vmul.f32 %v10472_v40, %v10268_v41  ;;  %v10716_v50 = vld [vmem:[%s12476_s5 + $0x4] sm:$0x3] }
 0x297   : > { %v9728_v25 = vpop.eup %9727  ;;  %1296 = vst.msk [vmem:[#allocation2 + $0x31] sm:$0xff] %vm652_vm2, %v1222_v54  ;;  %v1224_v55 = vmul.f32 %v1192_v8, %v10594_v42  ;;  %v1194_v10 = vadd.f32 1.0, %v9726_v17  ;;  %v1102_v12 = vmul.f32 0.5, %v10618_v26  ;;  %v1138_v59 = vmul.f32 0.70710677, %v10668_v45 }
 0x298   : > { %v9730_v53 = vpop.eup %9729  ;;  %1297 = vst.msk [vmem:[#allocation2 + $0x39] sm:$0xff] %vm652_vm2, %v1223_v4  ;;  %v1225_v63 = vmul.f32 %v1193_v20, %v10611_v21  ;;  %v1195_v56 = vadd.f32 1.0, %v9728_v25  ;;  %v1103_v33 = vmul.f32 0.5, %v10622_v61  ;;  %v1139_v41 = vmul.f32 0.70710677, %v10673_v48 }
 0x299   : > { %v9732_v29 = vpop.eup %9731  ;;  %1298 = vst.msk [vmem:[#allocation2 + $0x49] sm:$0xff] %vm652_vm2, %v1224_v55  ;;  %v1226_v42 = vmul.f32 %v1194_v10, %v10613_v52  ;;  %v1196_v2 = vadd.f32 1.0, %v9730_v53  ;;  %9741 = verf.f32 %v1138_v59  ;;  %v1038_v26 = vmul.f32 %v10472_v40, %v10275_v44 }
 0x29a   : > { %v9734_v23 = vpop.eup %9733  ;;  %1299 = vst.msk [vmem:[#allocation2 + $0x51] sm:$0xff] %vm652_vm2, %v1225_v63  ;;  %v1227_v21 = vmul.f32 %v1195_v56, %v10625_v16  ;;  %v1197_v9 = vadd.f32 1.0, %v9732_v29  ;;  %9743 = verf.f32 %v1139_v41  ;;  %v10691_v61 = vadd.f32 %v10479_v46, %v1037_v38 }
 0x29b   : > { %v9736_v34 = vpop.eup %9735  ;;  %1300 = vst.msk [vmem:[#allocation2 + $0x61] sm:$0xff] %vm652_vm2, %v1226_v42  ;;  %v1228_v62 = vmul.f32 %v1196_v2, %v1100_v3  ;;  %v1198_v52 = vadd.f32 1.0, %v9734_v23  ;;  %v10695_v16 = vadd.f32 %v10479_v46, %v1038_v26  ;;  %v10699_v44 = vadd.f32 %v10479_v46, %v10526_v58 }
 0x29c   : > { %v1334_v30 = vld [vmem:[#allocation2 + $0x18] sm:$0xff]  ;;  %1301 = vst.msk [vmem:[#allocation2 + $0x69] sm:$0xff] %vm652_vm2, %v1227_v21  ;;  %v1229_v37 = vmul.f32 %v1197_v9, %v1101_v7  ;;  %v1199_v32 = vadd.f32 1.0, %v9736_v34  ;;  %v1114_v40 = vmul.f32 0.5, %v10512_v22  ;;  %v1140_v6 = vmul.f32 0.70710677, %v10691_v61 }
 0x29d   : > { %v1335_v39 = vld [vmem:[#allocation2 + $0x20] sm:$0xff]  ;;  %1302 = vst.msk [vmem:[#allocation2 + $0x79] sm:$0xff] %vm652_vm2, %v1228_v62  ;;  %v1230_v36 = vmul.f32 %v1198_v52, %v1102_v12  ;;  %v10706_v3 = vadd.f32 %v10479_v46, %v10530_v60  ;;  %v1115_v15 = vmul.f32 0.5, %v10516_v31  ;;  %v1141_v22 = vmul.f32 0.70710677, %v10695_v16 }
 0x29e   : > { %v10709_v11 = vpack.c.bf16 %v1335_v39, %v1334_v30  ;;  %v1336_v47 = vld [vmem:[#allocation2 + $0x30] sm:$0xff]  ;;  %1303 = vst.msk [vmem:[#allocation2 + $0x81] sm:$0xff] %vm652_vm2, %v1229_v37  ;;  %v1231_v58 = vmul.f32 %v1199_v32, %v1103_v33  ;;  %v9738_v7 = vpop.eup %9737  ;;  %v1211_v35 = vadd.f32 1.0, %v10604_v51  ;;  %v1104_v31 = vmul.f32 0.5, %v10644_v28 }
 0x29f   : > { %v1337_v46 = vld [vmem:[#allocation2 + $0x38] sm:$0xff]  ;;  %1304 = vst.msk [vmem:[#allocation2 + $0x91] sm:$0xff] %vm652_vm2, %v1230_v36  ;;  %9745 = verf.f32 %v1140_v6  ;;  %v1142_v60 = vmul.f32 0.70710677, %v10699_v44  ;;  %v9740_v49 = vpop.eup %9739  ;;  %v1200_v8 = vadd.f32 1.0, %v9738_v7  ;;  %v1105_v24 = vmul.f32 0.5, %v10649_v27 }
 0x2a0   : > { %8362 = vmatmul.mubr.msk.bf16.vlgmr.msra.gmra.mrb[4].mxu1 %vm652_vm2, %v10709_v11  ;;  %v10724_v54 = vpack.c.bf16 %v1337_v46, %v1336_v47  ;;  %1305 = vst.msk [vmem:[#allocation2 + $0x99] sm:$0xff] %vm652_vm2, %v1231_v58  ;;  %9747 = verf.f32 %v1141_v22  ;;  %v1143_v51 = vmul.f32 0.70710677, %v10706_v3  ;;  %v1201_v28 = vadd.f32 1.0, %v9740_v49  ;;  %v1338_v55 = vld [vmem:[#allocation2 + $0x48] sm:$0xff] }
 0x2a1   : > { %8394 = vmatpush3.bf16.msra.mxu1 %v10522_v57  ;;  %9749 = verf.f32 %v1142_v60  ;;  %v1112_v17 = vmul.f32 0.5, %v10506_v13  ;;  %v1232_v4 = vmul.f32 %v1200_v8, %v1104_v31  ;;  %v1113_v20 = vmul.f32 0.5, %v10509_v18  ;;  %v1339_v57 = vld [vmem:[#allocation2 + $0x50] sm:$0xff] }
 0x2a2   : > { %8365 = vmatprep.mubr.msk.bf16.mxu1 %vm652_vm2, %v10724_v54  ;;  %9751 = verf.f32 %v1143_v51  ;;  %v1208_v25 = vadd.f32 1.0, %v10585_v43  ;;  %9659 = vmatprep.subr.msk.bf16.mxu1 %vm1429_vm5, %v10716_v50  ;;  %v1233_v10 = vmul.f32 %v1201_v28, %v1105_v24  ;;  %v1209_v27 = vadd.f32 1.0, %v10592_v5  ;;  %v1340_v63 = vld [vmem:[#allocation2 + $0x60] sm:$0xff] }
 0x2a3   : > { %v1210_v38 = vadd.f32 1.0, %v10597_v14  ;;  %v1243_v13 = vmul.f32 %v1211_v35, %v1115_v15  ;;  %v9742_v53 = vpop.eup %9741  ;;  %v1341_v56 = vld [vmem:[#allocation2 + $0x68] sm:$0xff]  ;;  %1306 = vst.msk [vmem:[#allocation2 + $0xa9] sm:$0xff] %vm652_vm2, %v1232_v4  ;;  %v1106_v43 = vmul.f32 0.5, %v10668_v45  ;;  %v10743_v5 = vpack.c.bf16 %v1339_v57, %v1338_v55 }
 0x2a4   : > { %v1240_v12 = vmul.f32 %v1208_v25, %v1112_v17  ;;  %v9744_v18 = vpop.eup %9743  ;;  %1307 = vst.msk [vmem:[#allocation2 + $0xb1] sm:$0xff] %vm652_vm2, %v1233_v10  ;;  %v1202_v59 = vadd.f32 1.0, %v9742_v53  ;;  %v1241_v29 = vmul.f32 %v1209_v27, %v1113_v20  ;;  %v1107_v14 = vmul.f32 0.5, %v10673_v48  ;;  %v1342_v34 = vld [vmem:[#allocation2 + $0x78] sm:$0xff] }
 0x2a5   : > { %v1242_v42 = vmul.f32 %v1210_v38, %v1114_v40  ;;  %1317 = vst.msk [vmem:[#allocation2 + $0x129] sm:$0xff] %vm652_vm2, %v1243_v13  ;;  %v1203_v2 = vadd.f32 1.0, %v9744_v18  ;;  %v10747_v33 = vpack.c.bf16 %v1341_v56, %v1340_v63  ;;  %v1108_v21 = vmul.f32 0.5, %v10691_v61  ;;  %v1343_v62 = vld [vmem:[#allocation2 + $0x80] sm:$0xff]  ;;  %v1358_v27 = vld [vmem:[#allocation2 + $0x138] sm:$0xff]  ;;  %v1360_v13 = vld [vmem:[#allocation2 + $0x150] sm:$0xff] }
 0x2a6   : > { %1314 = vst.msk [vmem:[#allocation2 + $0x109] sm:$0xff] %vm652_vm2, %v1240_v12  ;;  %v1234_v41 = vmul.f32 %v1202_v59, %v1106_v43  ;;  %1315 = vst.msk [vmem:[#allocation2 + $0x111] sm:$0xff] %vm652_vm2, %v1241_v29  ;;  %v1109_v52 = vmul.f32 0.5, %v10695_v16  ;;  %v1344_v32 = vld [vmem:[#allocation2 + $0x90] sm:$0xff]  ;;  %v1110_v36 = vmul.f32 0.5, %v10699_v44  ;;  %v1111_v47 = vmul.f32 0.5, %v10706_v3 }
 0x2a7   : > { %1316 = vst.msk [vmem:[#allocation2 + $0x121] sm:$0xff] %vm652_vm2, %v1242_v42  ;;  %v1235_v45 = vmul.f32 %v1203_v2, %v1107_v14  ;;  %v1345_v40 = vld [vmem:[#allocation2 + $0x98] sm:$0xff]  ;;  %v10761_v22 = vpack.c.bf16 %v1343_v62, %v1342_v34  ;;  %v1359_v38 = vld [vmem:[#allocation2 + $0x140] sm:$0xff]  ;;  %v1627_v18 = vld [vmem:[#allocation2 + $0x9] sm:$0xff] }
 0x2a8   : > { %8366 = vmatmul.mubr.msk.bf16.gmra.mrb[8].mxu1 %vm652_vm2, %v10743_v5  ;;  %1308 = vst.msk [vmem:[#allocation2 + $0xc1] sm:$0xff] %vm652_vm2, %v1234_v41  ;;  %v10764_v7 = vpack.c.bf16 %v1345_v40, %v1344_v32  ;;  %v1361_v53 = vld [vmem:[#allocation2 + $0x158] sm:$0xff]  ;;  %v10797_v63 = vpack.c.bf16 %v1359_v38, %v1358_v27  ;;  %v1626_v12 = vld [vmem:[#allocation2 + $0x1] sm:$0xff]  ;;  %v1363_v59 = vld [vmem:[#allocation2 + $0x170] sm:$0xff] }
 0x2a9   : > { %v9746_v23 = vpop.eup %9745  ;;  %8369 = vmatprep.mubr.msk.bf16.mxu1 %vm652_vm2, %v10747_v33  ;;  %1309 = vst.msk [vmem:[#allocation2 + $0xc9] sm:$0xff] %vm652_vm2, %v1235_v45  ;;  %v10799_v56 = vpack.c.bf16 %v1361_v53, %v1360_v13  ;;  %v1362_v43 = vld [vmem:[#allocation2 + $0x168] sm:$0xff]  ;;  %v1658_v29 = vpack.c.bf16 %v1627_v18, %v1626_v12  ;;  %v1628_v14 = vld [vmem:[#allocation2 + $0x19] sm:$0xff]  ;;  %v1630_v41 = vld [vmem:[#allocation2 + $0x31] sm:$0xff] }
 0x2aa   : > { %v9748_v48 = vpop.eup %9747  ;;  %v1204_v9 = vadd.f32 1.0, %v9746_v23  ;;  %v1346_v44 = vld [vmem:[#allocation2 + $0xa8] sm:$0xff]  ;;  %v10805_v42 = vpack.c.bf16 %v1363_v59, %v1362_v43  ;;  %v1631_v45 = vld [vmem:[#allocation2 + $0x39] sm:$0xff]  ;;  %v1633_v34 = vld [vmem:[#allocation2 + $0x51] sm:$0xff] }
 0x2ab   : > { %v9750_v26 = vpop.eup %9749  ;;  %v1205_v30 = vadd.f32 1.0, %v9748_v48  ;;  %v1347_v3 = vld [vmem:[#allocation2 + $0xb0] sm:$0xff]  ;;  %v1629_v2 = vld [vmem:[#allocation2 + $0x21] sm:$0xff]  ;;  %v2019_v48 = vsel %vm1429_vm5, %v10716_v50, 0  ;;  %v1652_v38 = vld [vmem:[#allocation2 + $0x139] sm:$0xff] }
 0x2ac   : > { %v9752_v37 = vpop.eup %9751  ;;  %v1236_v39 = vmul.f32 %v1204_v9, %v1108_v21  ;;  %v1206_v6 = vadd.f32 1.0, %v9750_v26  ;;  %v10773_v31 = vpack.c.bf16 %v1347_v3, %v1346_v44  ;;  %v10810_v23 = vpack.c.bf16 %v1629_v2, %v1628_v14  ;;  %v10819_v9 = vld [vmem:[%s12476_s5 + $0x6] sm:$0x3]  ;;  %v1632_v26 = vld [vmem:[#allocation2 + $0x49] sm:$0xff]  ;;  %v1638_v40 = vld [vmem:[#allocation2 + $0x91] sm:$0xff] }
 0x2ad   : > { %v1237_v15 = vmul.f32 %v1205_v30, %v1109_v52  ;;  %v1207_v58 = vadd.f32 1.0, %v9752_v37  ;;  %v1354_v4 = vld [vmem:[#allocation2 + $0x108] sm:$0xff]  ;;  %v1355_v20 = vld [vmem:[#allocation2 + $0x110] sm:$0xff]  ;;  %v10814_v21 = vpack.c.bf16 %v1631_v45, %v1630_v41  ;;  %v10827_v52 = vpack.c.bf16 %v1633_v34, %v1632_v26  ;;  %v1636_v37 = vld [vmem:[#allocation2 + $0x79] sm:$0xff] }
 0x2ae   : > { %1310 = vst.msk [vmem:[#allocation2 + $0xd9] sm:$0xff] %vm652_vm2, %v1236_v39  ;;  %v1238_v61 = vmul.f32 %v1206_v6, %v1110_v36  ;;  %v1356_v25 = vld [vmem:[#allocation2 + $0x120] sm:$0xff]  ;;  %v1357_v55 = vld [vmem:[#allocation2 + $0x128] sm:$0xff]  ;;  %v10789_v57 = vpack.c.bf16 %v1355_v20, %v1354_v4  ;;  %v1649_v4 = vld [vmem:[#allocation2 + $0x111] sm:$0xff] }
 0x2af   : > { %1311 = vst.msk [vmem:[#allocation2 + $0xe1] sm:$0xff] %vm652_vm2, %v1237_v15  ;;  %v1239_v16 = vmul.f32 %v1207_v58, %v1111_v47  ;;  %v1348_v35 = vld [vmem:[#allocation2 + $0xc0] sm:$0xff]  ;;  %v10791_v10 = vpack.c.bf16 %v1357_v55, %v1356_v25  ;;  %v1635_v62 = vld [vmem:[#allocation2 + $0x69] sm:$0xff]  ;;  %v1641_v47 = vld [vmem:[#allocation2 + $0xb1] sm:$0xff] }
 0x2b0   : > { %8370 = vmatmul.mubr.msk.bf16.gmra.mrb[12].mxu1 %vm652_vm2, %v10761_v22  ;;  %1312 = vst.msk [vmem:[#allocation2 + $0xf1] sm:$0xff] %vm652_vm2, %v1238_v61  ;;  %v1349_v46 = vld [vmem:[#allocation2 + $0xc8] sm:$0xff]  ;;  %v1639_v39 = vld [vmem:[#allocation2 + $0x99] sm:$0xff]  ;;  %v1654_v53 = vld [vmem:[#allocation2 + $0x151] sm:$0xff] }
 0x2b1   : > { %8373 = vmatprep.mubr.msk.bf16.mxu1 %vm652_vm2, %v10764_v7  ;;  %1313 = vst.msk [vmem:[#allocation2 + $0xf9] sm:$0xff] %vm652_vm2, %v1239_v16  ;;  %v10775_v60 = vpack.c.bf16 %v1349_v46, %v1348_v35  ;;  %v1634_v50 = vld [vmem:[#allocation2 + $0x61] sm:$0xff]  ;;  %v10837_v6 = vpack.c.bf16 %v1639_v39, %v1638_v40  ;;  %v1640_v15 = vld [vmem:[#allocation2 + $0xa9] sm:$0xff]  ;;  %v1655_v12 = vld [vmem:[#allocation2 + $0x159] sm:$0xff] }
 0x2b2   : > { %v10829_v30 = vpack.c.bf16 %v1635_v62, %v1634_v50  ;;  %v1637_v32 = vld [vmem:[#allocation2 + $0x81] sm:$0xff]  ;;  %v1643_v61 = vld [vmem:[#allocation2 + $0xc9] sm:$0xff]  ;;  %v10843_v16 = vpack.c.bf16 %v1641_v47, %v1640_v15  ;;  %v10869_v43 = vpack.c.bf16 %v1655_v12, %v1654_v53  ;;  %v1657_v2 = vld [vmem:[#allocation2 + $0x171] sm:$0xff] }
 0x2b3   : > { %v10835_v36 = vpack.c.bf16 %v1637_v32, %v1636_v37  ;;  %v1642_v58 = vld [vmem:[#allocation2 + $0xc1] sm:$0xff]  ;;  %v1651_v25 = vld [vmem:[#allocation2 + $0x129] sm:$0xff]  ;;  %v1924_v34 = vld [vmem:[#allocation2 + $0x32] sm:$0xff]  ;;  %v2313_v37 = vsel %vm1429_vm5, %v10819_v9, 0 }
 0x2b4   : > { %v10845_v44 = vpack.c.bf16 %v1643_v61, %v1642_v58  ;;  %v1650_v20 = vld [vmem:[#allocation2 + $0x121] sm:$0xff]  ;;  %v1656_v14 = vld [vmem:[#allocation2 + $0x169] sm:$0xff]  ;;  %v1927_v15 = vld [vmem:[#allocation2 + $0x52] sm:$0xff] }
 0x2b5   : > { %v1350_v49 = vld [vmem:[#allocation2 + $0xd8] sm:$0xff]  ;;  %v10861_v27 = vpack.c.bf16 %v1651_v25, %v1650_v20  ;;  %v1653_v13 = vld [vmem:[#allocation2 + $0x141] sm:$0xff]  ;;  %v10875_v45 = vpack.c.bf16 %v1657_v2, %v1656_v14  ;;  %v1926_v39 = vld [vmem:[#allocation2 + $0x4a] sm:$0xff] }
 0x2b6   : > { %v1351_v8 = vld [vmem:[#allocation2 + $0xe0] sm:$0xff]  ;;  %v10867_v18 = vpack.c.bf16 %v1653_v13, %v1652_v38  ;;  %v7749_v40 = vld [vmem:[%s12476_s5 + $0x8] sm:$0x3]  ;;  %v1929_v58 = vld [vmem:[#allocation2 + $0x6a] sm:$0xff] }
 0x2b7   : > { %v1352_v51 = vld [vmem:[#allocation2 + $0xf0] sm:$0xff]  ;;  %v10781_v28 = vpack.c.bf16 %v1351_v8, %v1350_v49  ;;  %v1644_v3 = vld [vmem:[#allocation2 + $0xd9] sm:$0xff]  ;;  %v1645_v35 = vld [vmem:[#allocation2 + $0xe1] sm:$0xff] }
 0x2b8   : > { %8374 = vmatmul.mubr.msk.bf16.gmra.mrb[16].mxu1 %vm652_vm2, %v10773_v31  ;;  %v1353_v24 = vld [vmem:[#allocation2 + $0xf8] sm:$0xff]  ;;  %v10851_v8 = vpack.c.bf16 %v1645_v35, %v1644_v3  ;;  %v1920_v59 = vld [vmem:[#allocation2 + $0x2] sm:$0xff]  ;;  %v1934_v20 = vld [vmem:[#allocation2 + $0xaa] sm:$0xff] }
 0x2b9   : > { %8377 = vmatprep.mubr.msk.bf16.mxu1 %vm652_vm2, %v10775_v60  ;;  %v10783_v17 = vpack.c.bf16 %v1353_v24, %v1352_v51  ;;  %v1646_v46 = vld [vmem:[#allocation2 + $0xf1] sm:$0xff]  ;;  %v1647_v49 = vld [vmem:[#allocation2 + $0xf9] sm:$0xff]  ;;  %v1648_v24 = vld [vmem:[#allocation2 + $0x109] sm:$0xff] }
 0x2ba   : > { %v10853_v51 = vpack.c.bf16 %v1647_v49, %v1646_v46  ;;  %v10859_v55 = vpack.c.bf16 %v1649_v4, %v1648_v24  ;;  %v1923_v26 = vld [vmem:[#allocation2 + $0x22] sm:$0xff]  ;;  %v1925_v50 = vld [vmem:[#allocation2 + $0x3a] sm:$0xff]  ;;  %v1932_v46 = vld [vmem:[#allocation2 + $0x92] sm:$0xff] }
 0x2bb   : > { %v10884_v32 = vpack.c.bf16 %v1925_v50, %v1924_v34  ;;  %v1928_v47 = vld [vmem:[#allocation2 + $0x62] sm:$0xff]  ;;  %v1930_v3 = vld [vmem:[#allocation2 + $0x7a] sm:$0xff]  ;;  %v1935_v25 = vld [vmem:[#allocation2 + $0xb2] sm:$0xff] }
 0x2bc   : > { %v10896_v61 = vpack.c.bf16 %v1929_v58, %v1928_v47  ;;  %v1931_v35 = vld [vmem:[#allocation2 + $0x82] sm:$0xff]  ;;  %v1933_v49 = vld [vmem:[#allocation2 + $0x9a] sm:$0xff]  ;;  %v1937_v13 = vld [vmem:[#allocation2 + $0xca] sm:$0xff]  ;;  %v10910_v53 = vpack.c.bf16 %v1935_v25, %v1934_v20 }
 0x2bd   : > { %v10902_v24 = vpack.c.bf16 %v1931_v35, %v1930_v3  ;;  %v10904_v4 = vpack.c.bf16 %v1933_v49, %v1932_v46  ;;  %v1936_v38 = vld [vmem:[#allocation2 + $0xc2] sm:$0xff]  ;;  %v1940_v14 = vld [vmem:[#allocation2 + $0xf2] sm:$0xff]  ;;  %v1941_v2 = vld [vmem:[#allocation2 + $0xfa] sm:$0xff] }
 0x2be   : > { %v10912_v12 = vpack.c.bf16 %v1937_v13, %v1936_v38  ;;  %v1943_v34 = vld [vmem:[#allocation2 + $0x112] sm:$0xff]  ;;  %v1944_v50 = vld [vmem:[#allocation2 + $0x122] sm:$0xff]  ;;  %v1946_v47 = vld [vmem:[#allocation2 + $0x13a] sm:$0xff]  ;;  %v2607_v13 = vsel %vm1429_vm5, %v7749_v40, 0 }
 0x2bf   : > { %v1947_v58 = vld [vmem:[#allocation2 + $0x142] sm:$0xff]  ;;  %v1948_v3 = vld [vmem:[#allocation2 + $0x152] sm:$0xff]  ;;  %v1949_v35 = vld [vmem:[#allocation2 + $0x15a] sm:$0xff] }
 0x2c0   : > { %8378 = vmatmul.mubr.msk.bf16.gmra.mrb[20].mxu1 %vm652_vm2, %v10781_v28  ;;  %v10934_v46 = vpack.c.bf16 %v1947_v58, %v1946_v47  ;;  %v10936_v49 = vpack.c.bf16 %v1949_v35, %v1948_v3  ;;  %v1950_v20 = vld [vmem:[#allocation2 + $0x16a] sm:$0xff]  ;;  %v1951_v25 = vld [vmem:[#allocation2 + $0x172] sm:$0xff] }
 0x2c1   : > { %8381 = vmatprep.mubr.msk.bf16.mxu1 %vm652_vm2, %v10783_v17  ;;  %v10942_v38 = vpack.c.bf16 %v1951_v25, %v1950_v20  ;;  %v3098_v47 = vld [vmem:[#allocation2 + $0x38] sm:$0xff]  ;;  %v3099_v35 = vld [vmem:[#allocation2 + $0x48] sm:$0xff]  ;;  %v3100_v20 = vld [vmem:[#allocation2 + $0x50] sm:$0xff] }
 0x2c2   : > { %v3130_v25 = vpack.c.bf16 %v3100_v20, %v3099_v35 }
 0x2c8   : > { %8382 = vmatmul.mubr.msk.bf16.gmra.mrb[24].mxu1 %vm652_vm2, %v10789_v57 }
 0x2c9   : > { %8385 = vmatprep.mubr.msk.bf16.mxu1 %vm652_vm2, %v10791_v10 }
 0x2d0   : > { %8386 = vmatmul.mubr.msk.bf16.gmra.mrb[28].mxu1 %vm652_vm2, %v10797_v63 }
 0x2d1   : > { %8389 = vmatprep.mubr.msk.bf16.mxu1 %vm652_vm2, %v10799_v56 }
 0x2d8   : > { %8390 = vmatmul.mubr.msk.bf16.gmra.mrb[32].mxu1 %vm652_vm2, %v10805_v42 }
 0x2d9   : > { %8395 = vmatprep.mubr.msk.bf16.mxu1 %vm652_vm2, %v1658_v29  ;;  %v1921_v29 = vld [vmem:[#allocation2 + $0xa] sm:$0xff] }
 0x2da   : > { %v1952_v41 = vpack.c.bf16 %v1921_v29, %v1920_v59  ;;  %v1938_v59 = vld [vmem:[#allocation2 + $0xda] sm:$0xff]  ;;  %v1939_v29 = vld [vmem:[#allocation2 + $0xe2] sm:$0xff] }
 0x2e0   : > { %8396 = vmatmul.mubr.msk.bf16.vlgmr.msra.gmra.mrb[4].mxu1 %vm652_vm2, %v10810_v23 }
 0x2e1   : > { %8428 = vmatpush3.bf16.msra.mxu1 %v2019_v48  ;;  %8399 = vmatprep.mubr.msk.bf16.mxu1 %vm652_vm2, %v10814_v21  ;;  %v1922_v48 = vld [vmem:[#allocation2 + $0x1a] sm:$0xff] }
 0x2e2   : > { %9660 = vmatprep.subr.msk.bf16.mxu1 %vm1429_vm5, %v10819_v9  ;;  %v10880_v62 = vpack.c.bf16 %v1923_v26, %v1922_v48  ;;  %v10894_v9 = vpack.c.bf16 %v1927_v15, %v1926_v39  ;;  %v10920_v48 = vpack.c.bf16 %v1941_v2, %v1940_v14  ;;  %v1942_v26 = vld [vmem:[#allocation2 + $0x10a] sm:$0xff] }
 0x2e3   : > { %v10926_v39 = vpack.c.bf16 %v1943_v34, %v1942_v26  ;;  %v2539_v14 = vld [vmem:[#allocation2 + $0x189] sm:$0xff] }
 0x2e4   : > { %v7800_v34 = vld [vmem:[%s12476_s5 + $0xe] sm:$0x3] }
 0x2e8   : > { %8400 = vmatmul.mubr.msk.bf16.gmra.mrb[8].mxu1 %vm652_vm2, %v10827_v52 }
 0x2e9   : > { %8403 = vmatprep.mubr.msk.bf16.mxu1 %vm652_vm2, %v10829_v30 }
 0x2f0   : > { %8404 = vmatmul.mubr.msk.bf16.gmra.mrb[12].mxu1 %vm652_vm2, %v10835_v36 }
 0x2f1   : > { %8407 = vmatprep.mubr.msk.bf16.mxu1 %vm652_vm2, %v10837_v6 }
 0x2f8   : > { %8408 = vmatmul.mubr.msk.bf16.gmra.mrb[16].mxu1 %vm652_vm2, %v10843_v16 }
 0x2f9   : > { %8411 = vmatprep.mubr.msk.bf16.mxu1 %vm652_vm2, %v10845_v44 }
 0x300   : > { %8412 = vmatmul.mubr.msk.bf16.gmra.mrb[20].mxu1 %vm652_vm2, %v10851_v8 }
 0x301   : > { %8415 = vmatprep.mubr.msk.bf16.mxu1 %vm652_vm2, %v10853_v51 }
 0x308   : > { %8416 = vmatmul.mubr.msk.bf16.gmra.mrb[24].mxu1 %vm652_vm2, %v10859_v55 }
 0x309   : > { %8419 = vmatprep.mubr.msk.bf16.mxu1 %vm652_vm2, %v10861_v27 }
 0x310   : > { %8420 = vmatmul.mubr.msk.bf16.gmra.mrb[28].mxu1 %vm652_vm2, %v10867_v18 }
 0x311   : > { %8423 = vmatprep.mubr.msk.bf16.mxu1 %vm652_vm2, %v10869_v43 }
 0x318   : > { %8424 = vmatmul.mubr.msk.bf16.gmra.mrb[32].mxu1 %vm652_vm2, %v10875_v45 }
 0x319   : > { %8429 = vmatprep.mubr.msk.bf16.mxu1 %vm652_vm2, %v1952_v41  ;;  %v10918_v41 = vpack.c.bf16 %v1939_v29, %v1938_v59  ;;  %v7766_v59 = vld [vmem:[%s12476_s5 + $0xa] sm:$0x3]  ;;  %v7783_v29 = vld [vmem:[%s12476_s5 + $0xc] sm:$0x3] }
 0x31a   : > { %v3196_v26 = vsel %vm1429_vm5, %v7783_v29, 0 }
 0x320   : > { %8430 = vmatmul.mubr.msk.bf16.vlgmr.msra.gmra.mrb[4].mxu1 %vm652_vm2, %v10880_v62 }
 0x321   : > { %8462 = vmatpush3.bf16.msra.mxu1 %v2313_v37  ;;  %8433 = vmatprep.mubr.msk.bf16.mxu1 %vm652_vm2, %v10884_v32  ;;  %v1945_v37 = vld [vmem:[#allocation2 + $0x12a] sm:$0xff] }
 0x322   : > { %9661 = vmatprep.subr.msk.bf16.mxu1 %vm1429_vm5, %v7749_v40  ;;  %v10928_v15 = vpack.c.bf16 %v1945_v37, %v1944_v50  ;;  %v2901_v40 = vsel %vm1429_vm5, %v7766_v59, 0  ;;  %v2833_v50 = vld [vmem:[#allocation2 + $0x18a] sm:$0xff] }
 0x323   : > { %v3097_v37 = vld [vmem:[#allocation2 + $0x30] sm:$0xff] }
 0x324   : > { %v3129_v3 = vpack.c.bf16 %v3098_v47, %v3097_v37 }
 0x328   : > { %8434 = vmatmul.mubr.msk.bf16.gmra.mrb[8].mxu1 %vm652_vm2, %v10894_v9 }
 0x329   : > { %8437 = vmatprep.mubr.msk.bf16.mxu1 %vm652_vm2, %v10896_v61 }
 0x330   : > { %8438 = vmatmul.mubr.msk.bf16.gmra.mrb[12].mxu1 %vm652_vm2, %v10902_v24 }
 0x331   : > { %8441 = vmatprep.mubr.msk.bf16.mxu1 %vm652_vm2, %v10904_v4 }
 0x338   : > { %8442 = vmatmul.mubr.msk.bf16.gmra.mrb[16].mxu1 %vm652_vm2, %v10910_v53 }
 0x339   : > { %8445 = vmatprep.mubr.msk.bf16.mxu1 %vm652_vm2, %v10912_v12 }
 0x340   : > { %8446 = vmatmul.mubr.msk.bf16.gmra.mrb[20].mxu1 %vm652_vm2, %v10918_v41 }
 0x341   : > { %8449 = vmatprep.mubr.msk.bf16.mxu1 %vm652_vm2, %v10920_v48 }
 0x348   : > { %8450 = vmatmul.mubr.msk.bf16.gmra.mrb[24].mxu1 %vm652_vm2, %v10926_v39 }
 0x349   : > { %8453 = vmatprep.mubr.msk.bf16.mxu1 %vm652_vm2, %v10928_v15 }
 0x350   : > { %8454 = vmatmul.mubr.msk.bf16.gmra.mrb[28].mxu1 %vm652_vm2, %v10934_v46 }
 0x351   : > { %8457 = vmatprep.mubr.msk.bf16.mxu1 %vm652_vm2, %v10936_v49 }
 0x358   : > { %8458 = vmatmul.mubr.msk.bf16.gmra.mrb[32].mxu1 %vm652_vm2, %v10942_v38 }
 0x359   : > { %8463 = vmatprep.mubr.msk.bf16.mxu1 %vm652_vm2, %v10709_v11  ;;  %v2244_v11 = vld [vmem:[#allocation2 + $0x180] sm:$0xff] }
 0x360   : > { %8464 = vmatmul.mubr.msk.bf16.vlgmr.msra.gmra.mrb[4].mxu1 %vm652_vm2, %v10724_v54  ;;  %v2245_v54 = vld [vmem:[#allocation2 + $0x188] sm:$0xff] }
 0x361   : > { %8496 = vmatpush3.bf16.msra.mxu1 %v2607_v13  ;;  %8467 = vmatprep.mubr.msk.bf16.mxu1 %vm652_vm2, %v10743_v5  ;;  %v10981_v5 = vpack.c.bf16 %v2245_v54, %v2244_v11  ;;  %v3490_v13 = vsel %vm1429_vm5, %v7800_v34, 0 }
 0x362   : > { %9662 = vmatprep.subr.msk.bf16.mxu1 %vm1429_vm5, %v7766_v59  ;;  %v7817_v59 = vld [vmem:[%s12476_s5 + $0x10] sm:$0x3] }
 0x368   : > { %8468 = vmatmul.mubr.msk.bf16.gmra.mrb[8].mxu1 %vm652_vm2, %v10747_v33 }
 0x369   : > { %8471 = vmatprep.mubr.msk.bf16.mxu1 %vm652_vm2, %v10761_v22 }
 0x370   : > { %8472 = vmatmul.mubr.msk.bf16.gmra.mrb[12].mxu1 %vm652_vm2, %v10764_v7 }
 0x371   : > { %8475 = vmatprep.mubr.msk.bf16.mxu1 %vm652_vm2, %v10773_v31 }
 0x378   : > { %8476 = vmatmul.mubr.msk.bf16.gmra.mrb[16].mxu1 %vm652_vm2, %v10775_v60 }
 0x379   : > { %8479 = vmatprep.mubr.msk.bf16.mxu1 %vm652_vm2, %v10781_v28 }
 0x380   : > { %8480 = vmatmul.mubr.msk.bf16.gmra.mrb[20].mxu1 %vm652_vm2, %v10783_v17 }
 0x381   : > { %8483 = vmatprep.mubr.msk.bf16.mxu1 %vm652_vm2, %v10789_v57 }
 0x388   : > { %8484 = vmatmul.mubr.msk.bf16.gmra.mrb[24].mxu1 %vm652_vm2, %v10791_v10 }
 0x389   : > { %8487 = vmatprep.mubr.msk.bf16.mxu1 %vm652_vm2, %v10797_v63 }
 0x390   : > { %8488 = vmatmul.mubr.msk.bf16.gmra.mrb[28].mxu1 %vm652_vm2, %v10799_v56 }
 0x391   : > { %8491 = vmatprep.mubr.msk.bf16.mxu1 %vm652_vm2, %v10805_v42 }
 0x398   : > { %8492 = vmatmul.mubr.msk.bf16.gmra.mrb[32].mxu1 %vm652_vm2, %v10981_v5 }
 0x399   : > { %8497 = vmatprep.mubr.msk.bf16.mxu1 %vm652_vm2, %v10810_v23  ;;  %v2538_v23 = vld [vmem:[#allocation2 + $0x181] sm:$0xff] }
 0x39a   : > { %v11020_v2 = vpack.c.bf16 %v2539_v14, %v2538_v23 }
 0x3a0   : > { %8498 = vmatmul.mubr.msk.bf16.vlgmr.msra.gmra.mrb[4].mxu1 %vm652_vm2, %v10814_v21 }
 0x3a1   : > { %8530 = vmatpush3.bf16.msra.mxu1 %v2901_v40  ;;  %8501 = vmatprep.mubr.msk.bf16.mxu1 %vm652_vm2, %v10827_v52 }
 0x3a2   : > { %9663 = vmatprep.subr.msk.bf16.mxu1 %vm1429_vm5, %v7783_v29 }
 0x3a8   : > { %8502 = vmatmul.mubr.msk.bf16.gmra.mrb[8].mxu1 %vm652_vm2, %v10829_v30 }
 0x3a9   : > { %8505 = vmatprep.mubr.msk.bf16.mxu1 %vm652_vm2, %v10835_v36 }
 0x3b0   : > { %8506 = vmatmul.mubr.msk.bf16.gmra.mrb[12].mxu1 %vm652_vm2, %v10837_v6 }
 0x3b1   : > { %8509 = vmatprep.mubr.msk.bf16.mxu1 %vm652_vm2, %v10843_v16 }
 0x3b8   : > { %8510 = vmatmul.mubr.msk.bf16.gmra.mrb[16].mxu1 %vm652_vm2, %v10845_v44 }
 0x3b9   : > { %8513 = vmatprep.mubr.msk.bf16.mxu1 %vm652_vm2, %v10851_v8 }
 0x3c0   : > { %8514 = vmatmul.mubr.msk.bf16.gmra.mrb[20].mxu1 %vm652_vm2, %v10853_v51 }
 0x3c1   : > { %8517 = vmatprep.mubr.msk.bf16.mxu1 %vm652_vm2, %v10859_v55 }
 0x3c8   : > { %8518 = vmatmul.mubr.msk.bf16.gmra.mrb[24].mxu1 %vm652_vm2, %v10861_v27 }
 0x3c9   : > { %8521 = vmatprep.mubr.msk.bf16.mxu1 %vm652_vm2, %v10867_v18 }
 0x3d0   : > { %8522 = vmatmul.mubr.msk.bf16.gmra.mrb[28].mxu1 %vm652_vm2, %v10869_v43 }
 0x3d1   : > { %8525 = vmatprep.mubr.msk.bf16.mxu1 %vm652_vm2, %v10875_v45 }
 0x3d8   : > { %8526 = vmatmul.mubr.msk.bf16.gmra.mrb[32].mxu1 %vm652_vm2, %v11020_v2 }
 0x3d9   : > { %8531 = vmatprep.mubr.msk.bf16.mxu1 %vm652_vm2, %v10880_v62  ;;  %v2832_v62 = vld [vmem:[#allocation2 + $0x182] sm:$0xff] }
 0x3da   : > { %v11059_v58 = vpack.c.bf16 %v2833_v50, %v2832_v62 }
 0x3e0   : > { %8532 = vmatmul.mubr.msk.bf16.vlgmr.msra.gmra.mrb[4].mxu1 %vm652_vm2, %v10884_v32 }
 0x3e1   : > { %8564 = vmatpush3.bf16.msra.mxu1 %v3196_v26  ;;  %8535 = vmatprep.mubr.msk.bf16.mxu1 %vm652_vm2, %v10894_v9 }
 0x3e2   : > { %9664 = vmatprep.subr.msk.bf16.mxu1 %vm1429_vm5, %v7800_v34 }
 0x3e8   : > { %8536 = vmatmul.mubr.msk.bf16.gmra.mrb[8].mxu1 %vm652_vm2, %v10896_v61 }
 0x3e9   : > { %8539 = vmatprep.mubr.msk.bf16.mxu1 %vm652_vm2, %v10902_v24 }
 0x3f0   : > { %8540 = vmatmul.mubr.msk.bf16.gmra.mrb[12].mxu1 %vm652_vm2, %v10904_v4 }
 0x3f1   : > { %8543 = vmatprep.mubr.msk.bf16.mxu1 %vm652_vm2, %v10910_v53 }
 0x3f8   : > { %8544 = vmatmul.mubr.msk.bf16.gmra.mrb[16].mxu1 %vm652_vm2, %v10912_v12 }
 0x3f9   : > { %8547 = vmatprep.mubr.msk.bf16.mxu1 %vm652_vm2, %v10918_v41 }
 0x400   : > { %8548 = vmatmul.mubr.msk.bf16.gmra.mrb[20].mxu1 %vm652_vm2, %v10920_v48 }
 0x401   : > { %8551 = vmatprep.mubr.msk.bf16.mxu1 %vm652_vm2, %v10926_v39 }
 0x408   : > { %8552 = vmatmul.mubr.msk.bf16.gmra.mrb[24].mxu1 %vm652_vm2, %v10928_v15 }
 0x409   : > { %8555 = vmatprep.mubr.msk.bf16.mxu1 %vm652_vm2, %v10934_v46 }
 0x410   : > { %8556 = vmatmul.mubr.msk.bf16.gmra.mrb[28].mxu1 %vm652_vm2, %v10936_v49 }
 0x411   : > { %8559 = vmatprep.mubr.msk.bf16.mxu1 %vm652_vm2, %v10942_v38 }
 0x418   : > { %8560 = vmatmul.mubr.msk.bf16.gmra.mrb[32].mxu1 %vm652_vm2, %v11059_v58 }
 0x419   : > { %8565 = vmatprep.mubr.msk.bf16.mxu1 %vm652_vm2, %v3129_v3 }
 0x420   : > { %8566 = vmatmul.mubr.msk.bf16.vlgmr.msra.gmra.mrb[4].mxu1 %vm652_vm2, %v3130_v25 }
 0x421   : > { %8598 = vmatpush3.bf16.msra.mxu1 %v3490_v13  ;;  %8569 = vmatprep.mubr.msk.bf16.mxu1 %vm652_vm2, %v10747_v33  ;;  %v3127_v33 = vld [vmem:[#allocation2 + $0x198] sm:$0xff] }
 0x422   : > { %9665 = vmatprep.subr.msk.bf16.mxu1 %vm1429_vm5, %v7817_v59 }
 0x428   : > { %8570 = vmatmul.mubr.msk.bf16.gmra.mrb[8].mxu1 %vm652_vm2, %v10761_v22  ;;  %v3128_v22 = vld [vmem:[#allocation2 + $0x1a0] sm:$0xff] }
 0x429   : > { %8573 = vmatprep.mubr.msk.bf16.mxu1 %vm652_vm2, %v10764_v7  ;;  %v3144_v7 = vpack.c.bf16 %v3128_v22, %v3127_v33 }
 0x430   : > { %8574 = vmatmul.mubr.msk.bf16.gmra.mrb[12].mxu1 %vm652_vm2, %v10773_v31  ;;  %v3784_v31 = vsel %vm1429_vm5, %v7817_v59, 0 }
 0x431   : > { %8577 = vmatprep.mubr.msk.bf16.mxu1 %vm652_vm2, %v10775_v60  ;;  %v3421_v60 = vld [vmem:[#allocation2 + $0x199] sm:$0xff] }
 0x438   : > { %8578 = vmatmul.mubr.msk.bf16.gmra.mrb[16].mxu1 %vm652_vm2, %v10781_v28  ;;  %v3422_v28 = vld [vmem:[#allocation2 + $0x1a1] sm:$0xff] }
 0x439   : > { %8581 = vmatprep.mubr.msk.bf16.mxu1 %vm652_vm2, %v10783_v17  ;;  %v3438_v17 = vpack.c.bf16 %v3422_v28, %v3421_v60 }
 0x440   : > { %8582 = vmatmul.mubr.msk.bf16.gmra.mrb[20].mxu1 %vm652_vm2, %v10789_v57  ;;  %v3715_v57 = vld [vmem:[#allocation2 + $0x19a] sm:$0xff] }
 0x441   : > { %8585 = vmatprep.mubr.msk.bf16.mxu1 %vm652_vm2, %v10791_v10  ;;  %v3716_v10 = vld [vmem:[#allocation2 + $0x1a2] sm:$0xff] }
 0x448   : > { %8586 = vmatmul.mubr.msk.bf16.gmra.mrb[24].mxu1 %vm652_vm2, %v10797_v63  ;;  %v3732_v63 = vpack.c.bf16 %v3716_v10, %v3715_v57 }
 0x449   : > { %8589 = vmatprep.mubr.msk.bf16.mxu1 %vm652_vm2, %v10799_v56  ;;  %v11171_v56 = vld [vmem:[%s12480_s9] sm:$0xff] }
 0x44a   : > { %8666 = vmatpush3.msra.mxu0 %v11171_v56 }
 0x44b   : > { %8670 = vmatprep.subr.mxu0 %v9859_v1 }
 0x450   : > { %8590 = vmatmul.mubr.msk.bf16.gmra.mrb[28].mxu1 %vm652_vm2, %v10805_v42  ;;  %v572_v42 = vld [vmem:[%s12479_s8] sm:$0x1] }
 0x451   : > { %8593 = vmatprep.mubr.msk.bf16.mxu1 %vm652_vm2, %v10981_v5 }
 0x458   : > { %8594 = vmatmul.mubr.msk.bf16.gmra.mrb[32].mxu1 %vm652_vm2, %v3144_v7 }
 0x459   : > { %8599 = vmatprep.mubr.msk.bf16.mxu1 %vm652_vm2, %v10814_v21  ;;  %v648_v21 = vadd.f32 %v10155_v0, %v572_v42 }
 0x460   : > { %8600 = vmatmul.mubr.msk.bf16.vlgmr.msra.gmra.mrb[4].mxu1 %vm652_vm2, %v10827_v52  ;;  %v569_v52 = vld [vmem:[%s12477_s6] sm:$0x1] }
 0x461   : > { %8632 = vmatpush3.bf16.msra.mxu1 %v3784_v31  ;;  %8603 = vmatprep.mubr.msk.bf16.mxu1 %vm652_vm2, %v10829_v30  ;;  %v651_v30 = vadd.f32 %v648_v21, %v569_v52 }
 0x468   : > { %8604 = vmatmul.mubr.msk.bf16.gmra.mrb[8].mxu1 %vm652_vm2, %v10835_v36  ;;  %v11183_v36 = vrot.slane %v651_v30, %v10157_v19 }
 0x469   : > { %8607 = vmatprep.mubr.msk.bf16.mxu1 %vm652_vm2, %v10837_v6 }
 0x470   : > { %8608 = vmatmul.mubr.msk.bf16.gmra.mrb[12].mxu1 %vm652_vm2, %v10843_v16 }
 0x471   : > { %8611 = vmatprep.mubr.msk.bf16.mxu1 %vm652_vm2, %v10845_v44 }
 0x478   : > { %8612 = vmatmul.mubr.msk.bf16.gmra.mrb[16].mxu1 %vm652_vm2, %v10851_v8 }
 0x479   : > { %8615 = vmatprep.mubr.msk.bf16.mxu1 %vm652_vm2, %v10853_v51 }
 0x480   : > { %8616 = vmatmul.mubr.msk.bf16.gmra.mrb[20].mxu1 %vm652_vm2, %v10859_v55 }
 0x481   : > { %8619 = vmatprep.mubr.msk.bf16.mxu1 %vm652_vm2, %v10861_v27 }
 0x488   : > { %8620 = vmatmul.mubr.msk.bf16.gmra.mrb[24].mxu1 %vm652_vm2, %v10867_v18 }
 0x489   : > { %8623 = vmatprep.mubr.msk.bf16.mxu1 %vm652_vm2, %v10869_v43 }
 0x490   : > { %8624 = vmatmul.mubr.msk.bf16.gmra.mrb[28].mxu1 %vm652_vm2, %v10875_v45 }
 0x491   : > { %8627 = vmatprep.mubr.msk.bf16.mxu1 %vm652_vm2, %v11020_v2 }
 0x498   : > { %8628 = vmatmul.mubr.msk.bf16.gmra.mrb[32].mxu1 %vm652_vm2, %v3438_v17 }
 0x499   : > { %8633 = vmatprep.mubr.msk.bf16.mxu1 %vm652_vm2, %v10884_v32 }
 0x4a0   : > { %8634 = vmatmul.mubr.msk.bf16.vlgmr.msra.gmra.mrb[4].mxu1 %vm652_vm2, %v10894_v9 }
 0x4a1   : > { %8637 = vmatprep.mubr.msk.bf16.mxu1 %vm652_vm2, %v10896_v61 }
 0x4a8   : > { %8638 = vmatmul.mubr.msk.bf16.gmra.mrb[8].mxu1 %vm652_vm2, %v10902_v24 }
 0x4a9   : > { %8641 = vmatprep.mubr.msk.bf16.mxu1 %vm652_vm2, %v10904_v4 }
 0x4b0   : > { %8642 = vmatmul.mubr.msk.bf16.gmra.mrb[12].mxu1 %vm652_vm2, %v10910_v53 }
 0x4b1   : > { %8645 = vmatprep.mubr.msk.bf16.mxu1 %vm652_vm2, %v10912_v12 }
 0x4b8   : > { %8646 = vmatmul.mubr.msk.bf16.gmra.mrb[16].mxu1 %vm652_vm2, %v10918_v41 }
 0x4b9   : > { %8649 = vmatprep.mubr.msk.bf16.mxu1 %vm652_vm2, %v10920_v48 }
 0x4c0   : > { %8650 = vmatmul.mubr.msk.bf16.gmra.mrb[20].mxu1 %vm652_vm2, %v10926_v39 }
 0x4c1   : > { %8653 = vmatprep.mubr.msk.bf16.mxu1 %vm652_vm2, %v10928_v15 }
 0x4c8   : > { %8654 = vmatmul.mubr.msk.bf16.gmra.mrb[24].mxu1 %vm652_vm2, %v10934_v46 }
 0x4c9   : > { %8657 = vmatprep.mubr.msk.bf16.mxu1 %vm652_vm2, %v10936_v49 }
 0x4d0   : > { %8658 = vmatmul.mubr.msk.bf16.gmra.mrb[28].mxu1 %vm652_vm2, %v10942_v38 }
 0x4d1   : > { %8661 = vmatprep.mubr.msk.bf16.mxu1 %vm652_vm2, %v11059_v58 }
 0x4d8   : > { %8662 = vmatmul.mubr.msk.bf16.gmra.mrb[32].mxu1 %vm652_vm2, %v3732_v63 }
 0x573   : > { %v8635_v6 = vpop.f32.mrb[4].mxu1 }
 0x574   : > { %v11186_v16 = vadd.f32 %v8635_v6, %v11183_v36  ;;  %v3820_v44 = vpop.f32.mrb[5].mxu1 }
 0x575   : > { %v11189_v8 = vadd.f32 %v3820_v44, %v11183_v36  ;;  %v8636_v51 = vpop.f32.mrb[6].mxu1 }
 0x576   : > { %v11192_v55 = vadd.f32 %v8636_v51, %v11183_v36  ;;  %v3823_v0 = vpop.f32.mrb[7].mxu1  ;;  %v3983_v32 = vsel %vm3979_vm8, %v11186_v16, 0.0 }
 0x577   : > { %v11195_v27 = vadd.f32 %v3823_v0, %v11183_v36  ;;  %v3980_v18 = vsel %vm3979_vm8, %v11189_v8, 0.0 }
 0x578   : > { %v3985_v53 = vsel %vm3979_vm8, %v11192_v55, 0.0 }
 0x579   : > { %v3981_v43 = vsel %vm3979_vm8, %v11195_v27, 0.0 }
 0x57a   : > { %v3982_v45 = vadd.f32 %v3981_v43, %v3980_v18 }
 0x57b   : > { %v8639_v9 = vpop.f32.mrb[8].mxu1 }
 0x57c   : > { %v3984_v61 = vadd.f32 %v3983_v32, %v3982_v45  ;;  %v11204_v24 = vadd.f32 %v8639_v9, %v11183_v36  ;;  %v3836_v4 = vpop.f32.mrb[9].mxu1 }
 0x57d   : > { %v11209_v12 = vadd.f32 %v3836_v4, %v11183_v36  ;;  %v8640_v41 = vpop.f32.mrb[10].mxu1 }
 0x57e   : > { %v3986_v48 = vadd.f32 %v3985_v53, %v3984_v61  ;;  %v11212_v39 = vadd.f32 %v8640_v41, %v11183_v36  ;;  %v3839_v15 = vpop.f32.mrb[11].mxu1  ;;  %v3991_v5 = vsel %vm3979_vm8, %v11204_v24, 0.0 }
 0x57f   : > { %v3987_v46 = vsel %vm3979_vm8, %v11209_v12, 0.0  ;;  %v11217_v49 = vadd.f32 %v3839_v15, %v11183_v36 }
 0x580   : > { %v3988_v38 = vadd.f32 %v3987_v46, %v3986_v48  ;;  %v3993_v2 = vsel %vm3979_vm8, %v11212_v39, 0.0 }
 0x581   : > { %v3989_v11 = vsel %vm3979_vm8, %v11217_v49, 0.0 }
 0x582   : > { %v3990_v54 = vadd.f32 %v3989_v11, %v3988_v38 }
 0x583   : > { %v8643_v40 = vpop.f32.mrb[12].mxu1 }
 0x584   : > { %v3992_v29 = vadd.f32 %v3991_v5, %v3990_v54  ;;  %v11224_v23 = vadd.f32 %v8643_v40, %v11183_v36  ;;  %v3852_v14 = vpop.f32.mrb[13].mxu1 }
 0x585   : > { %v11229_v26 = vadd.f32 %v3852_v14, %v11183_v36  ;;  %v8644_v34 = vpop.f32.mrb[14].mxu1 }
 0x586   : > { %v3994_v62 = vadd.f32 %v3993_v2, %v3992_v29  ;;  %v11232_v50 = vadd.f32 %v8644_v34, %v11183_v36  ;;  %v3855_v37 = vpop.f32.mrb[15].mxu1  ;;  %v3999_v25 = vsel %vm3979_vm8, %v11224_v23, 0.0 }
 0x587   : > { %v3995_v47 = vsel %vm3979_vm8, %v11229_v26, 0.0  ;;  %v11237_v58 = vadd.f32 %v3855_v37, %v11183_v36 }
 0x588   : > { %v3996_v3 = vadd.f32 %v3995_v47, %v3994_v62  ;;  %v4001_v7 = vsel %vm3979_vm8, %v11232_v50, 0.0 }
 0x589   : > { %v3997_v35 = vsel %vm3979_vm8, %v11237_v58, 0.0 }
 0x58a   : > { %v3998_v20 = vadd.f32 %v3997_v35, %v3996_v3 }
 0x58b   : > { %v8647_v13 = vpop.f32.mrb[16].mxu1 }
 0x58c   : > { %v4000_v59 = vadd.f32 %v3999_v25, %v3998_v20  ;;  %v11244_v33 = vadd.f32 %v8647_v13, %v11183_v36  ;;  %v3868_v22 = vpop.f32.mrb[17].mxu1 }
 0x58d   : > { %v11249_v31 = vadd.f32 %v3868_v22, %v11183_v36  ;;  %v8648_v60 = vpop.f32.mrb[18].mxu1 }
 0x58e   : > { %v4002_v28 = vadd.f32 %v4001_v7, %v4000_v59  ;;  %v11252_v17 = vadd.f32 %v8648_v60, %v11183_v36  ;;  %v3871_v57 = vpop.f32.mrb[19].mxu1  ;;  %v4007_v30 = vsel %vm3979_vm8, %v11244_v33, 0.0 }
 0x58f   : > { %v4003_v10 = vsel %vm3979_vm8, %v11249_v31, 0.0  ;;  %v11257_v63 = vadd.f32 %v3871_v57, %v11183_v36 }
 0x590   : > { %v4004_v42 = vadd.f32 %v4003_v10, %v4002_v28  ;;  %v4009_v18 = vsel %vm3979_vm8, %v11252_v17, 0.0 }
 0x591   : > { %v4005_v21 = vsel %vm3979_vm8, %v11257_v63, 0.0 }
 0x592   : > { %v4006_v52 = vadd.f32 %v4005_v21, %v4004_v42 }
 0x593   : > { %v8651_v6 = vpop.f32.mrb[20].mxu1 }
 0x594   : > { %v4008_v44 = vadd.f32 %v4007_v30, %v4006_v52  ;;  %v11264_v51 = vadd.f32 %v8651_v6, %v11183_v36  ;;  %v3884_v0 = vpop.f32.mrb[21].mxu1 }
 0x595   : > { %v11269_v43 = vadd.f32 %v3884_v0, %v11183_v36  ;;  %v8652_v45 = vpop.f32.mrb[22].mxu1 }
 0x596   : > { %v4010_v32 = vadd.f32 %v4009_v18, %v4008_v44  ;;  %v11272_v9 = vadd.f32 %v8652_v45, %v11183_v36  ;;  %v3887_v61 = vpop.f32.mrb[23].mxu1  ;;  %v4015_v46 = vsel %vm3979_vm8, %v11264_v51, 0.0 }
 0x597   : > { %v4011_v4 = vsel %vm3979_vm8, %v11269_v43, 0.0  ;;  %v11277_v53 = vadd.f32 %v3887_v61, %v11183_v36 }
 0x598   : > { %v4012_v41 = vadd.f32 %v4011_v4, %v4010_v32  ;;  %v4017_v40 = vsel %vm3979_vm8, %v11272_v9, 0.0 }
 0x599   : > { %v4013_v48 = vsel %vm3979_vm8, %v11277_v53, 0.0 }
 0x59a   : > { %v4014_v15 = vadd.f32 %v4013_v48, %v4012_v41 }
 0x59b   : > { %v8655_v38 = vpop.f32.mrb[24].mxu1 }
 0x59c   : > { %v4016_v11 = vadd.f32 %v4015_v46, %v4014_v15  ;;  %v11284_v54 = vadd.f32 %v8655_v38, %v11183_v36  ;;  %v3900_v5 = vpop.f32.mrb[25].mxu1 }
 0x59d   : > { %v11289_v29 = vadd.f32 %v3900_v5, %v11183_v36  ;;  %v8656_v14 = vpop.f32.mrb[26].mxu1 }
 0x59e   : > { %v4018_v2 = vadd.f32 %v4017_v40, %v4016_v11  ;;  %v11292_v34 = vadd.f32 %v8656_v14, %v11183_v36  ;;  %v3903_v62 = vpop.f32.mrb[27].mxu1  ;;  %v4023_v25 = vsel %vm3979_vm8, %v11284_v54, 0.0 }
 0x59f   : > { %v4019_v37 = vsel %vm3979_vm8, %v11289_v29, 0.0  ;;  %v11297_v47 = vadd.f32 %v3903_v62, %v11183_v36 }
 0x5a0   : > { %v4020_v3 = vadd.f32 %v4019_v37, %v4018_v2  ;;  %v4025_v60 = vsel %vm3979_vm8, %v11292_v34, 0.0 }
 0x5a1   : > { %v4021_v35 = vsel %vm3979_vm8, %v11297_v47, 0.0 }
 0x5a2   : > { %v4022_v20 = vadd.f32 %v4021_v35, %v4020_v3 }
 0x5a3   : > { %v8659_v13 = vpop.f32.mrb[28].mxu1 }
 0x5a4   : > { %v4024_v59 = vadd.f32 %v4023_v25, %v4022_v20  ;;  %v11304_v22 = vadd.f32 %v8659_v13, %v11183_v36  ;;  %v3916_v7 = vpop.f32.mrb[29].mxu1 }
 0x5a5   : > { %v11309_v28 = vadd.f32 %v3916_v7, %v11183_v36  ;;  %v8660_v57 = vpop.f32.mrb[30].mxu1 }
 0x5a6   : > { %v4026_v10 = vadd.f32 %v4025_v60, %v4024_v59  ;;  %v11312_v42 = vadd.f32 %v8660_v57, %v11183_v36  ;;  %v3919_v21 = vpop.f32.mrb[31].mxu1  ;;  %v4031_v18 = vsel %vm3979_vm8, %v11304_v22, 0.0 }
 0x5a7   : > { %v4027_v52 = vsel %vm3979_vm8, %v11309_v28, 0.0  ;;  %v11317_v30 = vadd.f32 %v3919_v21, %v11183_v36 }
 0x5a8   : > { %v4028_v6 = vadd.f32 %v4027_v52, %v4026_v10  ;;  %v4033_v41 = vsel %vm3979_vm8, %v11312_v42, 0.0 }
 0x5a9   : > { %v4029_v44 = vsel %vm3979_vm8, %v11317_v30, 0.0 }
 0x5aa   : > { %v4030_v0 = vadd.f32 %v4029_v44, %v4028_v6 }
 0x5ab   : > { %v8663_v45 = vpop.f32.mrb[32].mxu1 }
 0x5ac   : > { %v4032_v32 = vadd.f32 %v4031_v18, %v4030_v0  ;;  %v11324_v61 = vadd.f32 %v8663_v45, %v11183_v36  ;;  %v3932_v4 = vpop.f32.mrb[33].mxu1 }
 0x5ad   : > { %v11329_v48 = vadd.f32 %v3932_v4, %v11183_v36  ;;  %v8664_v15 = vpop.f32.mrb[34].mxu1 }
 0x5ae   : > { %v4034_v46 = vadd.f32 %v4033_v41, %v4032_v32  ;;  %v11332_v38 = vadd.f32 %v8664_v15, %v11183_v36  ;;  %v3935_v11 = vpop.f32.mrb[35].mxu1  ;;  %v4039_v37 = vsel %vm3979_vm8, %v11324_v61, 0.0 }
 0x5af   : > { %v4035_v5 = vsel %vm3979_vm8, %v11329_v48, 0.0  ;;  %v11337_v40 = vadd.f32 %v3935_v11, %v11183_v36 }
 0x5b0   : > { %v4036_v14 = vadd.f32 %v4035_v5, %v4034_v46  ;;  %v4041_v35 = vsel %vm3979_vm8, %v11332_v38, 0.0 }
 0x5b1   : > { %v4037_v2 = vsel %vm3979_vm8, %v11337_v40, 0.0 }
 0x5b2   : > { %v4038_v62 = vadd.f32 %v4037_v2, %v4036_v14 }
 0x5b4   : > { %v4040_v3 = vadd.f32 %v4039_v37, %v4038_v62 }
 0x5b6   : > { %v4042_v20 = vadd.f32 %v4041_v35, %v4040_v3 }
 0x5b8   : > { %v4043_v25 = vrot.slane %v4042_v20, 4 }
 0x5ba   : > { %v4044_v13 = vadd.f32 %v4043_v25, %v4042_v20 }
 0x5bc   : > { %v4045_v59 = vrot.slane %v4044_v13, 2 }
 0x5be   : > { %v4046_v7 = vadd.f32 %v4045_v59, %v4044_v13 }
 0x5c0   : > { %v4047_v60 = vrot.slane %v4046_v7, 1 }
 0x5c2   : > { %v4048_v36 = vadd.f32 %v4047_v60, %v4046_v7 }
 0x5c4   : > { %8668 = vmatmul.mubr.msk.f32.vlgmr.msra.gmra.mrb[2].mxu0 %vm3979_vm8, %v4048_v36 }
 0x5c5   : > { %8671 = vmatpush3.msra.mxu0 %v11171_v56  ;;  %8672 = vmatprep.mubr.msk.f32.mxu0 %vm9860_vm1, %v9859_v1 }
 0x697   : > { %v4119_v57 = vpop.f32.mrb[2].mxu0 }
 0x698   : > { %v8669_v10 = vpop.f32.mrb[3].mxu0  ;;  %v4124_v21 = vmul.f32 0.0009765625, %v4119_v57 }
 0x69a   : > { %v11350_v52 = vrot.slane %v4124_v21, %v10157_v19 }
 0x69c   : > { %v11354_v6 = vsub.f32 %v11189_v8, %v11350_v52  ;;  %v11358_v44 = vsub.f32 %v11195_v27, %v11350_v52  ;;  %v11362_v56 = vsub.f32 %v11186_v16, %v11350_v52  ;;  %v11366_v0 = vsub.f32 %v11192_v55, %v11350_v52 }
 0x69d   : > { %v11374_v8 = vsub.f32 %v11209_v12, %v11350_v52  ;;  %v11380_v16 = vsub.f32 %v11217_v49, %v11350_v52  ;;  %v11388_v15 = vsub.f32 %v11204_v24, %v11350_v52  ;;  %v11395_v49 = vsub.f32 %v11212_v39, %v11350_v52 }
 0x69e   : > { %v4161_v18 = vmul.f32 %v11354_v6, %v11354_v6  ;;  %v4162_v45 = vmul.f32 %v11358_v44, %v11358_v44  ;;  %v4163_v27 = vmul.f32 %v11362_v56, %v11362_v56  ;;  %v4164_v55 = vmul.f32 %v11366_v0, %v11366_v0 }
 0x69f   : > { %v4165_v12 = vmul.f32 %v11374_v8, %v11374_v8  ;;  %v4166_v5 = vmul.f32 %v11380_v16, %v11380_v16  ;;  %v11402_v24 = vsub.f32 %v11229_v26, %v11350_v52  ;;  %v4167_v62 = vmul.f32 %v11388_v15, %v11388_v15 }
 0x6a0   : > { %v4193_v32 = vsel %vm3979_vm8, %v4161_v18, 0.0  ;;  %v4194_v4 = vsel %vm3979_vm8, %v4162_v45, 0.0  ;;  %v4196_v46 = vsel %vm3979_vm8, %v4163_v27, 0.0  ;;  %v4198_v14 = vsel %vm3979_vm8, %v4164_v55, 0.0 }
 0x6a1   : > { %v4195_v41 = vadd.f32 %v4194_v4, %v4193_v32  ;;  %v4200_v37 = vsel %vm3979_vm8, %v4165_v12, 0.0  ;;  %v11409_v39 = vsub.f32 %v11237_v58, %v11350_v52  ;;  %v4168_v35 = vmul.f32 %v11395_v49, %v11395_v49 }
 0x6a2   : > { %v4202_v20 = vsel %vm3979_vm8, %v4166_v5, 0.0  ;;  %v11416_v26 = vsub.f32 %v11224_v23, %v11350_v52  ;;  %v4169_v13 = vmul.f32 %v11402_v24, %v11402_v24  ;;  %v4204_v59 = vsel %vm3979_vm8, %v4167_v62, 0.0 }
 0x6a3   : > { %v4197_v11 = vadd.f32 %v4196_v46, %v4195_v41  ;;  %v11423_v58 = vsub.f32 %v11232_v50, %v11350_v52  ;;  %v4170_v60 = vmul.f32 %v11409_v39, %v11409_v39  ;;  %v4206_v36 = vsel %vm3979_vm8, %v4168_v35, 0.0 }
 0x6a4   : > { %v11430_v23 = vsub.f32 %v11249_v31, %v11350_v52  ;;  %v4171_v10 = vmul.f32 %v11416_v26, %v11416_v26  ;;  %v4208_v21 = vsel %vm3979_vm8, %v4169_v13, 0.0  ;;  %v11437_v50 = vsub.f32 %v11257_v63, %v11350_v52 }
 0x6a5   : > { %v4199_v2 = vadd.f32 %v4198_v14, %v4197_v11  ;;  %v4172_v45 = vmul.f32 %v11423_v58, %v11423_v58  ;;  %v4210_v27 = vsel %vm3979_vm8, %v4170_v60, 0.0  ;;  %v11444_v31 = vsub.f32 %v11244_v33, %v11350_v52 }
 0x6a6   : > { %v4173_v32 = vmul.f32 %v11430_v23, %v11430_v23  ;;  %v4212_v4 = vsel %vm3979_vm8, %v4171_v10, 0.0  ;;  %v11451_v63 = vsub.f32 %v11252_v17, %v11350_v52  ;;  %v4174_v12 = vmul.f32 %v11437_v50, %v11437_v50 }
 0x6a7   : > { %v4201_v3 = vadd.f32 %v4200_v37, %v4199_v2  ;;  %v4214_v46 = vsel %vm3979_vm8, %v4172_v45, 0.0  ;;  %v11458_v33 = vsub.f32 %v11269_v43, %v11350_v52  ;;  %v4175_v5 = vmul.f32 %v11444_v31, %v11444_v31 }
 0x6a8   : > { %v4216_v14 = vsel %vm3979_vm8, %v4173_v32, 0.0  ;;  %v11465_v17 = vsub.f32 %v11277_v53, %v11350_v52  ;;  %v4176_v62 = vmul.f32 %v11451_v63, %v11451_v63  ;;  %v4218_v37 = vsel %vm3979_vm8, %v4174_v12, 0.0 }
 0x6a9   : > { %v4203_v25 = vadd.f32 %v4202_v20, %v4201_v3  ;;  %v11472_v43 = vsub.f32 %v11264_v51, %v11350_v52  ;;  %v4177_v35 = vmul.f32 %v11458_v33, %v11458_v33  ;;  %v4220_v20 = vsel %vm3979_vm8, %v4175_v5, 0.0 }
 0x6aa   : > { %v11479_v53 = vsub.f32 %v11272_v9, %v11350_v52  ;;  %v4178_v13 = vmul.f32 %v11465_v17, %v11465_v17  ;;  %v11486_v51 = vsub.f32 %v11289_v29, %v11350_v52  ;;  %v11493_v9 = vsub.f32 %v11297_v47, %v11350_v52 }
 0x6ab   : > { %v4205_v7 = vadd.f32 %v4204_v59, %v4203_v25  ;;  %v4222_v59 = vsel %vm3979_vm8, %v4176_v62, 0.0  ;;  %v4179_v60 = vmul.f32 %v11472_v43, %v11472_v43  ;;  %v11500_v29 = vsub.f32 %v11284_v54, %v11350_v52 }
 0x6ac   : > { %v4180_v10 = vmul.f32 %v11479_v53, %v11479_v53  ;;  %v4181_v45 = vmul.f32 %v11486_v51, %v11486_v51  ;;  %v11507_v47 = vsub.f32 %v11292_v34, %v11350_v52  ;;  %v4182_v32 = vmul.f32 %v11493_v9, %v11493_v9 }
 0x6ad   : > { %v4207_v57 = vadd.f32 %v4206_v36, %v4205_v7  ;;  %v4224_v36 = vsel %vm3979_vm8, %v4177_v35, 0.0  ;;  %v11514_v54 = vsub.f32 %v11309_v28, %v11350_v52  ;;  %v4183_v12 = vmul.f32 %v11500_v29, %v11500_v29 }
 0x6ae   : > { %v11521_v34 = vsub.f32 %v11317_v30, %v11350_v52  ;;  %v4184_v5 = vmul.f32 %v11507_v47, %v11507_v47  ;;  %v11528_v28 = vsub.f32 %v11304_v22, %v11350_v52  ;;  %v11535_v30 = vsub.f32 %v11312_v42, %v11350_v52 }
 0x6af   : > { %v4209_v18 = vadd.f32 %v4208_v21, %v4207_v57  ;;  %v4226_v21 = vsel %vm3979_vm8, %v4178_v13, 0.0  ;;  %v4185_v62 = vmul.f32 %v11514_v54, %v11514_v54  ;;  %v11542_v22 = vsub.f32 %v11329_v48, %v11350_v52 }
 0x6b0   : > { %v4186_v35 = vmul.f32 %v11521_v34, %v11521_v34  ;;  %v4187_v13 = vmul.f32 %v11528_v28, %v11528_v28  ;;  %v11549_v42 = vsub.f32 %v11337_v40, %v11350_v52  ;;  %v11556_v48 = vsub.f32 %v11324_v61, %v11350_v52 }
 0x6b1   : > { %v4211_v55 = vadd.f32 %v4210_v27, %v4209_v18  ;;  %v4228_v27 = vsel %vm3979_vm8, %v4179_v60, 0.0  ;;  %v4188_v60 = vmul.f32 %v11535_v30, %v11535_v30  ;;  %v11563_v40 = vsub.f32 %v11332_v38, %v11350_v52 }
 0x6b2   : > { %v4191_v61 = vmul.f32 %v11556_v48, %v11556_v48 }
 0x6b3   : > { %v4213_v41 = vadd.f32 %v4212_v4, %v4211_v55  ;;  %v4230_v4 = vsel %vm3979_vm8, %v4180_v10, 0.0  ;;  %v4189_v10 = vmul.f32 %v11542_v22, %v11542_v22 }
 0x6b4   : > { %v4252_v38 = vsel %vm3979_vm8, %v4191_v61, 0.0 }
 0x6b5   : > { %v4215_v11 = vadd.f32 %v4214_v46, %v4213_v41  ;;  %v4232_v46 = vsel %vm3979_vm8, %v4181_v45, 0.0  ;;  %v4190_v45 = vmul.f32 %v11549_v42, %v11549_v42 }
 0x6b7   : > { %v4217_v2 = vadd.f32 %v4216_v14, %v4215_v11  ;;  %v4234_v14 = vsel %vm3979_vm8, %v4182_v32, 0.0  ;;  %v4248_v32 = vsel %vm3979_vm8, %v4189_v10, 0.0 }
 0x6b9   : > { %v4219_v3 = vadd.f32 %v4218_v37, %v4217_v2  ;;  %v4236_v37 = vsel %vm3979_vm8, %v4183_v12, 0.0  ;;  %v4250_v12 = vsel %vm3979_vm8, %v4190_v45, 0.0  ;;  %v4338_v45 = vld [vmem:[%s12481_s10] sm:$0x1] }
 0x6bb   : > { %v4221_v25 = vadd.f32 %v4220_v20, %v4219_v3  ;;  %v4238_v20 = vsel %vm3979_vm8, %v4184_v5, 0.0 }
 0x6bd   : > { %v4223_v7 = vadd.f32 %v4222_v59, %v4221_v25  ;;  %v4240_v59 = vsel %vm3979_vm8, %v4185_v62, 0.0 }
 0x6bf   : > { %v4225_v57 = vadd.f32 %v4224_v36, %v4223_v7  ;;  %v4242_v36 = vsel %vm3979_vm8, %v4186_v35, 0.0 }
 0x6c1   : > { %v4227_v18 = vadd.f32 %v4226_v21, %v4225_v57  ;;  %v4244_v21 = vsel %vm3979_vm8, %v4187_v13, 0.0  ;;  %v4657_v13 = vld [vmem:[#allocation3 + $0x8] sm:$0xff] }
 0x6c3   : > { %v4229_v55 = vadd.f32 %v4228_v27, %v4227_v18  ;;  %v4246_v27 = vsel %vm3979_vm8, %v4188_v60, 0.0  ;;  %v7854_v60 = vld [vmem:[%s12483_s12 + $0x4] sm:$0xf] }
 0x6c4   : > { %v11662_v1 = vsel %vm726_vm3, %v7854_v60, 0 }
 0x6c5   : > { %v4231_v41 = vadd.f32 %v4230_v4, %v4229_v55 }
 0x6c7   : > { %v4233_v11 = vadd.f32 %v4232_v46, %v4231_v41  ;;  %v4192_v41 = vmul.f32 %v11563_v40, %v11563_v40 }
 0x6c9   : > { %v4235_v2 = vadd.f32 %v4234_v14, %v4233_v11  ;;  %v4254_v11 = vsel %vm3979_vm8, %v4192_v41, 0.0 }
 0x6cb   : > { %v4237_v3 = vadd.f32 %v4236_v37, %v4235_v2 }
 0x6cd   : > { %v4239_v25 = vadd.f32 %v4238_v20, %v4237_v3  ;;  %v4704_v20 = vld [vmem:[%s12483_s12] sm:$0xf] }
 0x6ce   : > { %9666 = vmatprep.subr.msk.bf16.mxu0 %vm726_vm3, %v4704_v20  ;;  %9667 = vmatprep.subr.msk.bf16.mxu1 %vm726_vm3, %v4704_v20 }
 0x6cf   : > { %v4241_v7 = vadd.f32 %v4240_v59, %v4239_v25  ;;  %v4656_v25 = vld [vmem:[#allocation3] sm:$0xff]  ;;  %v4754_v59 = vsel %vm726_vm3, %v4704_v20, 0 }
 0x6d0   : > { %9016 = vmatpush3.bf16.msra.mxu1 %v4754_v59 }
 0x6d1   : > { %v4243_v57 = vadd.f32 %v4242_v36, %v4241_v7  ;;  %v4688_v7 = vpack.c.bf16 %v4657_v13, %v4656_v25 }
 0x6d3   : > { %v4245_v18 = vadd.f32 %v4244_v21, %v4243_v57 }
 0x6d5   : > { %v4247_v55 = vadd.f32 %v4246_v27, %v4245_v18 }
 0x6d7   : > { %v4249_v4 = vadd.f32 %v4248_v32, %v4247_v55 }
 0x6d9   : > { %v4251_v46 = vadd.f32 %v4250_v12, %v4249_v4 }
 0x6db   : > { %v4253_v52 = vadd.f32 %v4252_v38, %v4251_v46 }
 0x6dd   : > { %v4255_v5 = vadd.f32 %v4254_v11, %v4253_v52 }
 0x6df   : > { %v4256_v14 = vrot.slane %v4255_v5, 4 }
 0x6e1   : > { %v4257_v2 = vadd.f32 %v4256_v14, %v4255_v5 }
 0x6e3   : > { %v4258_v62 = vrot.slane %v4257_v2, 2 }
 0x6e5   : > { %v4259_v37 = vadd.f32 %v4258_v62, %v4257_v2 }
 0x6e7   : > { %v4260_v3 = vrot.slane %v4259_v37, 1 }
 0x6e9   : > { %v4261_v35 = vadd.f32 %v4260_v3, %v4259_v37 }
 0x6eb   : > { %8673 = vmatmul.mubr.msk.f32.vlgmr.msra.gmra.mrb[4].mxu0 %vm3979_vm8, %v4261_v35 }
 0x6ec   : > { %8676 = vmatpush3.bf16.msra.mxu0 %v4754_v59  ;;  %8677 = vmatprep.mubr.msk.bf16.mxu0 %vm3979_vm8, %v4688_v7 }
 0x6ed   : > { %9668 = vmatprep.subr.msk.bf16.mxu0 %vm726_vm3, %v7854_v60 }
 0x7be   : > { %v4331_v36 = vpop.f32.mrb[4].mxu0 }
 0x7bf   : > { %v4335_v57 = vmul.f32 0.0009765625, %v4331_v36  ;;  %v8674_v10 = vpop.f32.mrb[5].mxu0 }
 0x7c1   : > { %v4336_v21 = vadd.f32 1e-05, %v4335_v57 }
 0x7c3   : > { %9753 = vrsqrt.f32 %v4336_v21 }
 0x7cd   : > { %v9754_v18 = vpop.eup %9753 }
 0x7ce   : > { %v4339_v27 = vmul.f32 %v9754_v18, %v4338_v45 }
 0x7d0   : > { %v4343_v55 = vrot.slane %v4339_v27, %v10157_v19 }
 0x7d2   : > { %v4344_v61 = vmul.f32 %v4343_v55, %v11354_v6  ;;  %v4345_v32 = vmul.f32 %v4343_v55, %v11358_v44  ;;  %v4346_v4 = vmul.f32 %v4343_v55, %v11362_v56  ;;  %v4347_v41 = vmul.f32 %v4343_v55, %v11366_v0 }
 0x7d3   : > { %v4348_v12 = vmul.f32 %v4343_v55, %v11374_v8  ;;  %v4349_v46 = vmul.f32 %v4343_v55, %v11380_v16  ;;  %v4350_v38 = vmul.f32 %v4343_v55, %v11388_v15  ;;  %v4351_v52 = vmul.f32 %v4343_v55, %v11395_v49 }
 0x7d4   : > { %v4352_v19 = vmul.f32 %v4343_v55, %v11402_v24  ;;  %v4353_v6 = vmul.f32 %v4343_v55, %v11409_v39  ;;  %v4354_v44 = vmul.f32 %v4343_v55, %v11416_v26  ;;  %v4355_v56 = vmul.f32 %v4343_v55, %v11423_v58  ;;  %v7836_v39 = vld [vmem:[%s12482_s11] ss:$0 sm:$0xff] }
 0x7d5   : > { %v4356_v11 = vmul.f32 %v4343_v55, %v11430_v23  ;;  %v4357_v0 = vmul.f32 %v4343_v55, %v11437_v50  ;;  %v4358_v8 = vmul.f32 %v4343_v55, %v11444_v31  ;;  %v4359_v16 = vmul.f32 %v4343_v55, %v11451_v63 }
 0x7d6   : > { %v4360_v15 = vmul.f32 %v4343_v55, %v11458_v33  ;;  %v4361_v49 = vmul.f32 %v4343_v55, %v11465_v17  ;;  %v4362_v24 = vmul.f32 %v4343_v55, %v11472_v43  ;;  %v4363_v26 = vmul.f32 %v4343_v55, %v11479_v53 }
 0x7d7   : > { %v4364_v58 = vmul.f32 %v4343_v55, %v11486_v51  ;;  %v4365_v23 = vmul.f32 %v4343_v55, %v11493_v9  ;;  %v4366_v50 = vmul.f32 %v4343_v55, %v11500_v29  ;;  %v4367_v31 = vmul.f32 %v4343_v55, %v11507_v47 }
 0x7d8   : > { %v4368_v63 = vmul.f32 %v4343_v55, %v11514_v54  ;;  %v4369_v33 = vmul.f32 %v4343_v55, %v11521_v34  ;;  %v4370_v17 = vmul.f32 %v4343_v55, %v11528_v28  ;;  %v4371_v43 = vmul.f32 %v4343_v55, %v11535_v30 }
 0x7d9   : > { %v4372_v5 = vmul.f32 %v4343_v55, %v11542_v22  ;;  %v4373_v53 = vmul.f32 %v4343_v55, %v11549_v42  ;;  %v4374_v51 = vmul.f32 %v4343_v55, %v11556_v48  ;;  %v4375_v9 = vmul.f32 %v4343_v55, %v11563_v40 }
 0x7da   : > { %v4383_v14 = vadd.f32 %v7836_v39, %v4344_v61  ;;  %v4384_v29 = vadd.f32 %v7836_v39, %v4345_v32  ;;  %v4385_v2 = vadd.f32 %v7836_v39, %v4346_v4  ;;  %v4386_v47 = vadd.f32 %v7836_v39, %v4347_v41 }
 0x7db   : > { %v4387_v62 = vadd.f32 %v7836_v39, %v4348_v12  ;;  %v4388_v54 = vadd.f32 %v7836_v39, %v4349_v46  ;;  %v4389_v37 = vadd.f32 %v7836_v39, %v4350_v38  ;;  %v4390_v34 = vadd.f32 %v7836_v39, %v4351_v52 }
 0x7dc   : > { %v4391_v3 = vadd.f32 %v7836_v39, %v4352_v19  ;;  %v4392_v28 = vadd.f32 %v7836_v39, %v4353_v6  ;;  %v4393_v35 = vadd.f32 %v7836_v39, %v4354_v44  ;;  %v4394_v30 = vadd.f32 %v7836_v39, %v4355_v56 }
 0x7dd   : > { %v4395_v20 = vadd.f32 %v7836_v39, %v4356_v11  ;;  %v4396_v22 = vadd.f32 %v7836_v39, %v4357_v0  ;;  %v4397_v25 = vadd.f32 %v7836_v39, %v4358_v8  ;;  %v4398_v42 = vadd.f32 %v7836_v39, %v4359_v16 }
 0x7de   : > { %v4399_v13 = vadd.f32 %v7836_v39, %v4360_v15  ;;  %v11696_v48 = vadd.f32 %v7836_v39, %v4361_v49  ;;  %v11698_v40 = vadd.f32 %v7836_v39, %v4362_v24  ;;  %v11700_v59 = vadd.f32 %v7836_v39, %v4363_v26 }
 0x7df   : > { %v11702_v7 = vadd.f32 %v7836_v39, %v4364_v58  ;;  %v11704_v60 = vadd.f32 %v7836_v39, %v4365_v23  ;;  %v11706_v36 = vadd.f32 %v7836_v39, %v4366_v50  ;;  %v11708_v57 = vadd.f32 %v7836_v39, %v4367_v31 }
 0x7e0   : > { %v4447_v10 = vmul.f32 0.70710677, %v4383_v14  ;;  %v4448_v21 = vmul.f32 0.70710677, %v4384_v29  ;;  %v4449_v18 = vmul.f32 0.70710677, %v4385_v2  ;;  %v11710_v45 = vadd.f32 %v7836_v39, %v4368_v63 }
 0x7e1   : > { %v11712_v27 = vadd.f32 %v7836_v39, %v4369_v33  ;;  %v11714_v55 = vadd.f32 %v7836_v39, %v4370_v17  ;;  %v4450_v61 = vmul.f32 0.70710677, %v4386_v47  ;;  %v11716_v32 = vadd.f32 %v7836_v39, %v4371_v43 }
 0x7e2   : > { %v11718_v4 = vadd.f32 %v7836_v39, %v4372_v5  ;;  %v4451_v41 = vmul.f32 0.70710677, %v4387_v62  ;;  %9755 = verf.f32 %v4447_v10  ;;  %v11720_v12 = vadd.f32 %v7836_v39, %v4373_v53 }
 0x7e3   : > { %v11722_v46 = vadd.f32 %v7836_v39, %v4374_v51  ;;  %v4452_v38 = vmul.f32 0.70710677, %v4388_v54  ;;  %9757 = verf.f32 %v4448_v21  ;;  %v11724_v52 = vadd.f32 %v7836_v39, %v4375_v9 }
 0x7e4   : > { %v4415_v19 = vmul.f32 0.5, %v4383_v14  ;;  %v4453_v6 = vmul.f32 0.70710677, %v4389_v37  ;;  %9759 = verf.f32 %v4449_v18  ;;  %v4416_v44 = vmul.f32 0.5, %v4384_v29 }
 0x7e5   : > { %v4417_v56 = vmul.f32 0.5, %v4385_v2  ;;  %v4454_v11 = vmul.f32 0.70710677, %v4390_v34  ;;  %9761 = verf.f32 %v4450_v61  ;;  %v4418_v0 = vmul.f32 0.5, %v4386_v47 }
 0x7e6   : > { %v11726_v8 = vmul.f32 0.5, %v4387_v62  ;;  %v4455_v16 = vmul.f32 0.70710677, %v4391_v3  ;;  %9763 = verf.f32 %v4451_v41  ;;  %v11728_v15 = vmul.f32 0.5, %v4388_v54 }
 0x7e7   : > { %v11730_v49 = vmul.f32 0.5, %v4389_v37  ;;  %v4456_v24 = vmul.f32 0.70710677, %v4392_v28  ;;  %9765 = verf.f32 %v4452_v38  ;;  %v11732_v39 = vmul.f32 0.5, %v4390_v34 }
 0x7e8   : > { %v11734_v26 = vmul.f32 0.5, %v4391_v3  ;;  %v4457_v58 = vmul.f32 0.70710677, %v4393_v35  ;;  %9767 = verf.f32 %v4453_v6  ;;  %v11736_v23 = vmul.f32 0.5, %v4392_v28 }
 0x7e9   : > { %v11738_v50 = vmul.f32 0.5, %v4393_v35  ;;  %v4458_v31 = vmul.f32 0.70710677, %v4394_v30  ;;  %9769 = verf.f32 %v4454_v11  ;;  %v11740_v63 = vmul.f32 0.5, %v4394_v30 }
 0x7ea   : > { %v11742_v33 = vmul.f32 0.5, %v4395_v20  ;;  %v4459_v17 = vmul.f32 0.70710677, %v4395_v20  ;;  %9771 = verf.f32 %v4455_v16  ;;  %v11744_v43 = vmul.f32 0.5, %v4396_v22 }
 0x7eb   : > { %v11746_v5 = vmul.f32 0.5, %v4397_v25  ;;  %v4460_v53 = vmul.f32 0.70710677, %v4396_v22  ;;  %9773 = verf.f32 %v4456_v24  ;;  %v11748_v9 = vmul.f32 0.5, %v4398_v42 }
 0x7ec   : > { %v9756_v51 = vpop.eup %9755  ;;  %v11750_v14 = vmul.f32 0.5, %v4399_v13  ;;  %v4461_v29 = vmul.f32 0.70710677, %v4397_v25  ;;  %9775 = verf.f32 %v4457_v58  ;;  %v4462_v47 = vmul.f32 0.70710677, %v4398_v42 }
 0x7ed   : > { %v9758_v2 = vpop.eup %9757  ;;  %v4463_v62 = vmul.f32 0.70710677, %v4399_v13  ;;  %9777 = verf.f32 %v4458_v31  ;;  %v4511_v54 = vadd.f32 1.0, %v9756_v51  ;;  %v4464_v34 = vmul.f32 0.70710677, %v11696_v48 }
 0x7ee   : > { %v9760_v37 = vpop.eup %9759  ;;  %v4465_v3 = vmul.f32 0.70710677, %v11698_v40  ;;  %9779 = verf.f32 %v4459_v17  ;;  %v4512_v28 = vadd.f32 1.0, %v9758_v2  ;;  %v4466_v30 = vmul.f32 0.70710677, %v11700_v59 }
 0x7ef   : > { %v9762_v35 = vpop.eup %9761  ;;  %9781 = verf.f32 %v4460_v53  ;;  %v4513_v20 = vadd.f32 1.0, %v9760_v37  ;;  %v4543_v22 = vmul.f32 %v4511_v54, %v4415_v19  ;;  %v4467_v10 = vmul.f32 0.70710677, %v11702_v7 }
 0x7f0   : > { %v9764_v25 = vpop.eup %9763  ;;  %9783 = verf.f32 %v4461_v29  ;;  %v4514_v42 = vadd.f32 1.0, %v9762_v35  ;;  %v4544_v13 = vmul.f32 %v4512_v28, %v4416_v44  ;;  %v4468_v18 = vmul.f32 0.70710677, %v11704_v60 }
 0x7f1   : > { %v9766_v21 = vpop.eup %9765  ;;  %9785 = verf.f32 %v4462_v47  ;;  %v4515_v61 = vadd.f32 1.0, %v9764_v25  ;;  %v4545_v41 = vmul.f32 %v4513_v20, %v4417_v56  ;;  %4618 = vst.msk [vmem:[#allocation3 + $0x19] sm:$0xff] %vm3979_vm8, %v4543_v22  ;;  %v4469_v6 = vmul.f32 0.70710677, %v11706_v36 }
 0x7f2   : > { %v9768_v38 = vpop.eup %9767  ;;  %9787 = verf.f32 %v4463_v62  ;;  %v4516_v11 = vadd.f32 1.0, %v9766_v21  ;;  %v4546_v19 = vmul.f32 %v4514_v42, %v4418_v0  ;;  %4619 = vst.msk [vmem:[#allocation3 + $0x21] sm:$0xff] %vm3979_vm8, %v4544_v13  ;;  %v4470_v24 = vmul.f32 0.70710677, %v11708_v57 }
 0x7f3   : > { %v9770_v16 = vpop.eup %9769  ;;  %9789 = verf.f32 %v4464_v34  ;;  %v4517_v44 = vadd.f32 1.0, %v9768_v38  ;;  %v4547_v58 = vmul.f32 %v4515_v61, %v11726_v8  ;;  %4620 = vst.msk [vmem:[#allocation3 + $0x31] sm:$0xff] %vm3979_vm8, %v4545_v41  ;;  %v4471_v31 = vmul.f32 0.70710677, %v11710_v45 }
 0x7f4   : > { %v9772_v56 = vpop.eup %9771  ;;  %9791 = verf.f32 %v4465_v3  ;;  %v4518_v17 = vadd.f32 1.0, %v9770_v16  ;;  %v4548_v53 = vmul.f32 %v4516_v11, %v11728_v15  ;;  %4621 = vst.msk [vmem:[#allocation3 + $0x39] sm:$0xff] %vm3979_vm8, %v4546_v19  ;;  %v4472_v51 = vmul.f32 0.70710677, %v11712_v27  ;;  %v11791_v11 = vld [vmem:[%s12483_s12 + $0x8] sm:$0xf] }
 0x7f5   : > { %v9774_v0 = vpop.eup %9773  ;;  %9793 = verf.f32 %v4466_v30  ;;  %v4519_v29 = vadd.f32 1.0, %v9772_v56  ;;  %v4549_v2 = vmul.f32 %v4517_v44, %v11730_v49  ;;  %4622 = vst.msk [vmem:[#allocation3 + $0x49] sm:$0xff] %vm3979_vm8, %v4547_v58  ;;  %v4473_v47 = vmul.f32 0.70710677, %v11714_v55 }
 0x7f6   : > { %v9776_v8 = vpop.eup %9775  ;;  %9795 = verf.f32 %v4467_v10  ;;  %v4520_v62 = vadd.f32 1.0, %v9774_v0  ;;  %v4550_v54 = vmul.f32 %v4518_v17, %v11732_v39  ;;  %4623 = vst.msk [vmem:[#allocation3 + $0x51] sm:$0xff] %vm3979_vm8, %v4548_v53  ;;  %v4474_v37 = vmul.f32 0.70710677, %v11716_v32 }
 0x7f7   : > { %v9778_v15 = vpop.eup %9777  ;;  %9797 = verf.f32 %v4468_v18  ;;  %v4521_v34 = vadd.f32 1.0, %v9776_v8  ;;  %v4551_v3 = vmul.f32 %v4519_v29, %v11734_v26  ;;  %4624 = vst.msk [vmem:[#allocation3 + $0x61] sm:$0xff] %vm3979_vm8, %v4549_v2  ;;  %v4475_v28 = vmul.f32 0.70710677, %v11718_v4 }
 0x7f8   : > { %v9780_v49 = vpop.eup %9779  ;;  %9799 = verf.f32 %v4469_v6  ;;  %v4522_v35 = vadd.f32 1.0, %v9778_v15  ;;  %v4552_v30 = vmul.f32 %v4520_v62, %v11736_v23  ;;  %4625 = vst.msk [vmem:[#allocation3 + $0x69] sm:$0xff] %vm3979_vm8, %v4550_v54  ;;  %v4658_v39 = vld [vmem:[#allocation3 + $0x18] sm:$0xff]  ;;  %v4476_v22 = vmul.f32 0.70710677, %v11720_v12 }
 0x7f9   : > { %v9782_v20 = vpop.eup %9781  ;;  %9801 = verf.f32 %v4470_v24  ;;  %v4523_v25 = vadd.f32 1.0, %v9780_v49  ;;  %v4553_v10 = vmul.f32 %v4521_v34, %v11738_v50  ;;  %4626 = vst.msk [vmem:[#allocation3 + $0x79] sm:$0xff] %vm3979_vm8, %v4551_v3  ;;  %v4659_v26 = vld [vmem:[#allocation3 + $0x20] sm:$0xff]  ;;  %v4477_v41 = vmul.f32 0.70710677, %v11722_v46 }
 0x7fa   : > { %v9784_v42 = vpop.eup %9783  ;;  %9803 = verf.f32 %v4471_v31  ;;  %v4524_v13 = vadd.f32 1.0, %v9782_v20  ;;  %v4554_v21 = vmul.f32 %v4522_v35, %v11740_v63  ;;  %4627 = vst.msk [vmem:[#allocation3 + $0x81] sm:$0xff] %vm3979_vm8, %v4552_v30  ;;  %v11783_v23 = vpack.c.bf16 %v4659_v26, %v4658_v39  ;;  %v4660_v18 = vld [vmem:[#allocation3 + $0x30] sm:$0xff] }
 0x7fb   : > { %v9786_v61 = vpop.eup %9785  ;;  %9805 = verf.f32 %v4472_v51  ;;  %v4525_v38 = vadd.f32 1.0, %v9784_v42  ;;  %v4555_v50 = vmul.f32 %v4523_v25, %v11742_v33  ;;  %4628 = vst.msk [vmem:[#allocation3 + $0x91] sm:$0xff] %vm3979_vm8, %v4553_v10  ;;  %v4661_v6 = vld [vmem:[#allocation3 + $0x38] sm:$0xff]  ;;  %v4478_v44 = vmul.f32 0.70710677, %v11724_v52 }
 0x7fc   : > { %v9788_v63 = vpop.eup %9787  ;;  %9807 = verf.f32 %v4473_v47  ;;  %v4526_v19 = vadd.f32 1.0, %v9786_v61  ;;  %v4556_v16 = vmul.f32 %v4524_v13, %v11744_v43  ;;  %4629 = vst.msk [vmem:[#allocation3 + $0x99] sm:$0xff] %vm3979_vm8, %v4554_v21  ;;  %8678 = vmatmul.mubr.msk.bf16.vlgmr.msra.gmra.mrb[8].mxu0 %vm3979_vm8, %v11783_v23  ;;  %v11797_v24 = vpack.c.bf16 %v4661_v6, %v4660_v18 }
 0x7fd   : > { %v9790_v33 = vpop.eup %9789  ;;  %9809 = verf.f32 %v4474_v37  ;;  %v4527_v58 = vadd.f32 1.0, %v9788_v63  ;;  %v4557_v56 = vmul.f32 %v4525_v38, %v11746_v5  ;;  %4630 = vst.msk [vmem:[#allocation3 + $0xa9] sm:$0xff] %vm3979_vm8, %v4555_v50  ;;  %8710 = vmatpush3.bf16.msra.mxu0 %v11662_v1  ;;  %v4432_v43 = vmul.f32 0.5, %v11696_v48  ;;  %v4662_v48 = vld [vmem:[#allocation3 + $0x48] sm:$0xff]  ;;  %v4663_v29 = vld [vmem:[#allocation3 + $0x50] sm:$0xff] }
 0x7fe   : > { %v9792_v31 = vpop.eup %9791  ;;  %9811 = verf.f32 %v4475_v28  ;;  %v4528_v17 = vadd.f32 1.0, %v9790_v33  ;;  %v4558_v53 = vmul.f32 %v4526_v19, %v11748_v9  ;;  %4631 = vst.msk [vmem:[#allocation3 + $0xb1] sm:$0xff] %vm3979_vm8, %v4556_v16  ;;  %8681 = vmatprep.mubr.msk.bf16.mxu0 %vm3979_vm8, %v11797_v24  ;;  %9669 = vmatprep.subr.msk.bf16.mxu0 %vm726_vm3, %v11791_v11  ;;  %v4433_v0 = vmul.f32 0.5, %v11698_v40  ;;  %v4664_v62 = vld [vmem:[#allocation3 + $0x60] sm:$0xff] }
 0x7ff   : > { %v9794_v5 = vpop.eup %9793  ;;  %9813 = verf.f32 %v4476_v22  ;;  %v4529_v1 = vadd.f32 1.0, %v9792_v31  ;;  %v4559_v51 = vmul.f32 %v4527_v58, %v11750_v14  ;;  %4632 = vst.msk [vmem:[#allocation3 + $0xc1] sm:$0xff] %vm3979_vm8, %v4557_v56  ;;  %v4434_v2 = vmul.f32 0.5, %v11700_v59  ;;  %v4665_v54 = vld [vmem:[#allocation3 + $0x68] sm:$0xff] }
 0x800   : > { %v9796_v9 = vpop.eup %9795  ;;  %9815 = verf.f32 %v4477_v41  ;;  %v4530_v8 = vadd.f32 1.0, %v9794_v5  ;;  %v4560_v47 = vmul.f32 %v4528_v17, %v4432_v43  ;;  %4633 = vst.msk [vmem:[#allocation3 + $0xc9] sm:$0xff] %vm3979_vm8, %v4558_v53  ;;  %v4435_v40 = vmul.f32 0.5, %v11702_v7  ;;  %v4666_v19 = vld [vmem:[#allocation3 + $0x78] sm:$0xff] }
 0x801   : > { %v9798_v15 = vpop.eup %9797  ;;  %9817 = verf.f32 %v4478_v44  ;;  %v4531_v37 = vadd.f32 1.0, %v9796_v9  ;;  %v4561_v14 = vmul.f32 %v4529_v1, %v4433_v0  ;;  %4634 = vst.msk [vmem:[#allocation3 + $0xd9] sm:$0xff] %vm3979_vm8, %v4559_v51  ;;  %v4436_v3 = vmul.f32 0.5, %v11704_v60  ;;  %v4667_v16 = vld [vmem:[#allocation3 + $0x80] sm:$0xff] }
 0x802   : > { %v9800_v34 = vpop.eup %9799  ;;  %v4532_v49 = vadd.f32 1.0, %v9798_v15  ;;  %v4562_v59 = vmul.f32 %v4530_v8, %v4434_v2  ;;  %4635 = vst.msk [vmem:[#allocation3 + $0xe1] sm:$0xff] %vm3979_vm8, %v4560_v47  ;;  %v11819_v28 = vpack.c.bf16 %v4663_v29, %v4662_v48  ;;  %v4437_v30 = vmul.f32 0.5, %v11706_v36  ;;  %v4668_v43 = vld [vmem:[#allocation3 + $0x90] sm:$0xff] }
 0x803   : > { %v9802_v35 = vpop.eup %9801  ;;  %v4533_v39 = vadd.f32 1.0, %v9800_v34  ;;  %v4563_v20 = vmul.f32 %v4531_v37, %v4435_v40  ;;  %4636 = vst.msk [vmem:[#allocation3 + $0xf1] sm:$0xff] %vm3979_vm8, %v4561_v14  ;;  %v11823_v7 = vpack.c.bf16 %v4665_v54, %v4664_v62  ;;  %v4438_v25 = vmul.f32 0.5, %v11708_v57  ;;  %v4669_v17 = vld [vmem:[#allocation3 + $0x98] sm:$0xff] }
 0x804   : > { %v9804_v22 = vpop.eup %9803  ;;  %v4534_v10 = vadd.f32 1.0, %v9802_v35  ;;  %v4564_v60 = vmul.f32 %v4532_v49, %v4436_v3  ;;  %4637 = vst.msk [vmem:[#allocation3 + $0xf9] sm:$0xff] %vm3979_vm8, %v4562_v59  ;;  %8682 = vmatmul.mubr.msk.bf16.gmra.mrb[12].mxu0 %vm3979_vm8, %v11819_v28  ;;  %v4439_v42 = vmul.f32 0.5, %v11710_v45  ;;  %v4440_v57 = vmul.f32 0.5, %v11712_v27  ;;  %v4949_v49 = vld [vmem:[#allocation3 + $0x1] sm:$0xff]  ;;  %v4950_v59 = vld [vmem:[#allocation3 + $0x9] sm:$0xff] }
 0x805   : > { %v9806_v26 = vpop.eup %9805  ;;  %v4535_v36 = vadd.f32 1.0, %v9804_v22  ;;  %v4565_v13 = vmul.f32 %v4533_v39, %v4437_v30  ;;  %4638 = vst.msk [vmem:[#allocation3 + $0x109] sm:$0xff] %vm3979_vm8, %v4563_v20  ;;  %8685 = vmatprep.mubr.msk.bf16.mxu0 %vm3979_vm8, %v11823_v7  ;;  %v4441_v50 = vmul.f32 0.5, %v11714_v55  ;;  %v4442_v44 = vmul.f32 0.5, %v11716_v32  ;;  %v4671_v39 = vld [vmem:[#allocation3 + $0xb0] sm:$0xff] }
 0x806   : > { %v9808_v21 = vpop.eup %9807  ;;  %v4536_v18 = vadd.f32 1.0, %v9806_v26  ;;  %v4566_v61 = vmul.f32 %v4534_v10, %v4438_v25  ;;  %4639 = vst.msk [vmem:[#allocation3 + $0x111] sm:$0xff] %vm3979_vm8, %v4564_v60  ;;  %v4672_v41 = vld [vmem:[#allocation3 + $0xc0] sm:$0xff]  ;;  %v4443_v53 = vmul.f32 0.5, %v11718_v4  ;;  %v4444_v5 = vmul.f32 0.5, %v11720_v12 }
 0x807   : > { %v9810_v38 = vpop.eup %9809  ;;  %v4537_v6 = vadd.f32 1.0, %v9808_v21  ;;  %v4567_v45 = vmul.f32 %v4535_v36, %v4439_v42  ;;  %4640 = vst.msk [vmem:[#allocation3 + $0x121] sm:$0xff] %vm3979_vm8, %v4565_v13  ;;  %v4673_v63 = vld [vmem:[#allocation3 + $0xc8] sm:$0xff]  ;;  %v11849_v8 = vpack.c.bf16 %v4667_v16, %v4666_v19  ;;  %v4445_v12 = vmul.f32 0.5, %v11722_v46  ;;  %v4951_v42 = vld [vmem:[#allocation3 + $0x19] sm:$0xff] }
 0x808   : > { %v9812_v33 = vpop.eup %9811  ;;  %v4538_v58 = vadd.f32 1.0, %v9810_v38  ;;  %v4568_v27 = vmul.f32 %v4536_v18, %v4440_v57  ;;  %4641 = vst.msk [vmem:[#allocation3 + $0x129] sm:$0xff] %vm3979_vm8, %v4566_v61  ;;  %v11839_v56 = vpack.c.bf16 %v4673_v63, %v4672_v41  ;;  %v4674_v31 = vld [vmem:[#allocation3 + $0xd8] sm:$0xff]  ;;  %v11853_v15 = vpack.c.bf16 %v4669_v17, %v4668_v43  ;;  %v4952_v21 = vld [vmem:[#allocation3 + $0x21] sm:$0xff] }
 0x809   : > { %v9814_v55 = vpop.eup %9813  ;;  %v4539_v0 = vadd.f32 1.0, %v9812_v33  ;;  %v4569_v1 = vmul.f32 %v4537_v6, %v4441_v50  ;;  %4642 = vst.msk [vmem:[#allocation3 + $0x139] sm:$0xff] %vm3979_vm8, %v4567_v45  ;;  %v4675_v51 = vld [vmem:[#allocation3 + $0xe0] sm:$0xff]  ;;  %v4446_v40 = vmul.f32 0.5, %v11724_v52  ;;  %v4670_v52 = vld [vmem:[#allocation3 + $0xa8] sm:$0xff]  ;;  %v4981_v25 = vpack.c.bf16 %v4950_v59, %v4949_v49  ;;  %v4953_v61 = vld [vmem:[#allocation3 + $0x31] sm:$0xff] }
 0x80a   : > { %v9816_v32 = vpop.eup %9815  ;;  %v4540_v48 = vadd.f32 1.0, %v9814_v55  ;;  %v4570_v29 = vmul.f32 %v4538_v58, %v4442_v44  ;;  %4643 = vst.msk [vmem:[#allocation3 + $0x141] sm:$0xff] %vm3979_vm8, %v4568_v27  ;;  %8693 = vmatprep.mubr.msk.bf16.mxu1 %vm3979_vm8, %v11839_v56  ;;  %v11847_v9 = vpack.c.bf16 %v4675_v51, %v4674_v31  ;;  %v4676_v2 = vld [vmem:[#allocation3 + $0xf0] sm:$0xff]  ;;  %v11873_v60 = vpack.c.bf16 %v4671_v39, %v4670_v52  ;;  %v4954_v41 = vld [vmem:[#allocation3 + $0x39] sm:$0xff]  ;;  %v4957_v58 = vld [vmem:[#allocation3 + $0x61] sm:$0xff] }
 0x80b   : > { %v9818_v4 = vpop.eup %9817  ;;  %v4541_v47 = vadd.f32 1.0, %v9816_v32  ;;  %v4571_v62 = vmul.f32 %v4539_v0, %v4443_v53  ;;  %4644 = vst.msk [vmem:[#allocation3 + $0x151] sm:$0xff] %vm3979_vm8, %v4569_v1  ;;  %v4677_v54 = vld [vmem:[#allocation3 + $0xf8] sm:$0xff]  ;;  %v11886_v50 = vpack.c.bf16 %v4952_v21, %v4951_v42  ;;  %v5342_v6 = vsel %vm726_vm3, %v11791_v11, 0  ;;  %v4955_v11 = vld [vmem:[#allocation3 + $0x49] sm:$0xff]  ;;  %v4960_v53 = vld [vmem:[#allocation3 + $0x81] sm:$0xff] }
 0x80c   : > { %v4542_v37 = vadd.f32 1.0, %v9818_v4  ;;  %v4572_v14 = vmul.f32 %v4540_v48, %v4444_v5  ;;  %4645 = vst.msk [vmem:[#allocation3 + $0x159] sm:$0xff] %vm3979_vm8, %v4570_v29  ;;  %8694 = vmatmul.mubr.msk.bf16.vlgmr.msra.gmra.mrb[36].mxu1 %vm3979_vm8, %v11847_v9  ;;  %v11859_v34 = vpack.c.bf16 %v4677_v54, %v4676_v2  ;;  %8686 = vmatmul.mubr.msk.bf16.gmra.mrb[16].mxu0 %vm3979_vm8, %v11849_v8  ;;  %v4678_v35 = vld [vmem:[#allocation3 + $0x108] sm:$0xff]  ;;  %v11895_v63 = vld [vmem:[%s12483_s12 + $0xc] sm:$0xf]  ;;  %v4956_v44 = vld [vmem:[#allocation3 + $0x51] sm:$0xff] }
 0x80d   : > { %v4573_v46 = vmul.f32 %v4541_v47, %v4445_v12  ;;  %4646 = vst.msk [vmem:[#allocation3 + $0x169] sm:$0xff] %vm3979_vm8, %v4571_v62  ;;  %8689 = vmatprep.mubr.msk.bf16.mxu0 %vm3979_vm8, %v11853_v15  ;;  %v4679_v30 = vld [vmem:[#allocation3 + $0x110] sm:$0xff]  ;;  %v11901_v19 = vpack.c.bf16 %v4954_v41, %v4953_v61  ;;  %v11911_v43 = vpack.c.bf16 %v4956_v44, %v4955_v11  ;;  %v4959_v55 = vld [vmem:[#allocation3 + $0x79] sm:$0xff]  ;;  %v4965_v29 = vld [vmem:[#allocation3 + $0xc1] sm:$0xff]  ;;  %v5636_v44 = vsel %vm726_vm3, %v11895_v63, 0 }
 0x80e   : > { %v4574_v3 = vmul.f32 %v4542_v37, %v4446_v40  ;;  %4647 = vst.msk [vmem:[#allocation3 + $0x171] sm:$0xff] %vm3979_vm8, %v4572_v14  ;;  %8697 = vmatprep.mubr.msk.bf16.mxu1 %vm3979_vm8, %v11859_v34  ;;  %v4680_v20 = vld [vmem:[#allocation3 + $0x120] sm:$0xff]  ;;  %v11871_v10 = vpack.c.bf16 %v4679_v30, %v4678_v35  ;;  %v4958_v27 = vld [vmem:[#allocation3 + $0x69] sm:$0xff]  ;;  %v4961_v5 = vld [vmem:[#allocation3 + $0x91] sm:$0xff]  ;;  %v11921_v1 = vpack.c.bf16 %v4960_v53, %v4959_v55 }
 0x80f   : > { %4648 = vst.msk [vmem:[#allocation3 + $0x181] sm:$0xff] %vm3979_vm8, %v4573_v46  ;;  %v4681_v22 = vld [vmem:[#allocation3 + $0x128] sm:$0xff]  ;;  %v11913_v17 = vpack.c.bf16 %v4958_v27, %v4957_v58  ;;  %v4962_v0 = vld [vmem:[#allocation3 + $0x99] sm:$0xff]  ;;  %v4964_v48 = vld [vmem:[#allocation3 + $0xb1] sm:$0xff] }
 0x810   : > { %4649 = vst.msk [vmem:[#allocation3 + $0x189] sm:$0xff] %vm3979_vm8, %v4574_v3  ;;  %v11875_v26 = vpack.c.bf16 %v4681_v22, %v4680_v20  ;;  %v4682_v36 = vld [vmem:[#allocation3 + $0x138] sm:$0xff]  ;;  %v11923_v51 = vpack.c.bf16 %v4962_v0, %v4961_v5  ;;  %v4963_v32 = vld [vmem:[#allocation3 + $0xa9] sm:$0xff]  ;;  %v4968_v62 = vld [vmem:[#allocation3 + $0xe1] sm:$0xff] }
 0x811   : > { %v4683_v13 = vld [vmem:[#allocation3 + $0x140] sm:$0xff]  ;;  %v4966_v2 = vld [vmem:[#allocation3 + $0xc9] sm:$0xff]  ;;  %v11929_v4 = vpack.c.bf16 %v4964_v48, %v4963_v32  ;;  %v4969_v54 = vld [vmem:[#allocation3 + $0xf1] sm:$0xff] }
 0x812   : > { %v4684_v57 = vld [vmem:[#allocation3 + $0x150] sm:$0xff]  ;;  %v11884_v38 = vpack.c.bf16 %v4683_v13, %v4682_v36  ;;  %v11931_v12 = vpack.c.bf16 %v4966_v2, %v4965_v29  ;;  %v4967_v47 = vld [vmem:[#allocation3 + $0xd9] sm:$0xff]  ;;  %v4973_v52 = vld [vmem:[#allocation3 + $0x121] sm:$0xff] }
 0x813   : > { %v4685_v18 = vld [vmem:[#allocation3 + $0x158] sm:$0xff]  ;;  %v11937_v37 = vpack.c.bf16 %v4968_v62, %v4967_v47  ;;  %v4971_v46 = vld [vmem:[#allocation3 + $0x109] sm:$0xff]  ;;  %v4976_v39 = vld [vmem:[#allocation3 + $0x141] sm:$0xff] }
 0x814   : > { %8698 = vmatmul.mubr.msk.bf16.gmra.mrb[40].mxu1 %vm3979_vm8, %v11871_v10  ;;  %8690 = vmatmul.mubr.msk.bf16.gmra.mrb[20].mxu0 %vm3979_vm8, %v11873_v60  ;;  %v11890_v45 = vpack.c.bf16 %v4685_v18, %v4684_v57  ;;  %v4686_v16 = vld [vmem:[#allocation3 + $0x168] sm:$0xff]  ;;  %v4970_v40 = vld [vmem:[#allocation3 + $0xf9] sm:$0xff]  ;;  %v4972_v3 = vld [vmem:[#allocation3 + $0x111] sm:$0xff] }
 0x815   : > { %8701 = vmatprep.mubr.msk.bf16.mxu1 %vm3979_vm8, %v11875_v26  ;;  %8711 = vmatprep.mubr.msk.bf16.mxu0 %vm3979_vm8, %v4981_v25  ;;  %v4687_v33 = vld [vmem:[#allocation3 + $0x170] sm:$0xff]  ;;  %v11939_v14 = vpack.c.bf16 %v4970_v40, %v4969_v54  ;;  %v11945_v59 = vpack.c.bf16 %v4972_v3, %v4971_v46  ;;  %v4975_v30 = vld [vmem:[#allocation3 + $0x139] sm:$0xff]  ;;  %v5243_v36 = vld [vmem:[#allocation3 + $0x2] sm:$0xff] }
 0x816   : > { %v11909_v31 = vpack.c.bf16 %v4687_v33, %v4686_v16  ;;  %v4974_v49 = vld [vmem:[#allocation3 + $0x129] sm:$0xff]  ;;  %v4977_v20 = vld [vmem:[#allocation3 + $0x151] sm:$0xff]  ;;  %v4978_v22 = vld [vmem:[#allocation3 + $0x159] sm:$0xff]  ;;  %v11953_v25 = vpack.c.bf16 %v4976_v39, %v4975_v30 }
 0x817   : > { %v11947_v35 = vpack.c.bf16 %v4974_v49, %v4973_v52  ;;  %v11955_v42 = vpack.c.bf16 %v4978_v22, %v4977_v20  ;;  %v5244_v13 = vld [vmem:[#allocation3 + $0xa] sm:$0xff]  ;;  %v5245_v41 = vld [vmem:[#allocation3 + $0x1a] sm:$0xff]  ;;  %v5247_v11 = vld [vmem:[#allocation3 + $0x32] sm:$0xff] }
 0x818   : > { %v4979_v21 = vld [vmem:[#allocation3 + $0x169] sm:$0xff]  ;;  %v4980_v57 = vld [vmem:[#allocation3 + $0x171] sm:$0xff]  ;;  %v5275_v18 = vpack.c.bf16 %v5244_v13, %v5243_v36  ;;  %v5248_v16 = vld [vmem:[#allocation3 + $0x3a] sm:$0xff] }
 0x819   : > { %v11961_v61 = vpack.c.bf16 %v4980_v57, %v4979_v21  ;;  %v11970_v58 = vpack.c.bf16 %v5248_v16, %v5247_v11  ;;  %v7905_v27 = vld [vmem:[%s12483_s12 + $0x10] sm:$0xf]  ;;  %v5249_v55 = vld [vmem:[#allocation3 + $0x4a] sm:$0xff]  ;;  %v5250_v53 = vld [vmem:[#allocation3 + $0x52] sm:$0xff] }
 0x81a   : > { %v5251_v5 = vld [vmem:[#allocation3 + $0x62] sm:$0xff]  ;;  %v5252_v0 = vld [vmem:[#allocation3 + $0x6a] sm:$0xff]  ;;  %v5253_v48 = vld [vmem:[#allocation3 + $0x7a] sm:$0xff] }
 0x81b   : > { %v11982_v32 = vpack.c.bf16 %v5252_v0, %v5251_v5  ;;  %v5254_v29 = vld [vmem:[#allocation3 + $0x82] sm:$0xff]  ;;  %v5255_v2 = vld [vmem:[#allocation3 + $0x92] sm:$0xff]  ;;  %v5256_v47 = vld [vmem:[#allocation3 + $0x9a] sm:$0xff] }
 0x81c   : > { %8702 = vmatmul.mubr.msk.bf16.gmra.mrb[44].mxu1 %vm3979_vm8, %v11884_v38  ;;  %8712 = vmatmul.mubr.msk.bf16.vlgmr.msra.gmra.mrb[8].mxu0 %vm3979_vm8, %v11886_v50  ;;  %v11988_v62 = vpack.c.bf16 %v5254_v29, %v5253_v48  ;;  %v11990_v54 = vpack.c.bf16 %v5256_v47, %v5255_v2  ;;  %v5257_v40 = vld [vmem:[#allocation3 + $0xaa] sm:$0xff]  ;;  %v5258_v46 = vld [vmem:[#allocation3 + $0xb2] sm:$0xff]  ;;  %v5259_v3 = vld [vmem:[#allocation3 + $0xc2] sm:$0xff] }
 0x81d   : > { %8705 = vmatprep.mubr.msk.bf16.mxu1 %vm3979_vm8, %v11890_v45  ;;  %8744 = vmatpush3.bf16.msra.mxu0 %v5342_v6  ;;  %v5246_v6 = vld [vmem:[#allocation3 + $0x22] sm:$0xff]  ;;  %v5260_v52 = vld [vmem:[#allocation3 + $0xca] sm:$0xff]  ;;  %v11996_v49 = vpack.c.bf16 %v5258_v46, %v5257_v40  ;;  %v5261_v39 = vld [vmem:[#allocation3 + $0xda] sm:$0xff]  ;;  %v5930_v40 = vsel %vm726_vm3, %v7905_v27, 0 }
 0x81e   : > { %8715 = vmatprep.mubr.msk.bf16.mxu0 %vm3979_vm8, %v11901_v19  ;;  %9670 = vmatprep.subr.msk.bf16.mxu0 %vm726_vm3, %v11895_v63  ;;  %v11966_v33 = vpack.c.bf16 %v5246_v6, %v5245_v41  ;;  %v11980_v63 = vpack.c.bf16 %v5250_v53, %v5249_v55  ;;  %v11998_v30 = vpack.c.bf16 %v5260_v52, %v5259_v3  ;;  %v5262_v20 = vld [vmem:[#allocation3 + $0xe2] sm:$0xff]  ;;  %v5263_v22 = vld [vmem:[#allocation3 + $0xf2] sm:$0xff]  ;;  %v5264_v36 = vld [vmem:[#allocation3 + $0xfa] sm:$0xff] }
 0x81f   : > { %v12004_v13 = vpack.c.bf16 %v5262_v20, %v5261_v39  ;;  %v12006_v21 = vpack.c.bf16 %v5264_v36, %v5263_v22  ;;  %v5265_v57 = vld [vmem:[#allocation3 + $0x10a] sm:$0xff]  ;;  %v5267_v41 = vld [vmem:[#allocation3 + $0x122] sm:$0xff]  ;;  %v5271_v53 = vld [vmem:[#allocation3 + $0x152] sm:$0xff] }
 0x820   : > { %v5268_v6 = vld [vmem:[#allocation3 + $0x12a] sm:$0xff]  ;;  %v5270_v55 = vld [vmem:[#allocation3 + $0x142] sm:$0xff]  ;;  %v5272_v5 = vld [vmem:[#allocation3 + $0x15a] sm:$0xff] }
 0x821   : > { %v12014_v16 = vpack.c.bf16 %v5268_v6, %v5267_v41  ;;  %v12022_v48 = vpack.c.bf16 %v5272_v5, %v5271_v53  ;;  %v5273_v29 = vld [vmem:[#allocation3 + $0x16a] sm:$0xff]  ;;  %v5274_v2 = vld [vmem:[#allocation3 + $0x172] sm:$0xff]  ;;  %v7922_v46 = vld [vmem:[%s12483_s12 + $0x14] sm:$0xf] }
 0x822   : > { %v12028_v47 = vpack.c.bf16 %v5274_v2, %v5273_v29  ;;  %v6224_v52 = vsel %vm726_vm3, %v7922_v46, 0  ;;  %v7939_v39 = vld [vmem:[%s12483_s12 + $0x18] sm:$0xf] }
 0x824   : > { %8706 = vmatmul.mubr.msk.bf16.gmra.mrb[48].mxu1 %vm3979_vm8, %v11909_v31  ;;  %8716 = vmatmul.mubr.msk.bf16.gmra.mrb[12].mxu0 %vm3979_vm8, %v11911_v43 }
 0x825   : > { %8719 = vmatprep.mubr.msk.bf16.mxu0 %vm3979_vm8, %v11913_v17 }
 0x82c   : > { %8720 = vmatmul.mubr.msk.bf16.gmra.mrb[16].mxu0 %vm3979_vm8, %v11921_v1 }
 0x82d   : > { %8723 = vmatprep.mubr.msk.bf16.mxu0 %vm3979_vm8, %v11923_v51 }
 0x834   : > { %8724 = vmatmul.mubr.msk.bf16.gmra.mrb[20].mxu0 %vm3979_vm8, %v11929_v4 }
 0x835   : > { %8727 = vmatprep.mubr.msk.bf16.mxu0 %vm3979_vm8, %v11931_v12 }
 0x83c   : > { %8728 = vmatmul.mubr.msk.bf16.gmra.mrb[24].mxu0 %vm3979_vm8, %v11937_v37 }
 0x83d   : > { %8731 = vmatprep.mubr.msk.bf16.mxu0 %vm3979_vm8, %v11939_v14 }
 0x844   : > { %8732 = vmatmul.mubr.msk.bf16.gmra.mrb[28].mxu0 %vm3979_vm8, %v11945_v59 }
 0x845   : > { %8735 = vmatprep.mubr.msk.bf16.mxu0 %vm3979_vm8, %v11947_v35 }
 0x84c   : > { %8736 = vmatmul.mubr.msk.bf16.gmra.mrb[32].mxu0 %vm3979_vm8, %v11953_v25 }
 0x84d   : > { %8739 = vmatprep.mubr.msk.bf16.mxu0 %vm3979_vm8, %v11955_v42 }
 0x854   : > { %8740 = vmatmul.mubr.msk.bf16.gmra.mrb[36].mxu0 %vm3979_vm8, %v11961_v61 }
 0x855   : > { %8745 = vmatprep.mubr.msk.bf16.mxu0 %vm3979_vm8, %v5275_v18  ;;  %v5266_v18 = vld [vmem:[#allocation3 + $0x112] sm:$0xff] }
 0x856   : > { %v12012_v11 = vpack.c.bf16 %v5266_v18, %v5265_v57 }
 0x85c   : > { %8746 = vmatmul.mubr.msk.bf16.vlgmr.msra.gmra.mrb[8].mxu0 %vm3979_vm8, %v11966_v33 }
 0x85d   : > { %8778 = vmatpush3.bf16.msra.mxu0 %v5636_v44  ;;  %8749 = vmatprep.mubr.msk.bf16.mxu0 %vm3979_vm8, %v11970_v58  ;;  %v5269_v44 = vld [vmem:[#allocation3 + $0x13a] sm:$0xff] }
 0x85e   : > { %9671 = vmatprep.subr.msk.bf16.mxu0 %vm726_vm3, %v7905_v27  ;;  %v12020_v0 = vpack.c.bf16 %v5270_v55, %v5269_v44  ;;  %v5568_v27 = vld [vmem:[#allocation3 + $0x188] sm:$0xff] }
 0x864   : > { %8750 = vmatmul.mubr.msk.bf16.gmra.mrb[12].mxu0 %vm3979_vm8, %v11980_v63 }
 0x865   : > { %8753 = vmatprep.mubr.msk.bf16.mxu0 %vm3979_vm8, %v11982_v32 }
 0x86c   : > { %8754 = vmatmul.mubr.msk.bf16.gmra.mrb[16].mxu0 %vm3979_vm8, %v11988_v62 }
 0x86d   : > { %8757 = vmatprep.mubr.msk.bf16.mxu0 %vm3979_vm8, %v11990_v54 }
 0x874   : > { %8758 = vmatmul.mubr.msk.bf16.gmra.mrb[20].mxu0 %vm3979_vm8, %v11996_v49 }
 0x875   : > { %8761 = vmatprep.mubr.msk.bf16.mxu0 %vm3979_vm8, %v11998_v30 }
 0x87c   : > { %8762 = vmatmul.mubr.msk.bf16.gmra.mrb[24].mxu0 %vm3979_vm8, %v12004_v13 }
 0x87d   : > { %8765 = vmatprep.mubr.msk.bf16.mxu0 %vm3979_vm8, %v12006_v21 }
 0x884   : > { %8766 = vmatmul.mubr.msk.bf16.gmra.mrb[28].mxu0 %vm3979_vm8, %v12012_v11 }
 0x885   : > { %8769 = vmatprep.mubr.msk.bf16.mxu0 %vm3979_vm8, %v12014_v16 }
 0x88c   : > { %8770 = vmatmul.mubr.msk.bf16.gmra.mrb[32].mxu0 %vm3979_vm8, %v12020_v0 }
 0x88d   : > { %8773 = vmatprep.mubr.msk.bf16.mxu0 %vm3979_vm8, %v12022_v48 }
 0x894   : > { %8774 = vmatmul.mubr.msk.bf16.gmra.mrb[36].mxu0 %vm3979_vm8, %v12028_v47 }
 0x895   : > { %8779 = vmatprep.mubr.msk.bf16.mxu0 %vm3979_vm8, %v11783_v23  ;;  %v5567_v23 = vld [vmem:[#allocation3 + $0x180] sm:$0xff] }
 0x896   : > { %v12067_v3 = vpack.c.bf16 %v5568_v27, %v5567_v23  ;;  %v5861_v23 = vld [vmem:[#allocation3 + $0x181] sm:$0xff]  ;;  %v5862_v27 = vld [vmem:[#allocation3 + $0x189] sm:$0xff] }
 0x89c   : > { %8780 = vmatmul.mubr.msk.bf16.vlgmr.msra.gmra.mrb[8].mxu0 %vm3979_vm8, %v11797_v24 }
 0x89d   : > { %8812 = vmatpush3.bf16.msra.mxu0 %v5930_v40  ;;  %8783 = vmatprep.mubr.msk.bf16.mxu0 %vm3979_vm8, %v11819_v28 }
 0x89e   : > { %9672 = vmatprep.subr.msk.bf16.mxu0 %vm726_vm3, %v7922_v46 }
 0x8a4   : > { %8784 = vmatmul.mubr.msk.bf16.gmra.mrb[12].mxu0 %vm3979_vm8, %v11823_v7 }
 0x8a5   : > { %8787 = vmatprep.mubr.msk.bf16.mxu0 %vm3979_vm8, %v11849_v8 }
 0x8ac   : > { %8788 = vmatmul.mubr.msk.bf16.gmra.mrb[16].mxu0 %vm3979_vm8, %v11853_v15 }
 0x8ad   : > { %8791 = vmatprep.mubr.msk.bf16.mxu0 %vm3979_vm8, %v11873_v60 }
 0x8b4   : > { %8792 = vmatmul.mubr.msk.bf16.gmra.mrb[20].mxu0 %vm3979_vm8, %v11839_v56 }
 0x8b5   : > { %8795 = vmatprep.mubr.msk.bf16.mxu0 %vm3979_vm8, %v11847_v9 }
 0x8bc   : > { %8796 = vmatmul.mubr.msk.bf16.gmra.mrb[24].mxu0 %vm3979_vm8, %v11859_v34 }
 0x8bd   : > { %8799 = vmatprep.mubr.msk.bf16.mxu0 %vm3979_vm8, %v11871_v10 }
 0x8c4   : > { %8800 = vmatmul.mubr.msk.bf16.gmra.mrb[28].mxu0 %vm3979_vm8, %v11875_v26 }
 0x8c5   : > { %8803 = vmatprep.mubr.msk.bf16.mxu0 %vm3979_vm8, %v11884_v38 }
 0x8cc   : > { %8804 = vmatmul.mubr.msk.bf16.gmra.mrb[32].mxu0 %vm3979_vm8, %v11890_v45 }
 0x8cd   : > { %8807 = vmatprep.mubr.msk.bf16.mxu0 %vm3979_vm8, %v11909_v31 }
 0x8d4   : > { %8808 = vmatmul.mubr.msk.bf16.gmra.mrb[36].mxu0 %vm3979_vm8, %v12067_v3 }
 0x8d5   : > { %8813 = vmatprep.mubr.msk.bf16.mxu0 %vm3979_vm8, %v11886_v50 }
 0x8dc   : > { %8814 = vmatmul.mubr.msk.bf16.vlgmr.msra.gmra.mrb[8].mxu0 %vm3979_vm8, %v11901_v19 }
 0x8dd   : > { %8846 = vmatpush3.bf16.msra.mxu0 %v6224_v52  ;;  %8817 = vmatprep.mubr.msk.bf16.mxu0 %vm3979_vm8, %v11911_v43  ;;  %v12138_v52 = vpack.c.bf16 %v5862_v27, %v5861_v23  ;;  %v7973_v27 = vld [vmem:[%s12483_s12 + $0x20] sm:$0xf] }
 0x8de   : > { %9673 = vmatprep.subr.msk.bf16.mxu0 %vm726_vm3, %v7939_v39 }
 0x8df   : > { %v12082_v20 = vpop.f32.mrb[36].mxu1 }
 0x8e0   : > { %v12084_v22 = vpop.f32.mrb[37].mxu1 }
 0x8e1   : > { %v12086_v50 = vpop.f32.mrb[38].mxu1 }
 0x8e2   : > { %v12088_v36 = vpop.f32.mrb[39].mxu1 }
 0x8e4   : > { %8818 = vmatmul.mubr.msk.bf16.gmra.mrb[12].mxu0 %vm3979_vm8, %v11913_v17 }
 0x8e5   : > { %8821 = vmatprep.mubr.msk.bf16.mxu0 %vm3979_vm8, %v11921_v1 }
 0x8e7   : > { %v12094_v57 = vpop.f32.mrb[40].mxu1 }
 0x8e8   : > { %v12096_v18 = vpop.f32.mrb[41].mxu1 }
 0x8e9   : > { %v12098_v41 = vpop.f32.mrb[42].mxu1 }
 0x8ea   : > { %v12100_v6 = vpop.f32.mrb[43].mxu1 }
 0x8ec   : > { %8822 = vmatmul.mubr.msk.bf16.gmra.mrb[16].mxu0 %vm3979_vm8, %v11923_v51 }
 0x8ed   : > { %8825 = vmatprep.mubr.msk.bf16.mxu0 %vm3979_vm8, %v11929_v4 }
 0x8ef   : > { %v12106_v44 = vpop.f32.mrb[44].mxu1 }
 0x8f0   : > { %v12108_v55 = vpop.f32.mrb[45].mxu1 }
 0x8f1   : > { %v12110_v53 = vpop.f32.mrb[46].mxu1 }
 0x8f2   : > { %v12112_v5 = vpop.f32.mrb[47].mxu1 }
 0x8f4   : > { %8826 = vmatmul.mubr.msk.bf16.gmra.mrb[20].mxu0 %vm3979_vm8, %v11931_v12 }
 0x8f5   : > { %8829 = vmatprep.mubr.msk.bf16.mxu0 %vm3979_vm8, %v11937_v37 }
 0x8f7   : > { %v12118_v29 = vpop.f32.mrb[48].mxu1 }
 0x8f8   : > { %v12120_v2 = vpop.f32.mrb[49].mxu1 }
 0x8f9   : > { %v12122_v40 = vpop.f32.mrb[50].mxu1 }
 0x8fa   : > { %12490 = vst [vmem:[#allocation4_spill] sm:$0xff] %v12122_v40  ;;  %v12124_v46 = vpop.f32.mrb[51].mxu1  ;;  %v7956_v40 = vld [vmem:[%s12483_s12 + $0x1c] sm:$0xf] }
 0x8fb   : > { %12491 = vst [vmem:[#allocation5_spill] sm:$0xff] %v12124_v46  ;;  %v6519_v46 = vsel %vm726_vm3, %v7939_v39, 0  ;;  %v6156_v39 = vld [vmem:[#allocation3 + $0x18a] sm:$0xff]  ;;  %v6813_v23 = vsel %vm726_vm3, %v7956_v40, 0 }
 0x8fc   : > { %8830 = vmatmul.mubr.msk.bf16.gmra.mrb[24].mxu0 %vm3979_vm8, %v11939_v14 }
 0x8fd   : > { %8833 = vmatprep.mubr.msk.bf16.mxu0 %vm3979_vm8, %v11945_v59 }
 0x904   : > { %8834 = vmatmul.mubr.msk.bf16.gmra.mrb[28].mxu0 %vm3979_vm8, %v11947_v35 }
 0x905   : > { %8837 = vmatprep.mubr.msk.bf16.mxu0 %vm3979_vm8, %v11953_v25 }
 0x90c   : > { %8838 = vmatmul.mubr.msk.bf16.gmra.mrb[32].mxu0 %vm3979_vm8, %v11955_v42 }
 0x90d   : > { %8841 = vmatprep.mubr.msk.bf16.mxu0 %vm3979_vm8, %v11961_v61 }
 0x914   : > { %8842 = vmatmul.mubr.msk.bf16.gmra.mrb[36].mxu0 %vm3979_vm8, %v12138_v52 }
 0x915   : > { %8847 = vmatprep.mubr.msk.bf16.mxu0 %vm3979_vm8, %v11966_v33  ;;  %v6155_v33 = vld [vmem:[#allocation3 + $0x182] sm:$0xff] }
 0x91c   : > { %8848 = vmatmul.mubr.msk.bf16.vlgmr.msra.gmra.mrb[8].mxu0 %vm3979_vm8, %v11970_v58 }
 0x91d   : > { %8880 = vmatpush3.bf16.msra.mxu0 %v6519_v46  ;;  %8851 = vmatprep.mubr.msk.bf16.mxu0 %vm3979_vm8, %v11980_v63  ;;  %v12177_v46 = vpack.c.bf16 %v6156_v39, %v6155_v33  ;;  %v9841_v33 = vld [vmem:[%s9989_s19 + $0xb0] sm:$0xff]  ;;  %v9842_v39 = vld [vmem:[%s9989_s19 + $0xb8] sm:$0xff] }
 0x91e   : > { %9674 = vmatprep.subr.msk.bf16.mxu0 %vm726_vm3, %v7956_v40  ;;  %v9840_v40 = vld [vmem:[%s9989_s19 + $0xa8] sm:$0xff] }
 0x924   : > { %8852 = vmatmul.mubr.msk.bf16.gmra.mrb[12].mxu0 %vm3979_vm8, %v11982_v32 }
 0x925   : > { %8855 = vmatprep.mubr.msk.bf16.mxu0 %vm3979_vm8, %v11988_v62 }
 0x92c   : > { %8856 = vmatmul.mubr.msk.bf16.gmra.mrb[16].mxu0 %vm3979_vm8, %v11990_v54 }
 0x92d   : > { %8859 = vmatprep.mubr.msk.bf16.mxu0 %vm3979_vm8, %v11996_v49 }
 0x934   : > { %8860 = vmatmul.mubr.msk.bf16.gmra.mrb[20].mxu0 %vm3979_vm8, %v11998_v30 }
 0x935   : > { %8863 = vmatprep.mubr.msk.bf16.mxu0 %vm3979_vm8, %v12004_v13 }
 0x93c   : > { %8864 = vmatmul.mubr.msk.bf16.gmra.mrb[24].mxu0 %vm3979_vm8, %v12006_v21 }
 0x93d   : > { %8867 = vmatprep.mubr.msk.bf16.mxu0 %vm3979_vm8, %v12012_v11 }
 0x944   : > { %8868 = vmatmul.mubr.msk.bf16.gmra.mrb[28].mxu0 %vm3979_vm8, %v12014_v16 }
 0x945   : > { %8871 = vmatprep.mubr.msk.bf16.mxu0 %vm3979_vm8, %v12020_v0 }
 0x94c   : > { %8872 = vmatmul.mubr.msk.bf16.gmra.mrb[32].mxu0 %vm3979_vm8, %v12022_v48 }
 0x94d   : > { %8875 = vmatprep.mubr.msk.bf16.mxu0 %vm3979_vm8, %v12028_v47 }
 0x954   : > { %8876 = vmatmul.mubr.msk.bf16.gmra.mrb[36].mxu0 %vm3979_vm8, %v12177_v46 }
 0x955   : > { %8881 = vmatprep.mubr.msk.bf16.mxu0 %vm3979_vm8, %v11797_v24  ;;  %v6450_v24 = vld [vmem:[#allocation3 + $0x198] sm:$0xff] }
 0x95c   : > { %8882 = vmatmul.mubr.msk.bf16.vlgmr.msra.gmra.mrb[8].mxu0 %vm3979_vm8, %v11819_v28  ;;  %v6451_v28 = vld [vmem:[#allocation3 + $0x1a0] sm:$0xff] }
 0x95d   : > { %8914 = vmatpush3.bf16.msra.mxu0 %v6813_v23  ;;  %8885 = vmatprep.mubr.msk.bf16.mxu0 %vm3979_vm8, %v11823_v7  ;;  %v6467_v7 = vpack.c.bf16 %v6451_v28, %v6450_v24  ;;  %v9843_v23 = vld [vmem:[%s9989_s19 + $0xc0] sm:$0xff]  ;;  %v9845_v28 = vld [vmem:[%s9989_s19 + $0xd0] sm:$0xff] }
 0x95e   : > { %9675 = vmatprep.subr.msk.bf16.mxu0 %vm726_vm3, %v7973_v27 }
 0x964   : > { %8886 = vmatmul.mubr.msk.bf16.gmra.mrb[12].mxu0 %vm3979_vm8, %v11849_v8  ;;  %v6744_v8 = vld [vmem:[#allocation3 + $0x199] sm:$0xff] }
 0x965   : > { %8889 = vmatprep.mubr.msk.bf16.mxu0 %vm3979_vm8, %v11853_v15  ;;  %v6745_v15 = vld [vmem:[#allocation3 + $0x1a1] sm:$0xff] }
 0x96c   : > { %8890 = vmatmul.mubr.msk.bf16.gmra.mrb[16].mxu0 %vm3979_vm8, %v11873_v60  ;;  %v7038_v60 = vld [vmem:[#allocation3 + $0x19a] sm:$0xff] }
 0x96d   : > { %8893 = vmatprep.mubr.msk.bf16.mxu0 %vm3979_vm8, %v11839_v56  ;;  %v7107_v56 = vsel %vm726_vm3, %v7973_v27, 0  ;;  %v9844_v27 = vld [vmem:[%s9989_s19 + $0xc8] sm:$0xff] }
 0x96e   : > { %v7314_v24 = vpack.c.bf16 %v9844_v27, %v9843_v23 }
 0x974   : > { %8894 = vmatmul.mubr.msk.bf16.gmra.mrb[20].mxu0 %vm3979_vm8, %v11847_v9  ;;  %v7318_v9 = vld [vmem:[%s12485_s14] sm:$0x3] }
 0x975   : > { %8897 = vmatprep.mubr.msk.bf16.mxu0 %vm3979_vm8, %v11859_v34  ;;  %v6761_v34 = vpack.c.bf16 %v6745_v15, %v6744_v8  ;;  %v9848_v8 = vld [vmem:[%s9989_s19 + $0xe8] sm:$0xff] }
 0x97c   : > { %8898 = vmatmul.mubr.msk.bf16.gmra.mrb[24].mxu0 %vm3979_vm8, %v11871_v10  ;;  %v7375_v10 = vsel %vm1429_vm5, %v7318_v9, 0 }
 0x97d   : > { %8901 = vmatprep.mubr.msk.bf16.mxu0 %vm3979_vm8, %v11875_v26  ;;  %v7039_v26 = vld [vmem:[#allocation3 + $0x1a2] sm:$0xff] }
 0x984   : > { %8902 = vmatmul.mubr.msk.bf16.gmra.mrb[28].mxu0 %vm3979_vm8, %v11884_v38  ;;  %v7055_v38 = vpack.c.bf16 %v7039_v26, %v7038_v60  ;;  %v12336_v26 = vld [vmem:[%s12484_s13] ss:$0 sm:$0xff] }
 0x985   : > { %8905 = vmatprep.mubr.msk.bf16.mxu0 %vm3979_vm8, %v11890_v45  ;;  %v9819_v45 = vld [vmem:[%s9989_s19] sm:$0xff]  ;;  %v4936_v27 = vadd.f32 %v12086_v50, %v12336_v26 }
 0x98c   : > { %8906 = vmatmul.mubr.msk.bf16.gmra.mrb[32].mxu0 %vm3979_vm8, %v11909_v31 }
 0x98d   : > { %8909 = vmatprep.mubr.msk.bf16.mxu0 %vm3979_vm8, %v12067_v3  ;;  %v9839_v3 = vld [vmem:[%s9989_s19 + $0xa0] sm:$0xff] }
 0x994   : > { %8910 = vmatmul.mubr.msk.bf16.gmra.mrb[36].mxu0 %vm3979_vm8, %v6467_v7  ;;  %v9846_v7 = vld [vmem:[%s9989_s19 + $0xd8] sm:$0xff] }
 0x995   : > { %8915 = vmatprep.mubr.msk.bf16.mxu0 %vm3979_vm8, %v11901_v19  ;;  %v9820_v19 = vld [vmem:[%s9989_s19 + $0x8] sm:$0xff] }
 0x996   : > { %v7302_v31 = vpack.c.bf16 %v9820_v19, %v9819_v45 }
 0x99c   : > { %8916 = vmatmul.mubr.msk.bf16.vlgmr.msra.gmra.mrb[8].mxu0 %vm3979_vm8, %v11911_v43  ;;  %v9821_v43 = vld [vmem:[%s9989_s19 + $0x10] sm:$0xff] }
 0x99d   : > { %8948 = vmatpush3.bf16.msra.mxu0 %v7107_v56  ;;  %8919 = vmatprep.mubr.msk.bf16.mxu0 %vm3979_vm8, %v11913_v17  ;;  %v9822_v17 = vld [vmem:[%s9989_s19 + $0x18] sm:$0xff]  ;;  %v7315_v56 = vpack.c.bf16 %v9846_v7, %v9845_v28 }
 0x99e   : > { %9676 = vmatprep.subr.msk.bf16.mxu0 %vm1429_vm5, %v7318_v9  ;;  %v9847_v9 = vld [vmem:[%s9989_s19 + $0xe0] sm:$0xff] }
 0x99f   : > { %v7316_v15 = vpack.c.bf16 %v9848_v8, %v9847_v9 }
 0x9a4   : > { %8920 = vmatmul.mubr.msk.bf16.gmra.mrb[12].mxu0 %vm3979_vm8, %v11921_v1  ;;  %v7303_v1 = vpack.c.bf16 %v9822_v17, %v9821_v43 }
 0x9a5   : > { %8923 = vmatprep.mubr.msk.bf16.mxu0 %vm3979_vm8, %v11923_v51  ;;  %v9823_v51 = vld [vmem:[%s9989_s19 + $0x20] sm:$0xff] }
 0x9ac   : > { %8924 = vmatmul.mubr.msk.bf16.gmra.mrb[16].mxu0 %vm3979_vm8, %v11929_v4  ;;  %v9824_v4 = vld [vmem:[%s9989_s19 + $0x28] sm:$0xff] }
 0x9ad   : > { %8927 = vmatprep.mubr.msk.bf16.mxu0 %vm3979_vm8, %v11931_v12  ;;  %v7304_v12 = vpack.c.bf16 %v9824_v4, %v9823_v51 }
 0x9b4   : > { %8928 = vmatmul.mubr.msk.bf16.gmra.mrb[20].mxu0 %vm3979_vm8, %v11937_v37  ;;  %v9825_v37 = vld [vmem:[%s9989_s19 + $0x30] sm:$0xff] }
 0x9b5   : > { %8931 = vmatprep.mubr.msk.bf16.mxu0 %vm3979_vm8, %v11939_v14  ;;  %v9826_v14 = vld [vmem:[%s9989_s19 + $0x38] sm:$0xff] }
 0x9bc   : > { %8932 = vmatmul.mubr.msk.bf16.gmra.mrb[24].mxu0 %vm3979_vm8, %v11945_v59  ;;  %v7305_v59 = vpack.c.bf16 %v9826_v14, %v9825_v37 }
 0x9bd   : > { %8935 = vmatprep.mubr.msk.bf16.mxu0 %vm3979_vm8, %v11947_v35  ;;  %v9827_v35 = vld [vmem:[%s9989_s19 + $0x40] sm:$0xff] }
 0x9c4   : > { %8936 = vmatmul.mubr.msk.bf16.gmra.mrb[28].mxu0 %vm3979_vm8, %v11953_v25  ;;  %v9828_v25 = vld [vmem:[%s9989_s19 + $0x48] sm:$0xff] }
 0x9c5   : > { %8939 = vmatprep.mubr.msk.bf16.mxu0 %vm3979_vm8, %v11955_v42  ;;  %v7306_v42 = vpack.c.bf16 %v9828_v25, %v9827_v35 }
 0x9cc   : > { %8940 = vmatmul.mubr.msk.bf16.gmra.mrb[32].mxu0 %vm3979_vm8, %v11961_v61  ;;  %v9829_v61 = vld [vmem:[%s9989_s19 + $0x50] sm:$0xff] }
 0x9cd   : > { %8943 = vmatprep.mubr.msk.bf16.mxu0 %vm3979_vm8, %v12138_v52  ;;  %v7312_v52 = vpack.c.bf16 %v9840_v40, %v9839_v3 }
 0x9d4   : > { %8944 = vmatmul.mubr.msk.bf16.gmra.mrb[36].mxu0 %vm3979_vm8, %v6761_v34  ;;  %v9849_v34 = vld [vmem:[%s9989_s19 + $0xf0] sm:$0xff] }
 0x9d5   : > { %8949 = vmatprep.mubr.msk.bf16.mxu0 %vm3979_vm8, %v11970_v58  ;;  %v9830_v58 = vld [vmem:[%s9989_s19 + $0x58] sm:$0xff] }
 0x9dc   : > { %8950 = vmatmul.mubr.msk.bf16.vlgmr.msra.gmra.mrb[8].mxu0 %vm3979_vm8, %v11980_v63  ;;  %v7307_v63 = vpack.c.bf16 %v9830_v58, %v9829_v61 }
 0x9dd   : > { %8982 = vmatpush3.bf16.msra.mxu0 %v7375_v10  ;;  %8953 = vmatprep.mubr.msk.bf16.mxu0 %vm3979_vm8, %v11982_v32  ;;  %v9831_v32 = vld [vmem:[%s9989_s19 + $0x60] sm:$0xff]  ;;  %v9850_v10 = vld [vmem:[%s9989_s19 + $0xf8] sm:$0xff] }
 0x9de   : > { %v7317_v60 = vpack.c.bf16 %v9850_v10, %v9849_v34 }
 0x9e4   : > { %8954 = vmatmul.mubr.msk.bf16.gmra.mrb[12].mxu0 %vm3979_vm8, %v11988_v62  ;;  %v9832_v62 = vld [vmem:[%s9989_s19 + $0x68] sm:$0xff] }
 0x9e5   : > { %8957 = vmatprep.mubr.msk.bf16.mxu0 %vm3979_vm8, %v11990_v54  ;;  %v7308_v54 = vpack.c.bf16 %v9832_v62, %v9831_v32 }
 0x9ec   : > { %8958 = vmatmul.mubr.msk.bf16.gmra.mrb[16].mxu0 %vm3979_vm8, %v11996_v49  ;;  %v9833_v49 = vld [vmem:[%s9989_s19 + $0x70] sm:$0xff] }
 0x9ed   : > { %8961 = vmatprep.mubr.msk.bf16.mxu0 %vm3979_vm8, %v11998_v30  ;;  %v9834_v30 = vld [vmem:[%s9989_s19 + $0x78] sm:$0xff] }
 0x9f4   : > { %8962 = vmatmul.mubr.msk.bf16.gmra.mrb[20].mxu0 %vm3979_vm8, %v12004_v13  ;;  %v7309_v13 = vpack.c.bf16 %v9834_v30, %v9833_v49 }
 0x9f5   : > { %8965 = vmatprep.mubr.msk.bf16.mxu0 %vm3979_vm8, %v12006_v21  ;;  %v9835_v21 = vld [vmem:[%s9989_s19 + $0x80] sm:$0xff] }
 0x9fc   : > { %8966 = vmatmul.mubr.msk.bf16.gmra.mrb[24].mxu0 %vm3979_vm8, %v12012_v11  ;;  %v9836_v11 = vld [vmem:[%s9989_s19 + $0x88] sm:$0xff] }
 0x9fd   : > { %8969 = vmatprep.mubr.msk.bf16.mxu0 %vm3979_vm8, %v12014_v16  ;;  %v7310_v16 = vpack.c.bf16 %v9836_v11, %v9835_v21 }
 0xa04   : > { %8970 = vmatmul.mubr.msk.bf16.gmra.mrb[28].mxu0 %vm3979_vm8, %v12020_v0  ;;  %v9837_v0 = vld [vmem:[%s9989_s19 + $0x90] sm:$0xff] }
 0xa05   : > { %8973 = vmatprep.mubr.msk.bf16.mxu0 %vm3979_vm8, %v12022_v48  ;;  %v9838_v48 = vld [vmem:[%s9989_s19 + $0x98] sm:$0xff] }
 0xa0c   : > { %8974 = vmatmul.mubr.msk.bf16.gmra.mrb[32].mxu0 %vm3979_vm8, %v12028_v47  ;;  %v7311_v47 = vpack.c.bf16 %v9838_v48, %v9837_v0 }
 0xa0d   : > { %8977 = vmatprep.mubr.msk.bf16.mxu0 %vm3979_vm8, %v12177_v46  ;;  %v7313_v46 = vpack.c.bf16 %v9842_v39, %v9841_v33 }
 0xa14   : > { %8978 = vmatmul.mubr.msk.bf16.gmra.mrb[36].mxu0 %vm3979_vm8, %v7055_v38  ;;  %v12341_v38 = vld [vmem:[%s12486_s15] ss:$0 sm:$0xff] }
 0xa15   : > { %8983 = vmatprep.mubr.msk.bf16.mxu0 %vm652_vm2, %v7302_v31  ;;  %v9055_v45 = vadd.f32 %v12341_v38, %v12336_v26  ;;  %v9088_v9 = vadd.f32 %v12341_v38, %v4936_v27 }
 0xa1c   : > { %8984 = vmatmul.mubr.msk.bf16.vlgmr.msra.gmra.mrb[8].mxu0 %vm652_vm2, %v7303_v1 }
 0xa1d   : > { %8987 = vmatprep.mubr.msk.bf16.mxu0 %vm652_vm2, %v7304_v12 }
 0xa24   : > { %8988 = vmatmul.mubr.msk.bf16.gmra.mrb[12].mxu0 %vm652_vm2, %v7305_v59 }
 0xa25   : > { %8991 = vmatprep.mubr.msk.bf16.mxu0 %vm652_vm2, %v7306_v42 }
 0xa2c   : > { %8992 = vmatmul.mubr.msk.bf16.gmra.mrb[16].mxu0 %vm652_vm2, %v7307_v63 }
 0xa2d   : > { %8995 = vmatprep.mubr.msk.bf16.mxu0 %vm652_vm2, %v7308_v54 }
 0xa34   : > { %8996 = vmatmul.mubr.msk.bf16.gmra.mrb[20].mxu0 %vm652_vm2, %v7309_v13 }
 0xa35   : > { %8999 = vmatprep.mubr.msk.bf16.mxu0 %vm652_vm2, %v7310_v16 }
 0xa3c   : > { %9000 = vmatmul.mubr.msk.bf16.gmra.mrb[24].mxu0 %vm652_vm2, %v7311_v47 }
 0xa3d   : > { %9003 = vmatprep.mubr.msk.bf16.mxu0 %vm652_vm2, %v7312_v52  ;;  %v4935_v52 = vadd.f32 %v12082_v20, %v12336_v26 }
 0xa3f   : > { %v9082_v20 = vadd.f32 %v12341_v38, %v4935_v52 }
 0xa44   : > { %9004 = vmatmul.mubr.msk.bf16.gmra.mrb[28].mxu0 %vm652_vm2, %v7313_v46  ;;  %v4933_v46 = vadd.f32 %v12336_v26, %v12084_v22 }
 0xa45   : > { %9007 = vmatprep.mubr.msk.bf16.mxu0 %vm652_vm2, %v7314_v24  ;;  %v4934_v24 = vadd.f32 %v12336_v26, %v12088_v36  ;;  %v4939_v36 = vadd.f32 %v12094_v57, %v12336_v26 }
 0xa46   : > { %v9085_v22 = vadd.f32 %v12341_v38, %v4933_v46 }
 0xa47   : > { %v9094_v57 = vadd.f32 %v12341_v38, %v4939_v36 }
 0xa4c   : > { %9008 = vmatmul.mubr.msk.bf16.gmra.mrb[32].mxu0 %vm652_vm2, %v7315_v56 }
 0xa4d   : > { %9011 = vmatprep.mubr.msk.bf16.mxu0 %vm652_vm2, %v7316_v15  ;;  %v9091_v15 = vadd.f32 %v12341_v38, %v4934_v24 }
 0xa54   : > { %9012 = vmatmul.mubr.msk.bf16.gmra.mrb[36].mxu0 %vm652_vm2, %v7317_v60  ;;  %v4937_v60 = vadd.f32 %v12336_v26, %v12096_v18 }
 0xa56   : > { %v9097_v18 = vadd.f32 %v12341_v38, %v4937_v60 }
 0xaef   : > { %v8985_v19 = vpop.f32.mrb[8].mxu0 }
 0xaf0   : > { %v9049_v31 = vadd.f32 %v8985_v19, %v12336_v26  ;;  %v7411_v43 = vpop.f32.mrb[9].mxu0  ;;  %v4940_v19 = vadd.f32 %v12098_v41, %v12336_v26 }
 0xaf1   : > { %v9051_v17 = vadd.f32 %v12336_v26, %v7411_v43  ;;  %v8986_v1 = vpop.f32.mrb[10].mxu0 }
 0xaf2   : > { %v9050_v51 = vadd.f32 %v9049_v31, %v12341_v38  ;;  %v9054_v4 = vadd.f32 %v9055_v45, %v8986_v1  ;;  %v7414_v12 = vpop.f32.mrb[11].mxu0  ;;  %v4938_v31 = vadd.f32 %v12336_v26, %v12100_v6  ;;  %v4943_v6 = vadd.f32 %v12106_v44, %v12336_v26 }
 0xaf3   : > { %v9052_v37 = vadd.f32 %v9051_v17, %v12341_v38  ;;  %v9056_v14 = vadd.f32 %v9055_v45, %v7414_v12 }
 0xaf4   : > { %7572 = vst.msk [vmem:[%s12351_s24 + $0x10] sm:$0xff] %vm3979_vm8, %v9050_v51  ;;  %7573 = vst.msk [vmem:[%s12351_s24 + $0x18] sm:$0xff] %vm3979_vm8, %v9054_v4  ;;  %v9100_v51 = vadd.f32 %v12341_v38, %v4940_v19  ;;  %v9103_v12 = vadd.f32 %v12341_v38, %v4938_v31  ;;  %v9106_v44 = vadd.f32 %v12341_v38, %v4943_v6 }
 0xaf5   : > { %7570 = vst.msk [vmem:[%s12351_s24] sm:$0xff] %vm3979_vm8, %v9052_v37  ;;  %7571 = vst.msk [vmem:[%s12351_s24 + $0x8] sm:$0xff] %vm3979_vm8, %v9056_v14 }
 0xaf7   : > { %v8989_v59 = vpop.f32.mrb[12].mxu0 }
 0xaf8   : > { %v9058_v35 = vadd.f32 %v9055_v45, %v8989_v59  ;;  %v7427_v25 = vpop.f32.mrb[13].mxu0  ;;  %v4941_v59 = vadd.f32 %v12336_v26, %v12108_v55 }
 0xaf9   : > { %v9060_v42 = vadd.f32 %v9055_v45, %v7427_v25  ;;  %v8990_v61 = vpop.f32.mrb[14].mxu0  ;;  %v4944_v25 = vadd.f32 %v12110_v53, %v12336_v26 }
 0xafa   : > { %7576 = vst.msk [vmem:[%s12351_s24 + $0x30] sm:$0xff] %vm3979_vm8, %v9058_v35  ;;  %v9062_v58 = vadd.f32 %v9055_v45, %v8990_v61  ;;  %v7430_v63 = vpop.f32.mrb[15].mxu0  ;;  %v9109_v55 = vadd.f32 %v12341_v38, %v4941_v59 }
 0xafb   : > { %7574 = vst.msk [vmem:[%s12351_s24 + $0x20] sm:$0xff] %vm3979_vm8, %v9060_v42  ;;  %v9064_v32 = vadd.f32 %v9055_v45, %v7430_v63  ;;  %v4942_v42 = vadd.f32 %v12336_v26, %v12112_v5  ;;  %v4947_v5 = vadd.f32 %v12118_v29, %v12336_v26 }
 0xafc   : > { %7577 = vst.msk [vmem:[%s12351_s24 + $0x38] sm:$0xff] %vm3979_vm8, %v9062_v58 }
 0xafd   : > { %7575 = vst.msk [vmem:[%s12351_s24 + $0x28] sm:$0xff] %vm3979_vm8, %v9064_v32  ;;  %v9112_v32 = vadd.f32 %v12341_v38, %v4944_v25 }
 0xaff   : > { %v8993_v62 = vpop.f32.mrb[16].mxu0 }
 0xb00   : > { %v9066_v54 = vadd.f32 %v9055_v45, %v8993_v62  ;;  %v7443_v49 = vpop.f32.mrb[17].mxu0 }
 0xb01   : > { %v9068_v30 = vadd.f32 %v9055_v45, %v7443_v49  ;;  %v8994_v13 = vpop.f32.mrb[18].mxu0 }
 0xb02   : > { %7580 = vst.msk [vmem:[%s12351_s24 + $0x50] sm:$0xff] %vm3979_vm8, %v9066_v54  ;;  %v9070_v21 = vadd.f32 %v9055_v45, %v8994_v13  ;;  %v7446_v11 = vpop.f32.mrb[19].mxu0  ;;  %v9115_v54 = vadd.f32 %v12341_v38, %v4942_v42  ;;  %v4945_v13 = vadd.f32 %v12336_v26, %v12120_v2 }
 0xb03   : > { %7578 = vst.msk [vmem:[%s12351_s24 + $0x40] sm:$0xff] %vm3979_vm8, %v9068_v30  ;;  %v9072_v16 = vadd.f32 %v9055_v45, %v7446_v11  ;;  %v12492_v11 = vld [vmem:[#allocation4_spill] sm:$0xff] }
 0xb04   : > { %7581 = vst.msk [vmem:[%s12351_s24 + $0x58] sm:$0xff] %vm3979_vm8, %v9070_v21 }
 0xb05   : > { %7579 = vst.msk [vmem:[%s12351_s24 + $0x48] sm:$0xff] %vm3979_vm8, %v9072_v16  ;;  %v4948_v16 = vadd.f32 %v12492_v11, %v12336_v26 }
 0xb07   : > { %v8997_v0 = vpop.f32.mrb[20].mxu0  ;;  %v9124_v52 = vadd.f32 %v12341_v38, %v4948_v16 }
 0xb08   : > { %v9074_v48 = vadd.f32 %v9055_v45, %v8997_v0  ;;  %v7459_v47 = vpop.f32.mrb[21].mxu0  ;;  %v12493_v0 = vld [vmem:[#allocation5_spill] sm:$0xff] }
 0xb09   : > { %v9076_v3 = vadd.f32 %v9055_v45, %v7459_v47  ;;  %v8998_v40 = vpop.f32.mrb[22].mxu0  ;;  %v4946_v29 = vadd.f32 %v12336_v26, %v12493_v0  ;;  %v9121_v47 = vadd.f32 %v12341_v38, %v4945_v13 }
 0xb0a   : > { %7584 = vst.msk [vmem:[%s12351_s24 + $0x70] sm:$0xff] %vm3979_vm8, %v9074_v48  ;;  %v9078_v33 = vadd.f32 %v9055_v45, %v8998_v40  ;;  %v7462_v39 = vpop.f32.mrb[23].mxu0  ;;  %v9118_v48 = vadd.f32 %v12341_v38, %v4947_v5 }
 0xb0b   : > { %7582 = vst.msk [vmem:[%s12351_s24 + $0x60] sm:$0xff] %vm3979_vm8, %v9076_v3  ;;  %v9080_v23 = vadd.f32 %v9055_v45, %v7462_v39  ;;  %v9127_v46 = vadd.f32 %v12341_v38, %v4946_v29 }
 0xb0c   : > { %7585 = vst.msk [vmem:[%s12351_s24 + $0x78] sm:$0xff] %vm3979_vm8, %v9078_v33 }
 0xb0d   : > { %7583 = vst.msk [vmem:[%s12351_s24 + $0x68] sm:$0xff] %vm3979_vm8, %v9080_v23 }
 0xb0f   : > { %v9001_v28 = vpop.f32.mrb[24].mxu0 }
 0xb10   : > { %v9083_v7 = vadd.f32 %v9082_v20, %v9001_v28  ;;  %v7475_v56 = vpop.f32.mrb[25].mxu0 }
 0xb11   : > { %v9086_v50 = vadd.f32 %v9085_v22, %v7475_v56  ;;  %v9002_v8 = vpop.f32.mrb[26].mxu0 }
 0xb12   : > { %7588 = vst.msk [vmem:[%s12351_s24 + $0x90] sm:$0xff] %vm3979_vm8, %v9083_v7  ;;  %v9089_v34 = vadd.f32 %v9088_v9, %v9002_v8  ;;  %v7478_v10 = vpop.f32.mrb[27].mxu0 }
 0xb13   : > { %7586 = vst.msk [vmem:[%s12351_s24 + $0x80] sm:$0xff] %vm3979_vm8, %v9086_v50  ;;  %v9092_v45 = vadd.f32 %v9091_v15, %v7478_v10 }
 0xb14   : > { %7589 = vst.msk [vmem:[%s12351_s24 + $0x98] sm:$0xff] %vm3979_vm8, %v9089_v34 }
 0xb15   : > { %7587 = vst.msk [vmem:[%s12351_s24 + $0x88] sm:$0xff] %vm3979_vm8, %v9092_v45 }
 0xb17   : > { %v9005_v43 = vpop.f32.mrb[28].mxu0 }
 0xb18   : > { %v9095_v17 = vadd.f32 %v9094_v57, %v9005_v43  ;;  %v7491_v1 = vpop.f32.mrb[29].mxu0 }
 0xb19   : > { %v9098_v41 = vadd.f32 %v9097_v18, %v7491_v1  ;;  %v9006_v4 = vpop.f32.mrb[30].mxu0 }
 0xb1a   : > { %7592 = vst.msk [vmem:[%s12351_s24 + $0xb0] sm:$0xff] %vm3979_vm8, %v9095_v17  ;;  %v9101_v37 = vadd.f32 %v9100_v51, %v9006_v4  ;;  %v7494_v14 = vpop.f32.mrb[31].mxu0 }
 0xb1b   : > { %7590 = vst.msk [vmem:[%s12351_s24 + $0xa0] sm:$0xff] %vm3979_vm8, %v9098_v41  ;;  %v9104_v35 = vadd.f32 %v9103_v12, %v7494_v14 }
 0xb1c   : > { %7593 = vst.msk [vmem:[%s12351_s24 + $0xb8] sm:$0xff] %vm3979_vm8, %v9101_v37 }
 0xb1d   : > { %7591 = vst.msk [vmem:[%s12351_s24 + $0xa8] sm:$0xff] %vm3979_vm8, %v9104_v35 }
 0xb1f   : > { %v9009_v61 = vpop.f32.mrb[32].mxu0 }
 0xb20   : > { %v9107_v58 = vadd.f32 %v9106_v44, %v9009_v61  ;;  %v7507_v63 = vpop.f32.mrb[33].mxu0 }
 0xb21   : > { %v9110_v53 = vadd.f32 %v9109_v55, %v7507_v63  ;;  %v9010_v62 = vpop.f32.mrb[34].mxu0 }
 0xb22   : > { %7596 = vst.msk [vmem:[%s12351_s24 + $0xd0] sm:$0xff] %vm3979_vm8, %v9107_v58  ;;  %v9113_v49 = vadd.f32 %v9112_v32, %v9010_v62  ;;  %v7510_v30 = vpop.f32.mrb[35].mxu0 }
 0xb23   : > { %7594 = vst.msk [vmem:[%s12351_s24 + $0xc0] sm:$0xff] %vm3979_vm8, %v9110_v53  ;;  %v9116_v21 = vadd.f32 %v9115_v54, %v7510_v30 }
 0xb24   : > { %7597 = vst.msk [vmem:[%s12351_s24 + $0xd8] sm:$0xff] %vm3979_vm8, %v9113_v49 }
 0xb25   : > { %7595 = vst.msk [vmem:[%s12351_s24 + $0xc8] sm:$0xff] %vm3979_vm8, %v9116_v21 }
 0xb27   : > { %v9013_v2 = vpop.f32.mrb[36].mxu0 }
 0xb28   : > { %v9119_v3 = vadd.f32 %v9118_v48, %v9013_v2  ;;  %v7523_v40 = vpop.f32.mrb[37].mxu0 }
 0xb29   : > { %v9122_v33 = vadd.f32 %v9121_v47, %v7523_v40  ;;  %v9014_v39 = vpop.f32.mrb[38].mxu0 }
 0xb2a   : > { %7600 = vst.msk [vmem:[%s12351_s24 + $0xf0] sm:$0xff] %vm3979_vm8, %v9119_v3  ;;  %v9125_v26 = vadd.f32 %v9124_v52, %v9014_v39  ;;  %v7526_v23 = vpop.f32.mrb[39].mxu0 }
 0xb2b   : > { %7598 = vst.msk [vmem:[%s12351_s24 + $0xe0] sm:$0xff] %vm3979_vm8, %v9122_v33  ;;  %v9128_v27 = vadd.f32 %v9127_v46, %v7526_v23 }
 0xb2c   : > { %7601 = vst.msk [vmem:[%s12351_s24 + $0xf8] sm:$0xff] %vm3979_vm8, %v9125_v26 }
 0xb2d   : > { %7599 = vst.msk [vmem:[%s12351_s24 + $0xe8] sm:$0xff] %vm3979_vm8, %v9128_v27 }
 0xb2e PF: > { %s26_s21 = sadd.s32 1, %s9857_s21  }
 0xb2f   : > { %p23_p4 = scmp.ge.s32.totalorder %s26_s21, 4  }
 0xb31   :  { %25 = sbr.rel (!%p23_p4) target bundleno = 2 (0x2), region = 139 }

</bundles_post_ra>
